<compile_context>
chip_gen: v7x
topology: tpu7x:2x2x1
jax: 0.10.0
libtpu: 0.0.40
codegen_flags: <defaults>
</compile_context>

<pallas_src>
import functools

import jax
import jax.numpy as jnp
import numpy as np
from jax.experimental import pallas as pl
from jax.experimental.pallas import tpu as pltpu

EPS = 1e-5


# --------------------------------------------------------------------------- #
# Kernel helpers
# --------------------------------------------------------------------------- #
def _zero_pad_border(pad_ref, d):
    """Zero only the d-wide padding border; the interior is overwritten each step."""
    Bn, Hp, Wp, C = pad_ref.shape
    H, W = Hp - 2 * d, Wp - 2 * d
    zrow = jnp.zeros((Bn, d, Wp, C), pad_ref.dtype)
    pad_ref[:, 0:d, :, :] = zrow
    pad_ref[:, Hp - d:Hp, :, :] = zrow
    zcol = jnp.zeros((Bn, H, d, C), pad_ref.dtype)
    pad_ref[:, d:d + H, 0:d, :] = zcol
    pad_ref[:, d:d + H, Wp - d:Wp, :] = zcol


def _dilated_conv3x3(pad_ref, w_ref, d):
    """Shift-and-accumulate 3x3 dilated conv: 9 (Bn*H*W,Cin)x(Cin,P) MXU matmuls."""
    Bn, Hp, Wp, Cin = pad_ref.shape
    H, W = Hp - 2 * d, Wp - 2 * d
    acc = None
    for ky in range(3):
        for kx in range(3):
            xs = pad_ref[:, ky * d:ky * d + H, kx * d:kx * d + W, :]
            m = jnp.dot(xs.reshape(Bn * H * W, Cin).astype(jnp.bfloat16),
                        w_ref[ky * 3 + kx],
                        preferred_element_type=jnp.float32)
            acc = m if acc is None else acc + m
    return acc  # (Bn*H*W, P) f32


def _conv1_kernel(x_ref, w_ref, y_ref, stats_ref, pad_ref, *, d):
    """conv1 (direct dilated 3x3) + per-block (sum, sumsq) for bn1."""
    Bn, Hp, Wp, C = pad_ref.shape
    H, W = Hp - 2 * d, Wp - 2 * d

    _zero_pad_border(pad_ref, d)
    pad_ref[:, d:d + H, d:d + W, :] = x_ref[...]

    acc = _dilated_conv3x3(pad_ref, w_ref, d)

    # Fused BN statistics from the f32 accumulator (finalized in the wrapper).
    stats_ref[0, 0:1, :] = jnp.sum(acc, axis=0, keepdims=True)
    stats_ref[0, 1:2, :] = jnp.sum(acc * acc, axis=0, keepdims=True)

    y_ref[...] = acc.reshape(y_ref.shape).astype(y_ref.dtype)   # bf16 to HBM


def _conv2_kernel(y1_ref, w_ref, scale_ref, shift_ref, y2_ref, stats_ref,
                  pad_ref, *, d):
    """bn1+relu (applied once) + conv2 (direct dilated 3x3) + bn2 partial stats."""
    Bn, Hp, Wp, P = pad_ref.shape
    H, W = Hp - 2 * d, Wp - 2 * d

    _zero_pad_border(pad_ref, d)
    # Folded bn1 affine + relu, computed exactly once in f32, shared by all taps.
    act = jnp.maximum(
        y1_ref[...].astype(jnp.float32) * scale_ref[...] + shift_ref[...], 0.0)
    pad_ref[:, d:d + H, d:d + W, :] = act

    acc = _dilated_conv3x3(pad_ref, w_ref, d)

    stats_ref[0, 0:1, :] = jnp.sum(acc, axis=0, keepdims=True)
    stats_ref[0, 1:2, :] = jnp.sum(acc * acc, axis=0, keepdims=True)

    y2_ref[...] = acc.reshape(y2_ref.shape).astype(y2_ref.dtype)  # bf16 to HBM


def _bn_residual_relu_kernel(y2_ref, x_ref, scale_ref, shift_ref, out_ref):
    """Lane-dense (rows, W*P) elementwise tail: bn2 + residual + relu."""
    wp = out_ref.shape[1]
    P = scale_ref.shape[1]
    reps = wp // P
    scale = jnp.tile(scale_ref[...], (1, reps))     # in-kernel broadcast
    shift = jnp.tile(shift_ref[...], (1, reps))
    out_ref[...] = jnp.maximum(
        y2_ref[...].astype(jnp.float32) * scale + shift + x_ref[...], 0.0)


# --------------------------------------------------------------------------- #
# VMEM-budget-aware tiling choosers
# --------------------------------------------------------------------------- #
def _pick_batch_block(N, H, W, C, P, d, budget_bytes=20 * 1024 * 1024):
    """Images per grid step for K1/K2; capped so the grid keeps >=2 steps."""
    Hp, Wp = H + 2 * d, W + 2 * d

    def step_bytes(bn):
        hw = H * W
        k1 = ((bn * hw * C * 4) * 2          # x block (f32), double-buffered
              + (bn * hw * P * 2) * 2        # y1 block (bf16), double-buffered
              + bn * Hp * Wp * C * 4         # padded-input scratch (f32)
              + bn * hw * P * 4              # f32 accumulator (worst case)
              + 9 * C * P * 2 * 2)           # weights (bf16)
        k2 = ((bn * hw * P * 2) * 4          # y1 in + y2 out (bf16), dbl-buffered
              + bn * Hp * Wp * P * 4         # padded-activation scratch (f32)
              + bn * hw * P * 4
              + 9 * P * P * 2 * 2)
        return max(k1, k2)

    cap = max(1, N // 2) if N >= 2 else N    # keep >=2 grid steps (v7x: 2 cores)
    best = 1
    for bn in range(1, cap + 1):
        if N % bn == 0 and step_bytes(bn) <= budget_bytes:
            best = bn
    return best


def _pick_rows_tile(rows, wp, budget_bytes=16 * 1024 * 1024):
    """Row tile for K3: largest divisor of `rows` whose buffered blocks fit."""
    per_row = wp * (2 + 4 + 4) * 2           # y2 bf16 + x f32 + out f32, x2 bufs
    smallest_valid = rows
    for cand in range(rows, 0, -1):
        if rows % cand:
            continue
        if cand != rows and cand % 8:
            continue                         # (8,128) tiling rule
        if cand * per_row <= budget_bytes:
            return cand
        smallest_valid = cand
    return smallest_valid


# --------------------------------------------------------------------------- #
# Block wrapper
# --------------------------------------------------------------------------- #
@functools.partial(jax.jit, static_argnames=("dilation",))
def basic_block(x_nhwc, w1, g1, b1, w2, g2, b2, *, dilation=1):
    """x_nhwc: (N,H,W,Cin); w*: (3,3,Cin,P) HWIO; g*,b*: (P,). Returns (N,H,W,P)."""
    N, H, W, C = x_nhwc.shape
    P = w1.shape[-1]
    if C != P:
        # TODO(synk): downsample / stride>1 branch of BasicBlock not implemented.
        raise NotImplementedError("residual path requires inplanes == planes")
    d = int(dilation)
    count = float(N * H * W)

    x_nhwc = x_nhwc.astype(jnp.float32)
    w1t = w1.reshape(9, C, P).astype(jnp.bfloat16)   # (tap, cin, cout), MXU bf16
    w2t = w2.reshape(9, P, P).astype(jnp.bfloat16)
    g1v, b1v = g1.reshape(-1), b1.reshape(-1)
    g2v, b2v = g2.reshape(-1), b2.reshape(-1)

    Bn = _pick_batch_block(N, H, W, C, P, d)
    nblk = N // Bn

    cparams = pltpu.CompilerParams(
        dimension_semantics=("parallel",),            # grid steps are independent
        vmem_limit_bytes=48 * 1024 * 1024)

    # ---- K1: conv1 + per-block (sum, sumsq) --------------------------------
    y1, st1 = pl.pallas_call(
        functools.partial(_conv1_kernel, d=d),
        grid=(nblk,),
        in_specs=[pl.BlockSpec((Bn, H, W, C), lambda n: (n, 0, 0, 0)),
                  pl.BlockSpec((9, C, P), lambda n: (0, 0, 0))],
        out_specs=[pl.BlockSpec((Bn, H, W, P), lambda n: (n, 0, 0, 0)),
                   pl.BlockSpec((1, 2, P), lambda n: (n, 0, 0))],
        out_shape=[jax.ShapeDtypeStruct((N, H, W, P), jnp.bfloat16),
                   jax.ShapeDtypeStruct((nblk, 2, P), jnp.float32)],
        scratch_shapes=[pltpu.VMEM((Bn, H + 2 * d, W + 2 * d, C), jnp.float32)],
        compiler_params=cparams,
    )(x_nhwc, w1t)

    # ---- bn1 batch statistics (training mode, biased variance) -------------
    mean1 = jnp.sum(st1[:, 0, :], axis=0) / count
    var1 = jnp.maximum(jnp.sum(st1[:, 1, :], axis=0) / count - mean1 * mean1, 0.0)
    scale1 = g1v * jax.lax.rsqrt(var1 + EPS)
    shift1 = b1v - mean1 * scale1

    # ---- K2: bn1 + relu (once) + conv2 + per-block (sum, sumsq) ------------
    y2, st2 = pl.pallas_call(
        functools.partial(_conv2_kernel, d=d),
        grid=(nblk,),
        in_specs=[pl.BlockSpec((Bn, H, W, P), lambda n: (n, 0, 0, 0)),
                  pl.BlockSpec((9, P, P), lambda n: (0, 0, 0)),
                  pl.BlockSpec((1, P), lambda n: (0, 0)),
                  pl.BlockSpec((1, P), lambda n: (0, 0))],
        out_specs=[pl.BlockSpec((Bn, H, W, P), lambda n: (n, 0, 0, 0)),
                   pl.BlockSpec((1, 2, P), lambda n: (n, 0, 0))],
        out_shape=[jax.ShapeDtypeStruct((N, H, W, P), jnp.bfloat16),
                   jax.ShapeDtypeStruct((nblk, 2, P), jnp.float32)],
        scratch_shapes=[pltpu.VMEM((Bn, H + 2 * d, W + 2 * d, P), jnp.float32)],
        compiler_params=cparams,
    )(y1, w2t, scale1.reshape(1, P), shift1.reshape(1, P))

    # ---- bn2 batch statistics -----------------------------------------------
    mean2 = jnp.sum(st2[:, 0, :], axis=0) / count
    var2 = jnp.maximum(jnp.sum(st2[:, 1, :], axis=0) / count - mean2 * mean2, 0.0)
    scale2 = g2v * jax.lax.rsqrt(var2 + EPS)
    shift2 = b2v - mean2 * scale2

    # ---- K3: bn2 + residual + relu, lane-dense (N*H, W*P) tiles -------------
    rows, wp = N * H, W * P
    tr = _pick_rows_tile(rows, wp)
    out_flat = pl.pallas_call(
        _bn_residual_relu_kernel,
        grid=(rows // tr,),
        in_specs=[pl.BlockSpec((tr, wp), lambda i: (i, 0)),
                  pl.BlockSpec((tr, wp), lambda i: (i, 0)),
                  pl.BlockSpec((1, P), lambda i: (0, 0)),
                  pl.BlockSpec((1, P), lambda i: (0, 0))],
        out_specs=pl.BlockSpec((tr, wp), lambda i: (i, 0)),
        out_shape=jax.ShapeDtypeStruct((rows, wp), jnp.float32),
        compiler_params=cparams,
    )(y2.reshape(rows, wp),                 # free HBM reshapes (contiguous)
      x_nhwc.reshape(rows, W * C),          # residual from the unpadded input
      scale2.reshape(1, P),
      shift2.reshape(1, P))

    return out_flat.reshape(N, H, W, P)


# --------------------------------------------------------------------------- #
# Pure-JAX reference
# --------------------------------------------------------------------------- #
def basic_block_reference(x_nhwc, w1, g1, b1, w2, g2, b2, dilation=1,
                          conv_dtype=jnp.float32):
    """Pure-JAX reference (lax.conv) with the same training-mode BN semantics."""
    d = dilation
    dn = jax.lax.conv_dimension_numbers(x_nhwc.shape, w1.shape,
                                        ("NHWC", "HWIO", "NHWC"))

    def conv(x, w):
        return jax.lax.conv_general_dilated(
            x.astype(conv_dtype), w.astype(conv_dtype),
            window_strides=(1, 1), padding=[(d, d), (d, d)],
            rhs_dilation=(d, d), dimension_numbers=dn,
            preferred_element_type=jnp.float32)

    def bn(y, g, b):
        mean = jnp.mean(y, axis=(0, 1, 2), keepdims=True)
        var = jnp.mean((y - mean) ** 2, axis=(0, 1, 2), keepdims=True)
        return (y - mean) * jax.lax.rsqrt(var + EPS) * g.reshape(1, 1, 1, -1) \
            + b.reshape(1, 1, 1, -1)

    out = jnp.maximum(bn(conv(x_nhwc, w1), g1, b1), 0.0)
    out = bn(conv(out, w2), g2, b2)
    return jnp.maximum(out + x_nhwc, 0.0)


if __name__ == "__main__":
    # Small shapes consistent with BasicBlock(inplanes=8, planes=8).
    N, C, H, W = 2, 8, 16, 16
    P = 8          # planes (expansion = 1)

    key = jax.random.PRNGKey(0)
    k = jax.random.split(key, 6)
    x_nchw = jax.random.normal(k[0], (N, C, H, W), jnp.float32)    # PyTorch layout
    w1 = jax.random.normal(k[1], (3, 3, C, P), jnp.float32) * 0.1  # HWIO
    w2 = jax.random.normal(k[2], (3, 3, P, P), jnp.float32) * 0.1
    g1 = 1.0 + 0.1 * jax.random.normal(k[3], (P,), jnp.float32)
    b1 = 0.1 * jax.random.normal(k[4], (P,), jnp.float32)
    g2 = 1.0 + 0.1 * jax.random.normal(k[5], (P,), jnp.float32)
    b2 = jnp.zeros((P,), jnp.float32)

    # NCHW (PyTorch) -> NHWC (kernel layout).
    x_nhwc = jnp.transpose(x_nchw, (0, 2, 3, 1))

    # ---- dilation = 1 (module default) ------------------------------------
    out = basic_block(x_nhwc, w1, g1, b1, w2, g2, b2, dilation=1)
    out = jax.block_until_ready(out)
    assert out.shape == (N, H, W, P)

    # Tight check: reference with the same bf16 conv inputs / f32 accumulation
    # (slightly loosened because y1/y2 round-trip through HBM as bf16).
    ref_bf16 = basic_block_reference(x_nhwc, w1, g1, b1, w2, g2, b2,
                                     dilation=1, conv_dtype=jnp.bfloat16)
    np.testing.assert_allclose(np.asarray(out), np.asarray(ref_bf16),
                               rtol=3e-2, atol=3e-2)

    # Loose check against the pure-f32 reference (bounds bf16 quantization).
    ref_f32 = basic_block_reference(x_nhwc, w1, g1, b1, w2, g2, b2,
                                    dilation=1, conv_dtype=jnp.float32)
    np.testing.assert_allclose(np.asarray(out), np.asarray(ref_f32),
                               rtol=1e-1, atol=1e-1)

    # ---- dilation = 2 (dilated FCN path) -----------------------------------
    out_d2 = basic_block(x_nhwc, w1, g1, b1, w2, g2, b2, dilation=2)
    out_d2 = jax.block_until_ready(out_d2)
    ref_d2 = basic_block_reference(x_nhwc, w1, g1, b1, w2, g2, b2,
                                   dilation=2, conv_dtype=jnp.bfloat16)
    np.testing.assert_allclose(np.asarray(out_d2), np.asarray(ref_d2),
                               rtol=3e-2, atol=3e-2)

    print("KERNEL_OK")
</pallas_src>

<mosaic_0001>
module attributes {stable_mosaic.version = 11 : i64} {
  func.func @_conv1_kernel(%arg0: i32, %arg1: memref<1x16x16x8xf32, #tpu.memory_space<vmem>>, %arg2: memref<9x8x8xbf16, #tpu.memory_space<vmem>>, %arg3: memref<1x16x16x8xbf16, #tpu.memory_space<vmem>>, %arg4: memref<1x2x8xf32, #tpu.memory_space<vmem>>, %arg5: memref<1x18x18x8xf32, #tpu.memory_space<vmem>>) attributes {dimension_semantics = [#tpu.dimension_semantics<parallel>], iteration_bounds = array<i64: 2>, scalar_prefetch = 0 : i64, scratch_operands = 1 : i64, tpu.core_type = #tpu.core_type<tc>, window_params = [{transform_indices = @transform_0, window_bounds = array<i64: 1, 16, 16, 8>}, {pipeline_mode = #tpu.pipeline_mode<synchronous>, transform_indices = @transform_1, window_bounds = array<i64: 9, 8, 8>}, {transform_indices = @transform_2, window_bounds = array<i64: 1, 16, 16, 8>}, {transform_indices = @transform_3, window_bounds = array<i64: 1, 2, 8>}]} {
    %cst = arith.constant 0.000000e+00 : f32
    %0 = vector.broadcast %cst : f32 to vector<1x1x18x8xf32>
    %c0 = arith.constant 0 : index
    %c0_0 = arith.constant 0 : index
    %c0_1 = arith.constant 0 : index
    %c0_2 = arith.constant 0 : index
    %1 = vector.load %arg5[%c0, %c0_0, %c0_1, %c0_2] : memref<1x18x18x8xf32, #tpu.memory_space<vmem>>, vector<1x1x18x8xf32>
    tpu.vector_store %arg5[%c0, %c0_0, %c0_1, %c0_2], %0 {strides = array<i32>} : memref<1x18x18x8xf32, #tpu.memory_space<vmem>>, vector<1x1x18x8xf32>,
    %c0_3 = arith.constant 0 : index
    %c17 = arith.constant 17 : index
    %c0_4 = arith.constant 0 : index
    %c0_5 = arith.constant 0 : index
    %2 = vector.load %arg5[%c0_3, %c17, %c0_4, %c0_5] : memref<1x18x18x8xf32, #tpu.memory_space<vmem>>, vector<1x1x18x8xf32>
    tpu.vector_store %arg5[%c0_3, %c17, %c0_4, %c0_5], %0 {strides = array<i32>} : memref<1x18x18x8xf32, #tpu.memory_space<vmem>>, vector<1x1x18x8xf32>,
    %cst_6 = arith.constant 0.000000e+00 : f32
    %3 = vector.broadcast %cst_6 : f32 to vector<1x16x1x8xf32>
    %c0_7 = arith.constant 0 : index
    %c1 = arith.constant 1 : index
    %c0_8 = arith.constant 0 : index
    %c0_9 = arith.constant 0 : index
    %4 = vector.load %arg5[%c0_7, %c1, %c0_8, %c0_9] : memref<1x18x18x8xf32, #tpu.memory_space<vmem>>, vector<1x16x1x8xf32>
    tpu.vector_store %arg5[%c0_7, %c1, %c0_8, %c0_9], %3 {strides = array<i32>} : memref<1x18x18x8xf32, #tpu.memory_space<vmem>>, vector<1x16x1x8xf32>,
    %c0_10 = arith.constant 0 : index
    %c1_11 = arith.constant 1 : index
    %c17_12 = arith.constant 17 : index
    %c0_13 = arith.constant 0 : index
    %5 = vector.load %arg5[%c0_10, %c1_11, %c17_12, %c0_13] : memref<1x18x18x8xf32, #tpu.memory_space<vmem>>, vector<1x16x1x8xf32>
    tpu.vector_store %arg5[%c0_10, %c1_11, %c17_12, %c0_13], %3 {strides = array<i32>} : memref<1x18x18x8xf32, #tpu.memory_space<vmem>>, vector<1x16x1x8xf32>,
    %c0_14 = arith.constant 0 : index
    %c0_15 = arith.constant 0 : index
    %c0_16 = arith.constant 0 : index
    %c0_17 = arith.constant 0 : index
    %6 = vector.load %arg1[%c0_14, %c0_15, %c0_16, %c0_17] : memref<1x16x16x8xf32, #tpu.memory_space<vmem>>, vector<1x16x16x8xf32>
    %c0_18 = arith.constant 0 : index
    %c1_19 = arith.constant 1 : index
    %c1_20 = arith.constant 1 : index
    %c0_21 = arith.constant 0 : index
    %7 = vector.load %arg5[%c0_18, %c1_19, %c1_20, %c0_21] : memref<1x18x18x8xf32, #tpu.memory_space<vmem>>, vector<1x16x16x8xf32>
    tpu.vector_store %arg5[%c0_18, %c1_19, %c1_20, %c0_21], %6 {strides = array<i32>} : memref<1x18x18x8xf32, #tpu.memory_space<vmem>>, vector<1x16x16x8xf32>,
    %c0_22 = arith.constant 0 : index
    %c0_23 = arith.constant 0 : index
    %c0_24 = arith.constant 0 : index
    %c0_25 = arith.constant 0 : index
    %8 = vector.load %arg5[%c0_22, %c0_23, %c0_24, %c0_25] : memref<1x18x18x8xf32, #tpu.memory_space<vmem>>, vector<1x16x16x8xf32>
    %9 = vector.shape_cast %8 : vector<1x16x16x8xf32> to vector<256x8xf32>
    %10 = arith.truncf %9 : vector<256x8xf32> to vector<256x8xbf16>
    %c0_26 = arith.constant 0 : index
    %c0_27 = arith.constant 0 : index
    %c0_28 = arith.constant 0 : index
    %11 = vector.load %arg2[%c0_26, %c0_27, %c0_28] : memref<9x8x8xbf16, #tpu.memory_space<vmem>>, vector<1x8x8xbf16>
    %12 = vector.shape_cast %11 : vector<1x8x8xbf16> to vector<8x8xbf16>
    %cst_29 = arith.constant dense<0.000000e+00> : vector<256x8xf32>
    %13 = tpu.matmul %10, %12, %cst_29 {dimension_numbers = #tpu.dot_dimension_numbers<[1], [0], [0], [1], [0, 0, 1, 1], [], []>} : vector<256x8xbf16>, vector<8x8xbf16>, vector<256x8xf32> -> vector<256x8xf32>
    %c0_30 = arith.constant 0 : index
    %c0_31 = arith.constant 0 : index
    %c1_32 = arith.constant 1 : index
    %c0_33 = arith.constant 0 : index
    %14 = vector.load %arg5[%c0_30, %c0_31, %c1_32, %c0_33] : memref<1x18x18x8xf32, #tpu.memory_space<vmem>>, vector<1x16x16x8xf32>
    %15 = vector.shape_cast %14 : vector<1x16x16x8xf32> to vector<256x8xf32>
    %16 = arith.truncf %15 : vector<256x8xf32> to vector<256x8xbf16>
    %c1_34 = arith.constant 1 : index
    %c0_35 = arith.constant 0 : index
    %c0_36 = arith.constant 0 : index
    %17 = vector.load %arg2[%c1_34, %c0_35, %c0_36] : memref<9x8x8xbf16, #tpu.memory_space<vmem>>, vector<1x8x8xbf16>
    %18 = vector.shape_cast %17 : vector<1x8x8xbf16> to vector<8x8xbf16>
    %cst_37 = arith.constant dense<0.000000e+00> : vector<256x8xf32>
    %19 = tpu.matmul %16, %18, %cst_37 {dimension_numbers = #tpu.dot_dimension_numbers<[1], [0], [0], [1], [0, 0, 1, 1], [], []>} : vector<256x8xbf16>, vector<8x8xbf16>, vector<256x8xf32> -> vector<256x8xf32>
    %20 = arith.addf %13, %19 : vector<256x8xf32>
    %c0_38 = arith.constant 0 : index
    %c0_39 = arith.constant 0 : index
    %c2 = arith.constant 2 : index
    %c0_40 = arith.constant 0 : index
    %21 = vector.load %arg5[%c0_38, %c0_39, %c2, %c0_40] : memref<1x18x18x8xf32, #tpu.memory_space<vmem>>, vector<1x16x16x8xf32>
    %22 = vector.shape_cast %21 : vector<1x16x16x8xf32> to vector<256x8xf32>
    %23 = arith.truncf %22 : vector<256x8xf32> to vector<256x8xbf16>
    %c2_41 = arith.constant 2 : index
    %c0_42 = arith.constant 0 : index
    %c0_43 = arith.constant 0 : index
    %24 = vector.load %arg2[%c2_41, %c0_42, %c0_43] : memref<9x8x8xbf16, #tpu.memory_space<vmem>>, vector<1x8x8xbf16>
    %25 = vector.shape_cast %24 : vector<1x8x8xbf16> to vector<8x8xbf16>
    %cst_44 = arith.constant dense<0.000000e+00> : vector<256x8xf32>
    %26 = tpu.matmul %23, %25, %cst_44 {dimension_numbers = #tpu.dot_dimension_numbers<[1], [0], [0], [1], [0, 0, 1, 1], [], []>} : vector<256x8xbf16>, vector<8x8xbf16>, vector<256x8xf32> -> vector<256x8xf32>
    %27 = arith.addf %20, %26 : vector<256x8xf32>
    %c0_45 = arith.constant 0 : index
    %c1_46 = arith.constant 1 : index
    %c0_47 = arith.constant 0 : index
    %c0_48 = arith.constant 0 : index
    %28 = vector.load %arg5[%c0_45, %c1_46, %c0_47, %c0_48] : memref<1x18x18x8xf32, #tpu.memory_space<vmem>>, vector<1x16x16x8xf32>
    %29 = vector.shape_cast %28 : vector<1x16x16x8xf32> to vector<256x8xf32>
    %30 = arith.truncf %29 : vector<256x8xf32> to vector<256x8xbf16>
    %c3 = arith.constant 3 : index
    %c0_49 = arith.constant 0 : index
    %c0_50 = arith.constant 0 : index
    %31 = vector.load %arg2[%c3, %c0_49, %c0_50] : memref<9x8x8xbf16, #tpu.memory_space<vmem>>, vector<1x8x8xbf16>
    %32 = vector.shape_cast %31 : vector<1x8x8xbf16> to vector<8x8xbf16>
    %cst_51 = arith.constant dense<0.000000e+00> : vector<256x8xf32>
    %33 = tpu.matmul %30, %32, %cst_51 {dimension_numbers = #tpu.dot_dimension_numbers<[1], [0], [0], [1], [0, 0, 1, 1], [], []>} : vector<256x8xbf16>, vector<8x8xbf16>, vector<256x8xf32> -> vector<256x8xf32>
    %34 = arith.addf %27, %33 : vector<256x8xf32>
    %c0_52 = arith.constant 0 : index
    %c1_53 = arith.constant 1 : index
    %c1_54 = arith.constant 1 : index
    %c0_55 = arith.constant 0 : index
    %35 = vector.load %arg5[%c0_52, %c1_53, %c1_54, %c0_55] : memref<1x18x18x8xf32, #tpu.memory_space<vmem>>, vector<1x16x16x8xf32>
    %36 = vector.shape_cast %35 : vector<1x16x16x8xf32> to vector<256x8xf32>
    %37 = arith.truncf %36 : vector<256x8xf32> to vector<256x8xbf16>
    %c4 = arith.constant 4 : index
    %c0_56 = arith.constant 0 : index
    %c0_57 = arith.constant 0 : index
    %38 = vector.load %arg2[%c4, %c0_56, %c0_57] : memref<9x8x8xbf16, #tpu.memory_space<vmem>>, vector<1x8x8xbf16>
    %39 = vector.shape_cast %38 : vector<1x8x8xbf16> to vector<8x8xbf16>
    %cst_58 = arith.constant dense<0.000000e+00> : vector<256x8xf32>
    %40 = tpu.matmul %37, %39, %cst_58 {dimension_numbers = #tpu.dot_dimension_numbers<[1], [0], [0], [1], [0, 0, 1, 1], [], []>} : vector<256x8xbf16>, vector<8x8xbf16>, vector<256x8xf32> -> vector<256x8xf32>
    %41 = arith.addf %34, %40 : vector<256x8xf32>
    %c0_59 = arith.constant 0 : index
    %c1_60 = arith.constant 1 : index
    %c2_61 = arith.constant 2 : index
    %c0_62 = arith.constant 0 : index
    %42 = vector.load %arg5[%c0_59, %c1_60, %c2_61, %c0_62] : memref<1x18x18x8xf32, #tpu.memory_space<vmem>>, vector<1x16x16x8xf32>
    %43 = vector.shape_cast %42 : vector<1x16x16x8xf32> to vector<256x8xf32>
    %44 = arith.truncf %43 : vector<256x8xf32> to vector<256x8xbf16>
    %c5 = arith.constant 5 : index
    %c0_63 = arith.constant 0 : index
    %c0_64 = arith.constant 0 : index
    %45 = vector.load %arg2[%c5, %c0_63, %c0_64] : memref<9x8x8xbf16, #tpu.memory_space<vmem>>, vector<1x8x8xbf16>
    %46 = vector.shape_cast %45 : vector<1x8x8xbf16> to vector<8x8xbf16>
    %cst_65 = arith.constant dense<0.000000e+00> : vector<256x8xf32>
    %47 = tpu.matmul %44, %46, %cst_65 {dimension_numbers = #tpu.dot_dimension_numbers<[1], [0], [0], [1], [0, 0, 1, 1], [], []>} : vector<256x8xbf16>, vector<8x8xbf16>, vector<256x8xf32> -> vector<256x8xf32>
    %48 = arith.addf %41, %47 : vector<256x8xf32>
    %c0_66 = arith.constant 0 : index
    %c2_67 = arith.constant 2 : index
    %c0_68 = arith.constant 0 : index
    %c0_69 = arith.constant 0 : index
    %49 = vector.load %arg5[%c0_66, %c2_67, %c0_68, %c0_69] : memref<1x18x18x8xf32, #tpu.memory_space<vmem>>, vector<1x16x16x8xf32>
    %50 = vector.shape_cast %49 : vector<1x16x16x8xf32> to vector<256x8xf32>
    %51 = arith.truncf %50 : vector<256x8xf32> to vector<256x8xbf16>
    %c6 = arith.constant 6 : index
    %c0_70 = arith.constant 0 : index
    %c0_71 = arith.constant 0 : index
    %52 = vector.load %arg2[%c6, %c0_70, %c0_71] : memref<9x8x8xbf16, #tpu.memory_space<vmem>>, vector<1x8x8xbf16>
    %53 = vector.shape_cast %52 : vector<1x8x8xbf16> to vector<8x8xbf16>
    %cst_72 = arith.constant dense<0.000000e+00> : vector<256x8xf32>
    %54 = tpu.matmul %51, %53, %cst_72 {dimension_numbers = #tpu.dot_dimension_numbers<[1], [0], [0], [1], [0, 0, 1, 1], [], []>} : vector<256x8xbf16>, vector<8x8xbf16>, vector<256x8xf32> -> vector<256x8xf32>
    %55 = arith.addf %48, %54 : vector<256x8xf32>
    %c0_73 = arith.constant 0 : index
    %c2_74 = arith.constant 2 : index
    %c1_75 = arith.constant 1 : index
    %c0_76 = arith.constant 0 : index
    %56 = vector.load %arg5[%c0_73, %c2_74, %c1_75, %c0_76] : memref<1x18x18x8xf32, #tpu.memory_space<vmem>>, vector<1x16x16x8xf32>
    %57 = vector.shape_cast %56 : vector<1x16x16x8xf32> to vector<256x8xf32>
    %58 = arith.truncf %57 : vector<256x8xf32> to vector<256x8xbf16>
    %c7 = arith.constant 7 : index
    %c0_77 = arith.constant 0 : index
    %c0_78 = arith.constant 0 : index
    %59 = vector.load %arg2[%c7, %c0_77, %c0_78] : memref<9x8x8xbf16, #tpu.memory_space<vmem>>, vector<1x8x8xbf16>
    %60 = vector.shape_cast %59 : vector<1x8x8xbf16> to vector<8x8xbf16>
    %cst_79 = arith.constant dense<0.000000e+00> : vector<256x8xf32>
    %61 = tpu.matmul %58, %60, %cst_79 {dimension_numbers = #tpu.dot_dimension_numbers<[1], [0], [0], [1], [0, 0, 1, 1], [], []>} : vector<256x8xbf16>, vector<8x8xbf16>, vector<256x8xf32> -> vector<256x8xf32>
    %62 = arith.addf %55, %61 : vector<256x8xf32>
    %c0_80 = arith.constant 0 : index
    %c2_81 = arith.constant 2 : index
    %c2_82 = arith.constant 2 : index
    %c0_83 = arith.constant 0 : index
    %63 = vector.load %arg5[%c0_80, %c2_81, %c2_82, %c0_83] : memref<1x18x18x8xf32, #tpu.memory_space<vmem>>, vector<1x16x16x8xf32>
    %64 = vector.shape_cast %63 : vector<1x16x16x8xf32> to vector<256x8xf32>
    %65 = arith.truncf %64 : vector<256x8xf32> to vector<256x8xbf16>
    %c8 = arith.constant 8 : index
    %c0_84 = arith.constant 0 : index
    %c0_85 = arith.constant 0 : index
    %66 = vector.load %arg2[%c8, %c0_84, %c0_85] : memref<9x8x8xbf16, #tpu.memory_space<vmem>>, vector<1x8x8xbf16>
    %67 = vector.shape_cast %66 : vector<1x8x8xbf16> to vector<8x8xbf16>
    %cst_86 = arith.constant dense<0.000000e+00> : vector<256x8xf32>
    %68 = tpu.matmul %65, %67, %cst_86 {dimension_numbers = #tpu.dot_dimension_numbers<[1], [0], [0], [1], [0, 0, 1, 1], [], []>} : vector<256x8xbf16>, vector<8x8xbf16>, vector<256x8xf32> -> vector<256x8xf32>
    %69 = arith.addf %62, %68 : vector<256x8xf32>
    %cst_87 = arith.constant dense<0.000000e+00> : vector<8xf32>
    %70 = vector.multi_reduction <add>, %69, %cst_87 [0] : vector<256x8xf32> to vector<8xf32>
    %71 = vector.shape_cast %70 : vector<8xf32> to vector<1x8xf32>
    %c0_88 = arith.constant 0 : index
    %c0_89 = arith.constant 0 : index
    %c0_90 = arith.constant 0 : index
    %72 = vector.load %arg4[%c0_88, %c0_89, %c0_90] : memref<1x2x8xf32, #tpu.memory_space<vmem>>, vector<1x1x8xf32>
    %73 = vector.shape_cast %72 : vector<1x1x8xf32> to vector<1x8xf32>
    %74 = vector.shape_cast %71 : vector<1x8xf32> to vector<1x1x8xf32>
    tpu.vector_store %arg4[%c0_88, %c0_89, %c0_90], %74 {strides = array<i32>} : memref<1x2x8xf32, #tpu.memory_space<vmem>>, vector<1x1x8xf32>,
    %75 = arith.mulf %69, %69 : vector<256x8xf32>
    %cst_91 = arith.constant dense<0.000000e+00> : vector<8xf32>
    %76 = vector.multi_reduction <add>, %75, %cst_91 [0] : vector<256x8xf32> to vector<8xf32>
    %77 = vector.shape_cast %76 : vector<8xf32> to vector<1x8xf32>
    %c0_92 = arith.constant 0 : index
    %c1_93 = arith.constant 1 : index
    %c0_94 = arith.constant 0 : index
    %78 = vector.load %arg4[%c0_92, %c1_93, %c0_94] : memref<1x2x8xf32, #tpu.memory_space<vmem>>, vector<1x1x8xf32>
    %79 = vector.shape_cast %78 : vector<1x1x8xf32> to vector<1x8xf32>
    %80 = vector.shape_cast %77 : vector<1x8xf32> to vector<1x1x8xf32>
    tpu.vector_store %arg4[%c0_92, %c1_93, %c0_94], %80 {strides = array<i32>} : memref<1x2x8xf32, #tpu.memory_space<vmem>>, vector<1x1x8xf32>,
    %81 = vector.shape_cast %69 : vector<256x8xf32> to vector<1x16x16x8xf32>
    %82 = arith.truncf %81 : vector<1x16x16x8xf32> to vector<1x16x16x8xbf16>
    %c0_95 = arith.constant 0 : index
    %c0_96 = arith.constant 0 : index
    %c0_97 = arith.constant 0 : index
    %c0_98 = arith.constant 0 : index
    %83 = vector.load %arg3[%c0_95, %c0_96, %c0_97, %c0_98] : memref<1x16x16x8xbf16, #tpu.memory_space<vmem>>, vector<1x16x16x8xbf16>
    tpu.vector_store %arg3[%c0_95, %c0_96, %c0_97, %c0_98], %82 {strides = array<i32>} : memref<1x16x16x8xbf16, #tpu.memory_space<vmem>>, vector<1x16x16x8xbf16>,
    return
  }
  func.func @transform_0(%arg0: i32) -> (i32, i32, i32, i32) {
    %c0_i32 = arith.constant 0 : i32
    %c0_i32_0 = arith.constant 0 : i32
    %c0_i32_1 = arith.constant 0 : i32
    %c0_i32_2 = arith.constant 0 : i32
    return %arg0, %c0_i32, %c0_i32_0, %c0_i32_1 : i32, i32, i32, i32
  }
  func.func @transform_1(%arg0: i32) -> (i32, i32, i32) {
    %c0_i32 = arith.constant 0 : i32
    %c0_i32_0 = arith.constant 0 : i32
    %c0_i32_1 = arith.constant 0 : i32
    %c0_i32_2 = arith.constant 0 : i32
    return %c0_i32, %c0_i32_0, %c0_i32_1 : i32, i32, i32
  }
  func.func @transform_2(%arg0: i32) -> (i32, i32, i32, i32) {
    %c0_i32 = arith.constant 0 : i32
    %c0_i32_0 = arith.constant 0 : i32
    %c0_i32_1 = arith.constant 0 : i32
    %c0_i32_2 = arith.constant 0 : i32
    return %arg0, %c0_i32, %c0_i32_0, %c0_i32_1 : i32, i32, i32, i32
  }
  func.func @transform_3(%arg0: i32) -> (i32, i32, i32) {
    %c0_i32 = arith.constant 0 : i32
    %c0_i32_0 = arith.constant 0 : i32
    %c0_i32_1 = arith.constant 0 : i32
    return %arg0, %c0_i32, %c0_i32_0 : i32, i32, i32
  }
}

module attributes {stable_mosaic.version = 11 : i64} {
  func.func @_conv2_kernel(%arg0: i32, %arg1: memref<1x16x16x8xbf16, #tpu.memory_space<vmem>>, %arg2: memref<9x8x8xbf16, #tpu.memory_space<vmem>>, %arg3: memref<1x8xf32, #tpu.memory_space<vmem>>, %arg4: memref<1x8xf32, #tpu.memory_space<vmem>>, %arg5: memref<1x16x16x8xbf16, #tpu.memory_space<vmem>>, %arg6: memref<1x2x8xf32, #tpu.memory_space<vmem>>, %arg7: memref<1x18x18x8xf32, #tpu.memory_space<vmem>>) attributes {dimension_semantics = [#tpu.dimension_semantics<parallel>], iteration_bounds = array<i64: 2>, scalar_prefetch = 0 : i64, scratch_operands = 1 : i64, tpu.core_type = #tpu.core_type<tc>, window_params = [{transform_indices = @transform_0, window_bounds = array<i64: 1, 16, 16, 8>}, {pipeline_mode = #tpu.pipeline_mode<synchronous>, transform_indices = @transform_1, window_bounds = array<i64: 9, 8, 8>}, {pipeline_mode = #tpu.pipeline_mode<synchronous>, transform_indices = @transform_2, window_bounds = array<i64: 1, 8>}, {pipeline_mode = #tpu.pipeline_mode<synchronous>, transform_indices = @transform_3, window_bounds = array<i64: 1, 8>}, {transform_indices = @transform_4, window_bounds = array<i64: 1, 16, 16, 8>}, {transform_indices = @transform_5, window_bounds = array<i64: 1, 2, 8>}]} {
    %cst = arith.constant 0.000000e+00 : f32
    %0 = vector.broadcast %cst : f32 to vector<1x1x18x8xf32>
    %c0 = arith.constant 0 : index
    %c0_0 = arith.constant 0 : index
    %c0_1 = arith.constant 0 : index
    %c0_2 = arith.constant 0 : index
    %1 = vector.load %arg7[%c0, %c0_0, %c0_1, %c0_2] : memref<1x18x18x8xf32, #tpu.memory_space<vmem>>, vector<1x1x18x8xf32>
    tpu.vector_store %arg7[%c0, %c0_0, %c0_1, %c0_2], %0 {strides = array<i32>} : memref<1x18x18x8xf32, #tpu.memory_space<vmem>>, vector<1x1x18x8xf32>,
    %c0_3 = arith.constant 0 : index
    %c17 = arith.constant 17 : index
    %c0_4 = arith.constant 0 : index
    %c0_5 = arith.constant 0 : index
    %2 = vector.load %arg7[%c0_3, %c17, %c0_4, %c0_5] : memref<1x18x18x8xf32, #tpu.memory_space<vmem>>, vector<1x1x18x8xf32>
    tpu.vector_store %arg7[%c0_3, %c17, %c0_4, %c0_5], %0 {strides = array<i32>} : memref<1x18x18x8xf32, #tpu.memory_space<vmem>>, vector<1x1x18x8xf32>,
    %cst_6 = arith.constant 0.000000e+00 : f32
    %3 = vector.broadcast %cst_6 : f32 to vector<1x16x1x8xf32>
    %c0_7 = arith.constant 0 : index
    %c1 = arith.constant 1 : index
    %c0_8 = arith.constant 0 : index
    %c0_9 = arith.constant 0 : index
    %4 = vector.load %arg7[%c0_7, %c1, %c0_8, %c0_9] : memref<1x18x18x8xf32, #tpu.memory_space<vmem>>, vector<1x16x1x8xf32>
    tpu.vector_store %arg7[%c0_7, %c1, %c0_8, %c0_9], %3 {strides = array<i32>} : memref<1x18x18x8xf32, #tpu.memory_space<vmem>>, vector<1x16x1x8xf32>,
    %c0_10 = arith.constant 0 : index
    %c1_11 = arith.constant 1 : index
    %c17_12 = arith.constant 17 : index
    %c0_13 = arith.constant 0 : index
    %5 = vector.load %arg7[%c0_10, %c1_11, %c17_12, %c0_13] : memref<1x18x18x8xf32, #tpu.memory_space<vmem>>, vector<1x16x1x8xf32>
    tpu.vector_store %arg7[%c0_10, %c1_11, %c17_12, %c0_13], %3 {strides = array<i32>} : memref<1x18x18x8xf32, #tpu.memory_space<vmem>>, vector<1x16x1x8xf32>,
    %c0_14 = arith.constant 0 : index
    %c0_15 = arith.constant 0 : index
    %c0_16 = arith.constant 0 : index
    %c0_17 = arith.constant 0 : index
    %6 = vector.load %arg1[%c0_14, %c0_15, %c0_16, %c0_17] : memref<1x16x16x8xbf16, #tpu.memory_space<vmem>>, vector<1x16x16x8xbf16>
    %7 = arith.extf %6 : vector<1x16x16x8xbf16> to vector<1x16x16x8xf32>
    %c0_18 = arith.constant 0 : index
    %c0_19 = arith.constant 0 : index
    %8 = vector.load %arg3[%c0_18, %c0_19] : memref<1x8xf32, #tpu.memory_space<vmem>>, vector<1x8xf32>
    %9 = vector.shape_cast %8 : vector<1x8xf32> to vector<1x1x1x8xf32>
    %10 = vector.broadcast %9 : vector<1x1x1x8xf32> to vector<1x16x16x8xf32>
    %11 = arith.mulf %7, %10 : vector<1x16x16x8xf32>
    %c0_20 = arith.constant 0 : index
    %c0_21 = arith.constant 0 : index
    %12 = vector.load %arg4[%c0_20, %c0_21] : memref<1x8xf32, #tpu.memory_space<vmem>>, vector<1x8xf32>
    %13 = vector.shape_cast %12 : vector<1x8xf32> to vector<1x1x1x8xf32>
    %14 = vector.broadcast %13 : vector<1x1x1x8xf32> to vector<1x16x16x8xf32>
    %15 = arith.addf %11, %14 : vector<1x16x16x8xf32>
    %cst_22 = arith.constant 0.000000e+00 : f32
    %16 = vector.broadcast %cst_22 : f32 to vector<1x16x16x8xf32>
    %17 = arith.maximumf %15, %16 : vector<1x16x16x8xf32>
    %c0_23 = arith.constant 0 : index
    %c1_24 = arith.constant 1 : index
    %c1_25 = arith.constant 1 : index
    %c0_26 = arith.constant 0 : index
    %18 = vector.load %arg7[%c0_23, %c1_24, %c1_25, %c0_26] : memref<1x18x18x8xf32, #tpu.memory_space<vmem>>, vector<1x16x16x8xf32>
    tpu.vector_store %arg7[%c0_23, %c1_24, %c1_25, %c0_26], %17 {strides = array<i32>} : memref<1x18x18x8xf32, #tpu.memory_space<vmem>>, vector<1x16x16x8xf32>,
    %c0_27 = arith.constant 0 : index
    %c0_28 = arith.constant 0 : index
    %c0_29 = arith.constant 0 : index
    %c0_30 = arith.constant 0 : index
    %19 = vector.load %arg7[%c0_27, %c0_28, %c0_29, %c0_30] : memref<1x18x18x8xf32, #tpu.memory_space<vmem>>, vector<1x16x16x8xf32>
    %20 = vector.shape_cast %19 : vector<1x16x16x8xf32> to vector<256x8xf32>
    %21 = arith.truncf %20 : vector<256x8xf32> to vector<256x8xbf16>
    %c0_31 = arith.constant 0 : index
    %c0_32 = arith.constant 0 : index
    %c0_33 = arith.constant 0 : index
    %22 = vector.load %arg2[%c0_31, %c0_32, %c0_33] : memref<9x8x8xbf16, #tpu.memory_space<vmem>>, vector<1x8x8xbf16>
    %23 = vector.shape_cast %22 : vector<1x8x8xbf16> to vector<8x8xbf16>
    %cst_34 = arith.constant dense<0.000000e+00> : vector<256x8xf32>
    %24 = tpu.matmul %21, %23, %cst_34 {dimension_numbers = #tpu.dot_dimension_numbers<[1], [0], [0], [1], [0, 0, 1, 1], [], []>} : vector<256x8xbf16>, vector<8x8xbf16>, vector<256x8xf32> -> vector<256x8xf32>
    %c0_35 = arith.constant 0 : index
    %c0_36 = arith.constant 0 : index
    %c1_37 = arith.constant 1 : index
    %c0_38 = arith.constant 0 : index
    %25 = vector.load %arg7[%c0_35, %c0_36, %c1_37, %c0_38] : memref<1x18x18x8xf32, #tpu.memory_space<vmem>>, vector<1x16x16x8xf32>
    %26 = vector.shape_cast %25 : vector<1x16x16x8xf32> to vector<256x8xf32>
    %27 = arith.truncf %26 : vector<256x8xf32> to vector<256x8xbf16>
    %c1_39 = arith.constant 1 : index
    %c0_40 = arith.constant 0 : index
    %c0_41 = arith.constant 0 : index
    %28 = vector.load %arg2[%c1_39, %c0_40, %c0_41] : memref<9x8x8xbf16, #tpu.memory_space<vmem>>, vector<1x8x8xbf16>
    %29 = vector.shape_cast %28 : vector<1x8x8xbf16> to vector<8x8xbf16>
    %cst_42 = arith.constant dense<0.000000e+00> : vector<256x8xf32>
    %30 = tpu.matmul %27, %29, %cst_42 {dimension_numbers = #tpu.dot_dimension_numbers<[1], [0], [0], [1], [0, 0, 1, 1], [], []>} : vector<256x8xbf16>, vector<8x8xbf16>, vector<256x8xf32> -> vector<256x8xf32>
    %31 = arith.addf %24, %30 : vector<256x8xf32>
    %c0_43 = arith.constant 0 : index
    %c0_44 = arith.constant 0 : index
    %c2 = arith.constant 2 : index
    %c0_45 = arith.constant 0 : index
    %32 = vector.load %arg7[%c0_43, %c0_44, %c2, %c0_45] : memref<1x18x18x8xf32, #tpu.memory_space<vmem>>, vector<1x16x16x8xf32>
    %33 = vector.shape_cast %32 : vector<1x16x16x8xf32> to vector<256x8xf32>
    %34 = arith.truncf %33 : vector<256x8xf32> to vector<256x8xbf16>
    %c2_46 = arith.constant 2 : index
    %c0_47 = arith.constant 0 : index
    %c0_48 = arith.constant 0 : index
    %35 = vector.load %arg2[%c2_46, %c0_47, %c0_48] : memref<9x8x8xbf16, #tpu.memory_space<vmem>>, vector<1x8x8xbf16>
    %36 = vector.shape_cast %35 : vector<1x8x8xbf16> to vector<8x8xbf16>
    %cst_49 = arith.constant dense<0.000000e+00> : vector<256x8xf32>
    %37 = tpu.matmul %34, %36, %cst_49 {dimension_numbers = #tpu.dot_dimension_numbers<[1], [0], [0], [1], [0, 0, 1, 1], [], []>} : vector<256x8xbf16>, vector<8x8xbf16>, vector<256x8xf32> -> vector<256x8xf32>
    %38 = arith.addf %31, %37 : vector<256x8xf32>
    %c0_50 = arith.constant 0 : index
    %c1_51 = arith.constant 1 : index
    %c0_52 = arith.constant 0 : index
    %c0_53 = arith.constant 0 : index
    %39 = vector.load %arg7[%c0_50, %c1_51, %c0_52, %c0_53] : memref<1x18x18x8xf32, #tpu.memory_space<vmem>>, vector<1x16x16x8xf32>
    %40 = vector.shape_cast %39 : vector<1x16x16x8xf32> to vector<256x8xf32>
    %41 = arith.truncf %40 : vector<256x8xf32> to vector<256x8xbf16>
    %c3 = arith.constant 3 : index
    %c0_54 = arith.constant 0 : index
    %c0_55 = arith.constant 0 : index
    %42 = vector.load %arg2[%c3, %c0_54, %c0_55] : memref<9x8x8xbf16, #tpu.memory_space<vmem>>, vector<1x8x8xbf16>
    %43 = vector.shape_cast %42 : vector<1x8x8xbf16> to vector<8x8xbf16>
    %cst_56 = arith.constant dense<0.000000e+00> : vector<256x8xf32>
    %44 = tpu.matmul %41, %43, %cst_56 {dimension_numbers = #tpu.dot_dimension_numbers<[1], [0], [0], [1], [0, 0, 1, 1], [], []>} : vector<256x8xbf16>, vector<8x8xbf16>, vector<256x8xf32> -> vector<256x8xf32>
    %45 = arith.addf %38, %44 : vector<256x8xf32>
    %c0_57 = arith.constant 0 : index
    %c1_58 = arith.constant 1 : index
    %c1_59 = arith.constant 1 : index
    %c0_60 = arith.constant 0 : index
    %46 = vector.load %arg7[%c0_57, %c1_58, %c1_59, %c0_60] : memref<1x18x18x8xf32, #tpu.memory_space<vmem>>, vector<1x16x16x8xf32>
    %47 = vector.shape_cast %46 : vector<1x16x16x8xf32> to vector<256x8xf32>
    %48 = arith.truncf %47 : vector<256x8xf32> to vector<256x8xbf16>
    %c4 = arith.constant 4 : index
    %c0_61 = arith.constant 0 : index
    %c0_62 = arith.constant 0 : index
    %49 = vector.load %arg2[%c4, %c0_61, %c0_62] : memref<9x8x8xbf16, #tpu.memory_space<vmem>>, vector<1x8x8xbf16>
    %50 = vector.shape_cast %49 : vector<1x8x8xbf16> to vector<8x8xbf16>
    %cst_63 = arith.constant dense<0.000000e+00> : vector<256x8xf32>
    %51 = tpu.matmul %48, %50, %cst_63 {dimension_numbers = #tpu.dot_dimension_numbers<[1], [0], [0], [1], [0, 0, 1, 1], [], []>} : vector<256x8xbf16>, vector<8x8xbf16>, vector<256x8xf32> -> vector<256x8xf32>
    %52 = arith.addf %45, %51 : vector<256x8xf32>
    %c0_64 = arith.constant 0 : index
    %c1_65 = arith.constant 1 : index
    %c2_66 = arith.constant 2 : index
    %c0_67 = arith.constant 0 : index
    %53 = vector.load %arg7[%c0_64, %c1_65, %c2_66, %c0_67] : memref<1x18x18x8xf32, #tpu.memory_space<vmem>>, vector<1x16x16x8xf32>
    %54 = vector.shape_cast %53 : vector<1x16x16x8xf32> to vector<256x8xf32>
    %55 = arith.truncf %54 : vector<256x8xf32> to vector<256x8xbf16>
    %c5 = arith.constant 5 : index
    %c0_68 = arith.constant 0 : index
    %c0_69 = arith.constant 0 : index
    %56 = vector.load %arg2[%c5, %c0_68, %c0_69] : memref<9x8x8xbf16, #tpu.memory_space<vmem>>, vector<1x8x8xbf16>
    %57 = vector.shape_cast %56 : vector<1x8x8xbf16> to vector<8x8xbf16>
    %cst_70 = arith.constant dense<0.000000e+00> : vector<256x8xf32>
    %58 = tpu.matmul %55, %57, %cst_70 {dimension_numbers = #tpu.dot_dimension_numbers<[1], [0], [0], [1], [0, 0, 1, 1], [], []>} : vector<256x8xbf16>, vector<8x8xbf16>, vector<256x8xf32> -> vector<256x8xf32>
    %59 = arith.addf %52, %58 : vector<256x8xf32>
    %c0_71 = arith.constant 0 : index
    %c2_72 = arith.constant 2 : index
    %c0_73 = arith.constant 0 : index
    %c0_74 = arith.constant 0 : index
    %60 = vector.load %arg7[%c0_71, %c2_72, %c0_73, %c0_74] : memref<1x18x18x8xf32, #tpu.memory_space<vmem>>, vector<1x16x16x8xf32>
    %61 = vector.shape_cast %60 : vector<1x16x16x8xf32> to vector<256x8xf32>
    %62 = arith.truncf %61 : vector<256x8xf32> to vector<256x8xbf16>
    %c6 = arith.constant 6 : index
    %c0_75 = arith.constant 0 : index
    %c0_76 = arith.constant 0 : index
    %63 = vector.load %arg2[%c6, %c0_75, %c0_76] : memref<9x8x8xbf16, #tpu.memory_space<vmem>>, vector<1x8x8xbf16>
    %64 = vector.shape_cast %63 : vector<1x8x8xbf16> to vector<8x8xbf16>
    %cst_77 = arith.constant dense<0.000000e+00> : vector<256x8xf32>
    %65 = tpu.matmul %62, %64, %cst_77 {dimension_numbers = #tpu.dot_dimension_numbers<[1], [0], [0], [1], [0, 0, 1, 1], [], []>} : vector<256x8xbf16>, vector<8x8xbf16>, vector<256x8xf32> -> vector<256x8xf32>
    %66 = arith.addf %59, %65 : vector<256x8xf32>
    %c0_78 = arith.constant 0 : index
    %c2_79 = arith.constant 2 : index
    %c1_80 = arith.constant 1 : index
    %c0_81 = arith.constant 0 : index
    %67 = vector.load %arg7[%c0_78, %c2_79, %c1_80, %c0_81] : memref<1x18x18x8xf32, #tpu.memory_space<vmem>>, vector<1x16x16x8xf32>
    %68 = vector.shape_cast %67 : vector<1x16x16x8xf32> to vector<256x8xf32>
    %69 = arith.truncf %68 : vector<256x8xf32> to vector<256x8xbf16>
    %c7 = arith.constant 7 : index
    %c0_82 = arith.constant 0 : index
    %c0_83 = arith.constant 0 : index
    %70 = vector.load %arg2[%c7, %c0_82, %c0_83] : memref<9x8x8xbf16, #tpu.memory_space<vmem>>, vector<1x8x8xbf16>
    %71 = vector.shape_cast %70 : vector<1x8x8xbf16> to vector<8x8xbf16>
    %cst_84 = arith.constant dense<0.000000e+00> : vector<256x8xf32>
    %72 = tpu.matmul %69, %71, %cst_84 {dimension_numbers = #tpu.dot_dimension_numbers<[1], [0], [0], [1], [0, 0, 1, 1], [], []>} : vector<256x8xbf16>, vector<8x8xbf16>, vector<256x8xf32> -> vector<256x8xf32>
    %73 = arith.addf %66, %72 : vector<256x8xf32>
    %c0_85 = arith.constant 0 : index
    %c2_86 = arith.constant 2 : index
    %c2_87 = arith.constant 2 : index
    %c0_88 = arith.constant 0 : index
    %74 = vector.load %arg7[%c0_85, %c2_86, %c2_87, %c0_88] : memref<1x18x18x8xf32, #tpu.memory_space<vmem>>, vector<1x16x16x8xf32>
    %75 = vector.shape_cast %74 : vector<1x16x16x8xf32> to vector<256x8xf32>
    %76 = arith.truncf %75 : vector<256x8xf32> to vector<256x8xbf16>
    %c8 = arith.constant 8 : index
    %c0_89 = arith.constant 0 : index
    %c0_90 = arith.constant 0 : index
    %77 = vector.load %arg2[%c8, %c0_89, %c0_90] : memref<9x8x8xbf16, #tpu.memory_space<vmem>>, vector<1x8x8xbf16>
    %78 = vector.shape_cast %77 : vector<1x8x8xbf16> to vector<8x8xbf16>
    %cst_91 = arith.constant dense<0.000000e+00> : vector<256x8xf32>
    %79 = tpu.matmul %76, %78, %cst_91 {dimension_numbers = #tpu.dot_dimension_numbers<[1], [0], [0], [1], [0, 0, 1, 1], [], []>} : vector<256x8xbf16>, vector<8x8xbf16>, vector<256x8xf32> -> vector<256x8xf32>
    %80 = arith.addf %73, %79 : vector<256x8xf32>
    %cst_92 = arith.constant dense<0.000000e+00> : vector<8xf32>
    %81 = vector.multi_reduction <add>, %80, %cst_92 [0] : vector<256x8xf32> to vector<8xf32>
    %82 = vector.shape_cast %81 : vector<8xf32> to vector<1x8xf32>
    %c0_93 = arith.constant 0 : index
    %c0_94 = arith.constant 0 : index
    %c0_95 = arith.constant 0 : index
    %83 = vector.load %arg6[%c0_93, %c0_94, %c0_95] : memref<1x2x8xf32, #tpu.memory_space<vmem>>, vector<1x1x8xf32>
    %84 = vector.shape_cast %83 : vector<1x1x8xf32> to vector<1x8xf32>
    %85 = vector.shape_cast %82 : vector<1x8xf32> to vector<1x1x8xf32>
    tpu.vector_store %arg6[%c0_93, %c0_94, %c0_95], %85 {strides = array<i32>} : memref<1x2x8xf32, #tpu.memory_space<vmem>>, vector<1x1x8xf32>,
    %86 = arith.mulf %80, %80 : vector<256x8xf32>
    %cst_96 = arith.constant dense<0.000000e+00> : vector<8xf32>
    %87 = vector.multi_reduction <add>, %86, %cst_96 [0] : vector<256x8xf32> to vector<8xf32>
    %88 = vector.shape_cast %87 : vector<8xf32> to vector<1x8xf32>
    %c0_97 = arith.constant 0 : index
    %c1_98 = arith.constant 1 : index
    %c0_99 = arith.constant 0 : index
    %89 = vector.load %arg6[%c0_97, %c1_98, %c0_99] : memref<1x2x8xf32, #tpu.memory_space<vmem>>, vector<1x1x8xf32>
    %90 = vector.shape_cast %89 : vector<1x1x8xf32> to vector<1x8xf32>
    %91 = vector.shape_cast %88 : vector<1x8xf32> to vector<1x1x8xf32>
    tpu.vector_store %arg6[%c0_97, %c1_98, %c0_99], %91 {strides = array<i32>} : memref<1x2x8xf32, #tpu.memory_space<vmem>>, vector<1x1x8xf32>,
    %92 = vector.shape_cast %80 : vector<256x8xf32> to vector<1x16x16x8xf32>
    %93 = arith.truncf %92 : vector<1x16x16x8xf32> to vector<1x16x16x8xbf16>
    %c0_100 = arith.constant 0 : index
    %c0_101 = arith.constant 0 : index
    %c0_102 = arith.constant 0 : index
    %c0_103 = arith.constant 0 : index
    %94 = vector.load %arg5[%c0_100, %c0_101, %c0_102, %c0_103] : memref<1x16x16x8xbf16, #tpu.memory_space<vmem>>, vector<1x16x16x8xbf16>
    tpu.vector_store %arg5[%c0_100, %c0_101, %c0_102, %c0_103], %93 {strides = array<i32>} : memref<1x16x16x8xbf16, #tpu.memory_space<vmem>>, vector<1x16x16x8xbf16>,
    return
  }
  func.func @transform_0(%arg0: i32) -> (i32, i32, i32, i32) {
    %c0_i32 = arith.constant 0 : i32
    %c0_i32_0 = arith.constant 0 : i32
    %c0_i32_1 = arith.constant 0 : i32
    %c0_i32_2 = arith.constant 0 : i32
    return %arg0, %c0_i32, %c0_i32_0, %c0_i32_1 : i32, i32, i32, i32
  }
  func.func @transform_1(%arg0: i32) -> (i32, i32, i32) {
    %c0_i32 = arith.constant 0 : i32
    %c0_i32_0 = arith.constant 0 : i32
    %c0_i32_1 = arith.constant 0 : i32
    %c0_i32_2 = arith.constant 0 : i32
    return %c0_i32, %c0_i32_0, %c0_i32_1 : i32, i32, i32
  }
  func.func @transform_2(%arg0: i32) -> (i32, i32) {
    %c0_i32 = arith.constant 0 : i32
    %c0_i32_0 = arith.constant 0 : i32
    %c0_i32_1 = arith.constant 0 : i32
    return %c0_i32, %c0_i32_0 : i32, i32
  }
  func.func @transform_3(%arg0: i32) -> (i32, i32) {
    %c0_i32 = arith.constant 0 : i32
    %c0_i32_0 = arith.constant 0 : i32
    %c0_i32_1 = arith.constant 0 : i32
    return %c0_i32, %c0_i32_0 : i32, i32
  }
  func.func @transform_4(%arg0: i32) -> (i32, i32, i32, i32) {
    %c0_i32 = arith.constant 0 : i32
    %c0_i32_0 = arith.constant 0 : i32
    %c0_i32_1 = arith.constant 0 : i32
    %c0_i32_2 = arith.constant 0 : i32
    return %arg0, %c0_i32, %c0_i32_0, %c0_i32_1 : i32, i32, i32, i32
  }
  func.func @transform_5(%arg0: i32) -> (i32, i32, i32) {
    %c0_i32 = arith.constant 0 : i32
    %c0_i32_0 = arith.constant 0 : i32
    %c0_i32_1 = arith.constant 0 : i32
    return %arg0, %c0_i32, %c0_i32_0 : i32, i32, i32
  }
}

module attributes {stable_mosaic.version = 11 : i64} {
  func.func @_bn_residual_relu_kernel(%arg0: i32, %arg1: memref<32x128xbf16, #tpu.memory_space<vmem>>, %arg2: memref<32x128xf32, #tpu.memory_space<vmem>>, %arg3: memref<1x8xf32, #tpu.memory_space<vmem>>, %arg4: memref<1x8xf32, #tpu.memory_space<vmem>>, %arg5: memref<32x128xf32, #tpu.memory_space<vmem>>) attributes {dimension_semantics = [#tpu.dimension_semantics<parallel>], iteration_bounds = array<i64: 1>, scalar_prefetch = 0 : i64, scratch_operands = 0 : i64, tpu.core_type = #tpu.core_type<tc>, window_params = [{transform_indices = @transform_0, window_bounds = array<i64: 32, 128>}, {transform_indices = @transform_1, window_bounds = array<i64: 32, 128>}, {pipeline_mode = #tpu.pipeline_mode<synchronous>, transform_indices = @transform_2, window_bounds = array<i64: 1, 8>}, {pipeline_mode = #tpu.pipeline_mode<synchronous>, transform_indices = @transform_3, window_bounds = array<i64: 1, 8>}, {transform_indices = @transform_4, window_bounds = array<i64: 32, 128>}]} {
    %c0 = arith.constant 0 : index
    %c0_0 = arith.constant 0 : index
    %0 = vector.load %arg3[%c0, %c0_0] : memref<1x8xf32, #tpu.memory_space<vmem>>, vector<1x8xf32>
    %1 = tpu.concatenate %0, %0, %0, %0, %0, %0, %0, %0, %0, %0, %0, %0, %0, %0, %0, %0 in 1 : vector<1x8xf32>, vector<1x8xf32>, vector<1x8xf32>, vector<1x8xf32>, vector<1x8xf32>, vector<1x8xf32>, vector<1x8xf32>, vector<1x8xf32>, vector<1x8xf32>, vector<1x8xf32>, vector<1x8xf32>, vector<1x8xf32>, vector<1x8xf32>, vector<1x8xf32>, vector<1x8xf32>, vector<1x8xf32> -> vector<1x128xf32>
    %c0_1 = arith.constant 0 : index
    %c0_2 = arith.constant 0 : index
    %2 = vector.load %arg4[%c0_1, %c0_2] : memref<1x8xf32, #tpu.memory_space<vmem>>, vector<1x8xf32>
    %3 = tpu.concatenate %2, %2, %2, %2, %2, %2, %2, %2, %2, %2, %2, %2, %2, %2, %2, %2 in 1 : vector<1x8xf32>, vector<1x8xf32>, vector<1x8xf32>, vector<1x8xf32>, vector<1x8xf32>, vector<1x8xf32>, vector<1x8xf32>, vector<1x8xf32>, vector<1x8xf32>, vector<1x8xf32>, vector<1x8xf32>, vector<1x8xf32>, vector<1x8xf32>, vector<1x8xf32>, vector<1x8xf32>, vector<1x8xf32> -> vector<1x128xf32>
    %c0_3 = arith.constant 0 : index
    %c0_4 = arith.constant 0 : index
    %4 = vector.load %arg1[%c0_3, %c0_4] : memref<32x128xbf16, #tpu.memory_space<vmem>>, vector<32x128xbf16>
    %5 = arith.extf %4 : vector<32x128xbf16> to vector<32x128xf32>
    %6 = vector.broadcast %1 : vector<1x128xf32> to vector<32x128xf32>
    %7 = arith.mulf %5, %6 : vector<32x128xf32>
    %8 = vector.broadcast %3 : vector<1x128xf32> to vector<32x128xf32>
    %9 = arith.addf %7, %8 : vector<32x128xf32>
    %c0_5 = arith.constant 0 : index
    %c0_6 = arith.constant 0 : index
    %10 = vector.load %arg2[%c0_5, %c0_6] : memref<32x128xf32, #tpu.memory_space<vmem>>, vector<32x128xf32>
    %11 = arith.addf %9, %10 : vector<32x128xf32>
    %cst = arith.constant 0.000000e+00 : f32
    %12 = vector.broadcast %cst : f32 to vector<32x128xf32>
    %13 = arith.maximumf %11, %12 : vector<32x128xf32>
    %c0_7 = arith.constant 0 : index
    %c0_8 = arith.constant 0 : index
    %14 = vector.load %arg5[%c0_7, %c0_8] : memref<32x128xf32, #tpu.memory_space<vmem>>, vector<32x128xf32>
    tpu.vector_store %arg5[%c0_7, %c0_8], %13 {strides = array<i32>} : memref<32x128xf32, #tpu.memory_space<vmem>>, vector<32x128xf32>,
    return
  }
  func.func @transform_0(%arg0: i32) -> (i32, i32) {
    %c0_i32 = arith.constant 0 : i32
    %c0_i32_0 = arith.constant 0 : i32
    return %arg0, %c0_i32 : i32, i32
  }
  func.func @transform_1(%arg0: i32) -> (i32, i32) {
    %c0_i32 = arith.constant 0 : i32
    %c0_i32_0 = arith.constant 0 : i32
    return %arg0, %c0_i32 : i32, i32
  }
  func.func @transform_2(%arg0: i32) -> (i32, i32) {
    %c0_i32 = arith.constant 0 : i32
    %c0_i32_0 = arith.constant 0 : i32
    %c0_i32_1 = arith.constant 0 : i32
    return %c0_i32, %c0_i32_0 : i32, i32
  }
  func.func @transform_3(%arg0: i32) -> (i32, i32) {
    %c0_i32 = arith.constant 0 : i32
    %c0_i32_0 = arith.constant 0 : i32
    %c0_i32_1 = arith.constant 0 : i32
    return %c0_i32, %c0_i32_0 : i32, i32
  }
  func.func @transform_4(%arg0: i32) -> (i32, i32) {
    %c0_i32 = arith.constant 0 : i32
    %c0_i32_0 = arith.constant 0 : i32
    return %arg0, %c0_i32 : i32, i32
  }
}

</mosaic_0001>

<bundles_post_ra>
// kernel: basic_block.5
= control target key start
LH: loop header
LB: loop body
LE: loop exit
PB: predicated region body
PF: predicated region fallthrough
CT: control target
= control target key end

     0   :  { %v19_v0 = vlaneseq  ;;  %s232_s19 = smov 24   ;;  %s233_s20 = smov 8   ;;  %vm68_vm0 = vcmask 64512   ;;  %vm70_vm1 = vcmask 130048   ;;  %vm72_vm2 = vcmask 195584   ;;  %s352_s2 = inlined_call_operand.vmem [shape: f32[1,8], index: 2, kind: input, shape index: {}]   ;;  %s353_s3 = inlined_call_operand.vmem [shape: f32[1,8], index: 3, kind: input, shape index: {}]   ;;  %s354_s0 = inlined_call_operand.vmem [shape: bf16[32,128], index: 0, kind: input, shape index: {}]   ;;  %s355_s1 = inlined_call_operand.vmem [shape: f32[32,128], index: 1, kind: input, shape index: {}]   ;;  %s356_s4 = inlined_call_operand.vmem [shape: f32[32,128], index: 4, kind: output, shape index: {}]  }
   0x1   :  { %v275_v2 = vld [vmem:[%s352_s2] sm:$0x1]  ;;  %s234_s2 = smov 16   ;;  %s235_s21 = smov 32   ;;  %vm74_vm3 = vcmask 261120   ;;  %vm76_vm4 = vcmask 326656  }
   0x2   :  { %v20_v1 = vshrl.u32 %v19_v0, 7  ;;  %v282_v4 = vld [vmem:[%s353_s3] sm:$0x1]  ;;  %s236_s22 = smov 40   ;;  %s237_s3 = smov 48   ;;  %vm78_vm5 = vcmask 392192  }
   0x3   :  { %s238_s23 = smov 56   ;;  %s239_s24 = smov 64   ;;  %vm80_vm6 = vcmask 457728   ;;  %vm82_vm7 = vcmask 523264   ;;  %vm84_vm8 = vcmask 588800   ;;  %vm86_vm9 = vcmask 654336  }
   0x4   :  { %v277_v3 = vsub.s32 0, %v20_v1  ;;  %s240_s25 = smov 72   ;;  %s241_s26 = smov 80   ;;  %vm88_vm10 = vcmask 719872   ;;  %vm90_vm11 = vcmask 785408   ;;  %vm92_vm12 = vcmask 850944  }
   0x5   :  { %s242_s27 = smov 88   ;;  %s243_s28 = smov 96   ;;  %vm94_vm13 = vcmask 916480   ;;  %vm96_vm14 = vcmask 982016   ;;  %v209_v54 = vld [vmem:[%s354_s0] sm:$0xff]   ;;  %v216_v59 = vld [vmem:[%s354_s0 + $0x8] sm:$0xff]  }
   0x6   :  { %v22_v5 = vrot.slane %v275_v2, %v277_v3  ;;  %v103_v6 = vrot.slane %v282_v4, %v277_v3  ;;  %s244_s29 = smov 104   ;;  %s245_s30 = smov 112   ;;  %v210_v63 = vunpack.c.l.bf16 %v209_v54 }
   0x7   :  { %s246_s5 = smov 120  }
   0x8   :  { %29 = vrot.lane.b32.xlu1 %v22_v5, %s232_s19  ;;  %23 = vrot.lane.b32.xlu0 %v22_v5, %s233_s20 }
   0xc   :  { %104 = vrot.lane.b32.xlu1 %v103_v6, %s233_s20  ;;  %26 = vrot.lane.b32.xlu0 %v22_v5, %s234_s2 }
  0x10   :  { %107 = vrot.lane.b32.xlu1 %v103_v6, %s234_s2  ;;  %32 = vrot.lane.b32.xlu0 %v22_v5, %s235_s21 }
  0x14   :  { %110 = vrot.lane.b32.xlu1 %v103_v6, %s232_s19  ;;  %35 = vrot.lane.b32.xlu0 %v22_v5, %s236_s22 }
  0x18   :  { %113 = vrot.lane.b32.xlu1 %v103_v6, %s235_s21  ;;  %38 = vrot.lane.b32.xlu0 %v22_v5, %s237_s3 }
  0x1c   :  { %116 = vrot.lane.b32.xlu1 %v103_v6, %s236_s22  ;;  %41 = vrot.lane.b32.xlu0 %v22_v5, %s238_s23 }
  0x20   :  { %119 = vrot.lane.b32.xlu1 %v103_v6, %s237_s3  ;;  %44 = vrot.lane.b32.xlu0 %v22_v5, %s239_s24 }
  0x24   :  { %122 = vrot.lane.b32.xlu1 %v103_v6, %s238_s23  ;;  %47 = vrot.lane.b32.xlu0 %v22_v5, %s240_s25 }
  0x28   :  { %125 = vrot.lane.b32.xlu1 %v103_v6, %s239_s24  ;;  %50 = vrot.lane.b32.xlu0 %v22_v5, %s241_s26 }
  0x2c   :  { %128 = vrot.lane.b32.xlu1 %v103_v6, %s240_s25  ;;  %53 = vrot.lane.b32.xlu0 %v22_v5, %s242_s27 }
  0x30   :  { %131 = vrot.lane.b32.xlu1 %v103_v6, %s241_s26  ;;  %56 = vrot.lane.b32.xlu0 %v22_v5, %s243_s28 }
  0x34   :  { %134 = vrot.lane.b32.xlu1 %v103_v6, %s242_s27  ;;  %59 = vrot.lane.b32.xlu0 %v22_v5, %s244_s29 }
  0x38   :  { %137 = vrot.lane.b32.xlu1 %v103_v6, %s243_s28  ;;  %62 = vrot.lane.b32.xlu0 %v22_v5, %s245_s30 }
  0x3c   :  { %140 = vrot.lane.b32.xlu1 %v103_v6, %s244_s29  ;;  %65 = vrot.lane.b32.xlu0 %v22_v5, %s246_s5  ;;  %v215_v5 = vunpack.c.h.bf16 %v216_v59 }
  0x40   :  { %143 = vrot.lane.b32.xlu0 %v103_v6, %s245_s30  ;;  %146 = vrot.lane.b32.xlu1 %v103_v6, %s246_s5 }
  0x7a   :  { %v30_v7 = vpop.permute.xlu1 %29  ;;  %v24_v8 = vpop.permute.xlu0 %23 }
  0x7b   :  { %v69_v27 = vsel %vm68_vm0, %v275_v2, %v24_v8  ;;  %v211_v2 = vunpack.c.h.bf16 %v209_v54 }
  0x7e   :  { %v105_v9 = vpop.permute.xlu1 %104  ;;  %v27_v10 = vpop.permute.xlu0 %26 }
  0x7f   :  { %v71_v28 = vsel %vm70_vm1, %v69_v27, %v27_v10  ;;  %v149_v34 = vsel %vm68_vm0, %v282_v4, %v105_v9  ;;  %v214_v4 = vunpack.c.l.bf16 %v216_v59 }
  0x80   :  { %v73_v31 = vsel %vm72_vm2, %v71_v28, %v30_v7 }
  0x82   :  { %v108_v11 = vpop.permute.xlu1 %107  ;;  %v33_v12 = vpop.permute.xlu0 %32 }
  0x83   :  { %v75_v32 = vsel %vm74_vm3, %v73_v31, %v33_v12  ;;  %v150_v38 = vsel %vm70_vm1, %v149_v34, %v108_v11 }
  0x86   :  { %v111_v13 = vpop.permute.xlu1 %110  ;;  %v36_v14 = vpop.permute.xlu0 %35 }
  0x87   :  { %v77_v33 = vsel %vm76_vm4, %v75_v32, %v36_v14  ;;  %v151_v40 = vsel %vm72_vm2, %v150_v38, %v111_v13 }
  0x8a   :  { %v114_v15 = vpop.permute.xlu1 %113  ;;  %v39_v16 = vpop.permute.xlu0 %38 }
  0x8b   :  { %v79_v35 = vsel %vm78_vm5, %v77_v33, %v39_v16  ;;  %v152_v42 = vsel %vm74_vm3, %v151_v40, %v114_v15  ;;  %v188_v16 = vld [vmem:[%s355_s1] sm:$0xff] }
  0x8e   :  { %v117_v17 = vpop.permute.xlu1 %116  ;;  %v42_v18 = vpop.permute.xlu0 %41 }
  0x8f   :  { %v81_v39 = vsel %vm80_vm6, %v79_v35, %v42_v18  ;;  %v153_v44 = vsel %vm76_vm4, %v152_v42, %v117_v17  ;;  %v189_v17 = vld [vmem:[%s355_s1 + $0x8] sm:$0xff]  ;;  %v190_v18 = vld [vmem:[%s355_s1 + $0x10] sm:$0xff] }
  0x92   :  { %v120_v19 = vpop.permute.xlu1 %119  ;;  %v45_v20 = vpop.permute.xlu0 %44 }
  0x93   :  { %v83_v41 = vsel %vm82_vm7, %v81_v39, %v45_v20  ;;  %v154_v48 = vsel %vm78_vm5, %v153_v44, %v120_v19  ;;  %v191_v19 = vld [vmem:[%s355_s1 + $0x18] sm:$0xff] }
  0x96   :  { %v123_v21 = vpop.permute.xlu1 %122  ;;  %v48_v22 = vpop.permute.xlu0 %47 }
  0x97   :  { %v85_v43 = vsel %vm84_vm8, %v83_v41, %v48_v22  ;;  %v155_v50 = vsel %vm80_vm6, %v154_v48, %v123_v21 }
  0x9a   :  { %v126_v23 = vpop.permute.xlu1 %125  ;;  %v51_v24 = vpop.permute.xlu0 %50 }
  0x9b   :  { %v87_v45 = vsel %vm86_vm9, %v85_v43, %v51_v24  ;;  %v156_v52 = vsel %vm82_vm7, %v155_v50, %v126_v23 }
  0x9e   :  { %v129_v25 = vpop.permute.xlu1 %128  ;;  %v54_v26 = vpop.permute.xlu0 %53 }
  0x9f   :  { %v89_v49 = vsel %vm88_vm10, %v87_v45, %v54_v26  ;;  %v157_v55 = vsel %vm84_vm8, %v156_v52, %v129_v25 }
  0xa2   :  { %v132_v29 = vpop.permute.xlu1 %131  ;;  %v57_v30 = vpop.permute.xlu0 %56 }
  0xa3   :  { %v91_v51 = vsel %vm90_vm11, %v89_v49, %v57_v30  ;;  %v158_v60 = vsel %vm86_vm9, %v157_v55, %v132_v29 }
  0xa6   :  { %v135_v36 = vpop.permute.xlu1 %134  ;;  %v60_v37 = vpop.permute.xlu0 %59 }
  0xa7   :  { %v93_v53 = vsel %vm92_vm12, %v91_v51, %v60_v37  ;;  %v159_v62 = vsel %vm88_vm10, %v158_v60, %v135_v36 }
  0xaa   :  { %v138_v46 = vpop.permute.xlu1 %137  ;;  %v63_v47 = vpop.permute.xlu0 %62 }
  0xab   :  { %v95_v56 = vsel %vm94_vm13, %v93_v53, %v63_v47  ;;  %v160_v1 = vsel %vm90_vm11, %v159_v62, %v138_v46 }
  0xae   :  { %v141_v57 = vpop.permute.xlu1 %140  ;;  %v66_v58 = vpop.permute.xlu0 %65 }
  0xaf   :  { %v97_v61 = vsel %vm96_vm14, %v95_v56, %v66_v58  ;;  %v161_v6 = vsel %vm92_vm12, %v160_v1, %v141_v57 }
  0xb0   :  { %v175_v0 = vrot.slane %v97_v61, %v277_v3 }
  0xb2   :  { %v144_v7 = vpop.permute.xlu0 %143  ;;  %v147_v8 = vpop.permute.xlu1 %146  ;;  %v176_v10 = vmul.f32 %v210_v63, %v175_v0  ;;  %v177_v12 = vmul.f32 %v211_v2, %v175_v0  ;;  %v178_v13 = vmul.f32 %v214_v4, %v175_v0  ;;  %v179_v14 = vmul.f32 %v215_v5, %v175_v0 }
  0xb3   :  { %v162_v9 = vsel %vm94_vm13, %v161_v6, %v144_v7 }
  0xb4   :  { %v163_v11 = vsel %vm96_vm14, %v162_v9, %v147_v8 }
  0xb5   :  { %v183_v15 = vrot.slane %v163_v11, %v277_v3 }
  0xb7   :  { %v184_v20 = vadd.f32 %v183_v15, %v176_v10  ;;  %v185_v21 = vadd.f32 %v183_v15, %v177_v12  ;;  %v186_v22 = vadd.f32 %v183_v15, %v178_v13  ;;  %v187_v3 = vadd.f32 %v183_v15, %v179_v14 }
  0xb9   :  { %v192_v23 = vadd.f32 %v188_v16, %v184_v20  ;;  %v193_v24 = vadd.f32 %v189_v17, %v185_v21  ;;  %v194_v25 = vadd.f32 %v190_v18, %v186_v22  ;;  %v195_v26 = vadd.f32 %v191_v19, %v187_v3 }
  0xbb   :  { %v196_v27 = vmax.f32 %v192_v23, 0.0  ;;  %v197_v28 = vmax.f32 %v193_v24, 0.0  ;;  %v198_v29 = vmax.f32 %v194_v25, 0.0  ;;  %v199_v30 = vmax.f32 %v195_v26, 0.0 }
  0xbd   :  { %200 = vst [vmem:[%s356_s4] sm:$0xff] %v196_v27  ;;  %201 = vst [vmem:[%s356_s4 + $0x8] sm:$0xff] %v197_v28 }
  0xbe   :  { %202 = vst [vmem:[%s356_s4 + $0x10] sm:$0xff] %v198_v29  ;;  %203 = vst [vmem:[%s356_s4 + $0x18] sm:$0xff] %v199_v30 }

// kernel: basic_block.3
= control target key start
LH: loop header
LB: loop body
LE: loop exit
PB: predicated region body
PF: predicated region fallthrough
CT: control target
= control target key end

     0   :  { %s4287_s12 = smov 0   ;;  %s5018_s0 = inlined_call_operand.vmem [shape: f32[2,16,16,8], index: 0, kind: input, shape index: {}]   ;;  %s5019_s1 = inlined_call_operand.vmem [shape: bf16[9,8,8], index: 1, kind: input, shape index: {}]   ;;  %s5020_s2 = inlined_call_operand.vmem [shape: bf16[2,16,16,8], index: 2, kind: output, shape index: {0}]   ;;  %s5021_s3 = inlined_call_operand.vmem [shape: f32[2,2,8], index: 3, kind: output, shape index: {1}]  }
   0x1 LB: > { %s3292_s13 = sadd.s32 4294967295, %s4264_s12   ;;  %p3296_p0 = scmp.ge.s32.totalorder %s4264_s12, 1  ;;  %s4264_s12 = sphi %s4287_s12, %s14_s12  }
   0x2   : > { %p140_p1 = scmp.lt.s32.totalorder %s4264_s12, 3 }
   0x4   : > { %p141_p2 = pnand %p3296_p0, %p140_p1 }
   0x5   : > { %v3302_v0 = vld [vmem:[%s5019_s1 + $0x4] sm:$0xf] (!%p141_p2)  ;;  %vm437_vm0 = vcmask (!%p141_p2), 1043456   ;;  %v4301_v1 = vld [vmem:[%s5019_s1 + $0x10] sm:$0xf] (!%p141_p2)  ;;  %vm183_vm1 = vcmask (!%p141_p2), 64512  }
   0x6   : > { %144 = sbr.rel (%p141_p2) target bundleno = 556 (0x22c), region = 28  ;;  %4239 = vmatprep.subr.msk.bf16.mxu1 (!%p141_p2), %vm437_vm0, %v3302_v0  ;;  %4243 = vmatprep.subr.msk.bf16.mxu0 (!%p141_p2), %vm437_vm0, %v4301_v1  ;;  %v439_v2 = vsel (!%p141_p2), %vm437_vm0, %v3302_v0, 0  ;;  %v4309_v3 = vsel (!%p141_p2), %vm437_vm0, %v4301_v1, 0  ;;  %vm186_vm2 = vcmask (!%p141_p2), 58368   ;;  %p168_p3 = scmp.lt.s32.totalorder (!%p141_p2), %s3292_s13, 1  ;;  %v4266_v4 = vmov (!%p141_p2), 0.0  }
   0x7   : > { %3676 = vmatpush3.bf16.msra.mxu1 (!%p141_p2), %v439_v2  ;;  %3812 = vmatpush3.bf16.msra.mxu0 (!%p141_p2), %v4309_v3  ;;  %184 = vst.msk [vmem:[#allocation2] sm:$0xff] (!%p141_p2), %vm183_vm1, %v4266_v4  ;;  %185 = vst.msk [vmem:[#allocation2 + $0x8] sm:$0xff] (!%p141_p2), %vm183_vm1, %v4266_v4  ;;  %v4319_v5 = vld [vmem:[%s5019_s1] sm:$0xf] (!%p141_p2)  ;;  %v4324_v6 = vld [vmem:[%s5019_s1 + $0x14] sm:$0xf] (!%p141_p2) }
   0x8   : > { %187 = vst.msk [vmem:[#allocation2 + $0x10] sm:$0x3] (!%p141_p2), %vm186_vm2, %v4266_v4  ;;  %191 = vst.msk [vmem:[#allocation2 + $0x1a8] sm:$0x3] (!%p141_p2), %vm186_vm2, %v4266_v4  ;;  %vm193_vm3 = vcmask (!%p141_p2), 57344   ;;  %4240 = vmatprep.subr.msk.bf16.mxu1 (!%p141_p2), %vm437_vm0, %v4319_v5  ;;  %4245 = vmatprep.subr.msk.bf16.mxu0 (!%p141_p2), %vm437_vm0, %v4324_v6  ;;  %v651_v36 = vsel (!%p141_p2), %vm437_vm0, %v4319_v5, 0 }
   0x9   : > { %189 = vst.msk [vmem:[#allocation2 + $0x198] sm:$0xff] (!%p141_p2), %vm183_vm1, %v4266_v4  ;;  %190 = vst.msk [vmem:[#allocation2 + $0x1a0] sm:$0xff] (!%p141_p2), %vm183_vm1, %v4266_v4  ;;  %v1795_v41 = vsel (!%p141_p2), %vm437_vm0, %v4324_v6, 0  ;;  %v4428_v43 = vld [vmem:[%s5019_s1 + $0x18] sm:$0xf] (!%p141_p2)  ;;  %vm3173_vm4 = vcmask (!%p141_p2), 60416  }
   0xa   : > { %210 = vst.msk [vmem:[#allocation2 + $0x29] sm:$0x1] (!%p141_p2), %vm193_vm3, %v4266_v4  ;;  %194 = vst.msk [vmem:[#allocation2 + $0x18] sm:$0x1] (!%p141_p2), %vm193_vm3, %v4266_v4  ;;  %v4435_v44 = vld [vmem:[%s5019_s1 + $0x8] sm:$0xf] (!%p141_p2) }
   0xb   : > { %195 = vst.msk [vmem:[#allocation2 + $0x30] sm:$0x1] (!%p141_p2), %vm193_vm3, %v4266_v4  ;;  %196 = vst.msk [vmem:[#allocation2 + $0x48] sm:$0x1] (!%p141_p2), %vm193_vm3, %v4266_v4 }
   0xc   : > { %197 = vst.msk [vmem:[#allocation2 + $0x60] sm:$0x1] (!%p141_p2), %vm193_vm3, %v4266_v4  ;;  %198 = vst.msk [vmem:[#allocation2 + $0x78] sm:$0x1] (!%p141_p2), %vm193_vm3, %v4266_v4 }
   0xd   : > { %s5023_s13 = smov (!%p168_p3, %s3292_s13), 1  ;;  %199 = vst.msk [vmem:[#allocation2 + $0x90] sm:$0x1] %vm193_vm3, %v4266_v4  ;;  %200 = vst.msk [vmem:[#allocation2 + $0xa8] sm:$0x1] %vm193_vm3, %v4266_v4 }
   0xe   : > { %201 = vst.msk [vmem:[#allocation2 + $0xc0] sm:$0x1] %vm193_vm3, %v4266_v4  ;;  %202 = vst.msk [vmem:[#allocation2 + $0xd8] sm:$0x1] %vm193_vm3, %v4266_v4  ;;  %s3488_s22 = sshll.u32 %s5023_s13, 8  ;;  %v339_v13 = vld [vmem:[#allocation2 + $0x1] sm:$0xff] }
   0xf   : > { %203 = vst.msk [vmem:[#allocation2 + $0xf0] sm:$0x1] %vm193_vm3, %v4266_v4  ;;  %204 = vst.msk [vmem:[#allocation2 + $0x108] sm:$0x1] %vm193_vm3, %v4266_v4  ;;  %s4368_s25 = scalar_lea.vmem %s5018_s0, %s3488_s22  ;;  %v340_v14 = vld [vmem:[#allocation2 + $0x9] sm:$0xff]  ;;  %s3489_s9 = sshll.u32 %s5023_s13, 7 }
  0x10   : > { %205 = vst.msk [vmem:[#allocation2 + $0x120] sm:$0x1] %vm193_vm3, %v4266_v4  ;;  %206 = vst.msk [vmem:[#allocation2 + $0x138] sm:$0x1] %vm193_vm3, %v4266_v4  ;;  %v226_v7 = vld [vmem:[%s4368_s25] sm:$0xff]  ;;  %v227_v8 = vld [vmem:[%s4368_s25 + $0x8] sm:$0xff]  ;;  %v371_v16 = vpack.c.bf16 %v340_v14, %v339_v13  ;;  %s4871_s14 = scalar_lea.vmem %s5020_s2, %s3489_s9 }
  0x11   : > { %207 = vst.msk [vmem:[#allocation2 + $0x150] sm:$0x1] %vm193_vm3, %v4266_v4  ;;  %208 = vst.msk [vmem:[#allocation2 + $0x168] sm:$0x1] %vm193_vm3, %v4266_v4  ;;  %v228_v9 = vld [vmem:[%s4368_s25 + $0x10] sm:$0xff]  ;;  %v229_v10 = vld [vmem:[%s4368_s25 + $0x18] sm:$0xff] }
  0x12   : > { %209 = vst.msk [vmem:[#allocation2 + $0x180] sm:$0x1] %vm193_vm3, %v4266_v4  ;;  %211 = vst.msk [vmem:[#allocation2 + $0x41] sm:$0x1] %vm193_vm3, %v4266_v4  ;;  %v230_v11 = vld [vmem:[%s4368_s25 + $0x20] sm:$0xff]  ;;  %v231_v12 = vld [vmem:[%s4368_s25 + $0x28] sm:$0xff]  ;;  %3677 = vmatprep.mubr.msk.bf16.mxu1 %vm183_vm1, %v371_v16 }
  0x13   : > { %212 = vst.msk [vmem:[#allocation2 + $0x59] sm:$0x1] %vm193_vm3, %v4266_v4  ;;  %213 = vst.msk [vmem:[#allocation2 + $0x71] sm:$0x1] %vm193_vm3, %v4266_v4  ;;  %v232_v15 = vld [vmem:[%s4368_s25 + $0x30] sm:$0xff]  ;;  %v233_v17 = vld [vmem:[%s4368_s25 + $0x38] sm:$0xff] }
  0x14   : > { %214 = vst.msk [vmem:[#allocation2 + $0x89] sm:$0x1] %vm193_vm3, %v4266_v4  ;;  %215 = vst.msk [vmem:[#allocation2 + $0xa1] sm:$0x1] %vm193_vm3, %v4266_v4  ;;  %v234_v18 = vld [vmem:[%s4368_s25 + $0x40] sm:$0xff]  ;;  %v235_v19 = vld [vmem:[%s4368_s25 + $0x48] sm:$0xff] }
  0x15   : > { %216 = vst.msk [vmem:[#allocation2 + $0xb9] sm:$0x1] %vm193_vm3, %v4266_v4  ;;  %217 = vst.msk [vmem:[#allocation2 + $0xd1] sm:$0x1] %vm193_vm3, %v4266_v4  ;;  %v236_v20 = vld [vmem:[%s4368_s25 + $0x50] sm:$0xff]  ;;  %v237_v21 = vld [vmem:[%s4368_s25 + $0x58] sm:$0xff] }
  0x16   : > { %218 = vst.msk [vmem:[#allocation2 + $0xe9] sm:$0x1] %vm193_vm3, %v4266_v4  ;;  %219 = vst.msk [vmem:[#allocation2 + $0x101] sm:$0x1] %vm193_vm3, %v4266_v4  ;;  %v238_v22 = vld [vmem:[%s4368_s25 + $0x60] sm:$0xff]  ;;  %v239_v23 = vld [vmem:[%s4368_s25 + $0x68] sm:$0xff] }
  0x17   : > { %220 = vst.msk [vmem:[#allocation2 + $0x119] sm:$0x1] %vm193_vm3, %v4266_v4  ;;  %221 = vst.msk [vmem:[#allocation2 + $0x131] sm:$0x1] %vm193_vm3, %v4266_v4  ;;  %v240_v24 = vld [vmem:[%s4368_s25 + $0x70] sm:$0xff]  ;;  %v241_v25 = vld [vmem:[%s4368_s25 + $0x78] sm:$0xff] }
  0x18   : > { %222 = vst.msk [vmem:[#allocation2 + $0x149] sm:$0x1] %vm193_vm3, %v4266_v4  ;;  %223 = vst.msk [vmem:[#allocation2 + $0x161] sm:$0x1] %vm193_vm3, %v4266_v4  ;;  %v242_v26 = vld [vmem:[%s4368_s25 + $0x80] sm:$0xff]  ;;  %v243_v27 = vld [vmem:[%s4368_s25 + $0x88] sm:$0xff] }
  0x19   : > { %224 = vst.msk [vmem:[#allocation2 + $0x179] sm:$0x1] %vm193_vm3, %v4266_v4  ;;  %225 = vst.msk [vmem:[#allocation2 + $0x191] sm:$0x1] %vm193_vm3, %v4266_v4  ;;  %v244_v28 = vld [vmem:[%s4368_s25 + $0x90] sm:$0xff]  ;;  %v245_v29 = vld [vmem:[%s4368_s25 + $0x98] sm:$0xff] }
  0x1a   : > { %258 = vst.msk [vmem:[#allocation2 + $0x19] sm:$0xff] %vm183_vm1, %v226_v7  ;;  %259 = vst.msk [vmem:[#allocation2 + $0x21] sm:$0xff] %vm183_vm1, %v227_v8  ;;  %v246_v30 = vld [vmem:[%s4368_s25 + $0xa0] sm:$0xff]  ;;  %v247_v31 = vld [vmem:[%s4368_s25 + $0xa8] sm:$0xff]  ;;  %s3301_s15 = sshll.u32 %s5023_s13, 1 }
  0x1b   : > { %260 = vst.msk [vmem:[#allocation2 + $0x31] sm:$0xff] %vm183_vm1, %v228_v9  ;;  %261 = vst.msk [vmem:[#allocation2 + $0x39] sm:$0xff] %vm183_vm1, %v229_v10  ;;  %v248_v51 = vld [vmem:[%s4368_s25 + $0xb0] sm:$0xff]  ;;  %v249_v52 = vld [vmem:[%s4368_s25 + $0xb8] sm:$0xff]  ;;  %s181_s18 = scalar_lea.vmem %s5021_s3, %s3301_s15 }
  0x1c   : > { %262 = vst.msk [vmem:[#allocation2 + $0x49] sm:$0xff] %vm183_vm1, %v230_v11  ;;  %263 = vst.msk [vmem:[#allocation2 + $0x51] sm:$0xff] %vm183_vm1, %v231_v12  ;;  %v250_v53 = vld [vmem:[%s4368_s25 + $0xc0] sm:$0xff]  ;;  %v251_v54 = vld [vmem:[%s4368_s25 + $0xc8] sm:$0xff] }
  0x1d   : > { %264 = vst.msk [vmem:[#allocation2 + $0x61] sm:$0xff] %vm183_vm1, %v232_v15  ;;  %265 = vst.msk [vmem:[#allocation2 + $0x69] sm:$0xff] %vm183_vm1, %v233_v17  ;;  %v252_v57 = vld [vmem:[%s4368_s25 + $0xd0] sm:$0xff]  ;;  %v253_v58 = vld [vmem:[%s4368_s25 + $0xd8] sm:$0xff] }
  0x1e   : > { %266 = vst.msk [vmem:[#allocation2 + $0x79] sm:$0xff] %vm183_vm1, %v234_v18  ;;  %267 = vst.msk [vmem:[#allocation2 + $0x81] sm:$0xff] %vm183_vm1, %v235_v19  ;;  %v254_v59 = vld [vmem:[%s4368_s25 + $0xe0] sm:$0xff]  ;;  %v255_v60 = vld [vmem:[%s4368_s25 + $0xe8] sm:$0xff] }
  0x1f   : > { %268 = vst.msk [vmem:[#allocation2 + $0x91] sm:$0xff] %vm183_vm1, %v236_v20  ;;  %269 = vst.msk [vmem:[#allocation2 + $0x99] sm:$0xff] %vm183_vm1, %v237_v21  ;;  %v256_v12 = vld [vmem:[%s4368_s25 + $0xf0] sm:$0xff]  ;;  %v257_v13 = vld [vmem:[%s4368_s25 + $0xf8] sm:$0xff] }
  0x20   : > { %270 = vst.msk [vmem:[#allocation2 + $0xa9] sm:$0xff] %vm183_vm1, %v238_v22  ;;  %271 = vst.msk [vmem:[#allocation2 + $0xb1] sm:$0xff] %vm183_vm1, %v239_v23  ;;  %v2090_v23 = vsel %vm437_vm0, %v4428_v43, 0 }
  0x21   : > { %272 = vst.msk [vmem:[#allocation2 + $0xc1] sm:$0xff] %vm183_vm1, %v240_v24  ;;  %273 = vst.msk [vmem:[#allocation2 + $0xc9] sm:$0xff] %vm183_vm1, %v241_v25  ;;  %v341_v32 = vld [vmem:[#allocation2 + $0x19] sm:$0xff]  ;;  %v342_v33 = vld [vmem:[#allocation2 + $0x21] sm:$0xff] }
  0x22   : > { %274 = vst.msk [vmem:[#allocation2 + $0xd9] sm:$0xff] %vm183_vm1, %v242_v26  ;;  %275 = vst.msk [vmem:[#allocation2 + $0xe1] sm:$0xff] %vm183_vm1, %v243_v27  ;;  %v1404_v34 = vld [vmem:[#allocation2 + $0x31] sm:$0xff]  ;;  %v372_v35 = vpack.c.bf16 %v342_v33, %v341_v32  ;;  %v1405_v37 = vld [vmem:[#allocation2 + $0x39] sm:$0xff] }
  0x23   : > { %276 = vst.msk [vmem:[#allocation2 + $0xf1] sm:$0xff] %vm183_vm1, %v244_v28  ;;  %277 = vst.msk [vmem:[#allocation2 + $0xf9] sm:$0xff] %vm183_vm1, %v245_v29  ;;  %v345_v38 = vld [vmem:[#allocation2 + $0x49] sm:$0xff]  ;;  %v346_v39 = vld [vmem:[#allocation2 + $0x51] sm:$0xff]  ;;  %v4417_v40 = vpack.c.bf16 %v1405_v37, %v1404_v34 }
  0x24   : > { %278 = vst.msk [vmem:[#allocation2 + $0x109] sm:$0xff] %vm183_vm1, %v246_v30  ;;  %279 = vst.msk [vmem:[#allocation2 + $0x111] sm:$0xff] %vm183_vm1, %v247_v31  ;;  %v4421_v42 = vpack.c.bf16 %v346_v39, %v345_v38  ;;  %3678 = vmatmul.mubr.msk.bf16.vlgmr.msra.gmra.mrb[0].mxu1 %vm183_vm1, %v372_v35  ;;  %3813 = vmatprep.mubr.msk.bf16.mxu0 %vm183_vm1, %v372_v35  ;;  %v1408_v45 = vld [vmem:[#allocation2 + $0x61] sm:$0xff]  ;;  %v1409_v46 = vld [vmem:[#allocation2 + $0x69] sm:$0xff] }
  0x25   : > { %3710 = vmatpush3.bf16.msra.mxu1 %v651_v36  ;;  %3814 = vmatmul.mubr.msk.bf16.vlgmr.msra.gmra.mrb[0].mxu0 %vm183_vm1, %v4417_v40  ;;  %v349_v47 = vld [vmem:[#allocation2 + $0x79] sm:$0xff]  ;;  %v350_v48 = vld [vmem:[#allocation2 + $0x81] sm:$0xff]  ;;  %v4445_v49 = vpack.c.bf16 %v1409_v46, %v1408_v45  ;;  %280 = vst.msk [vmem:[#allocation2 + $0x121] sm:$0xff] %vm183_vm1, %v248_v51  ;;  %281 = vst.msk [vmem:[#allocation2 + $0x129] sm:$0xff] %vm183_vm1, %v249_v52 }
  0x26   : > { %3846 = vmatpush3.bf16.msra.mxu0 %v1795_v41  ;;  %3681 = vmatprep.mubr.msk.bf16.mxu1 %vm183_vm1, %v4417_v40  ;;  %v4447_v50 = vpack.c.bf16 %v350_v48, %v349_v47  ;;  %282 = vst.msk [vmem:[#allocation2 + $0x139] sm:$0xff] %vm183_vm1, %v250_v53  ;;  %v1412_v55 = vld [vmem:[#allocation2 + $0x91] sm:$0xff]  ;;  %v1413_v56 = vld [vmem:[#allocation2 + $0x99] sm:$0xff]  ;;  %283 = vst.msk [vmem:[#allocation2 + $0x141] sm:$0xff] %vm183_vm1, %v251_v54 }
  0x27   : > { %3817 = vmatprep.mubr.msk.bf16.mxu0 %vm183_vm1, %v4421_v42  ;;  %4246 = vmatprep.subr.msk.bf16.mxu0 %vm437_vm0, %v4428_v43  ;;  %284 = vst.msk [vmem:[#allocation2 + $0x151] sm:$0xff] %vm183_vm1, %v252_v57  ;;  %v353_v61 = vld [vmem:[#allocation2 + $0xa9] sm:$0xff]  ;;  %v354_v62 = vld [vmem:[#allocation2 + $0xb1] sm:$0xff]  ;;  %285 = vst.msk [vmem:[#allocation2 + $0x159] sm:$0xff] %vm183_vm1, %v253_v58  ;;  %v4473_v63 = vpack.c.bf16 %v1413_v56, %v1412_v55 }
  0x28   : > { %4241 = vmatprep.subr.msk.bf16.mxu1 %vm437_vm0, %v4435_v44  ;;  %286 = vst.msk [vmem:[#allocation2 + $0x169] sm:$0xff] %vm183_vm1, %v254_v59  ;;  %287 = vst.msk [vmem:[#allocation2 + $0x171] sm:$0xff] %vm183_vm1, %v255_v60  ;;  %v4475_v0 = vpack.c.bf16 %v354_v62, %v353_v61  ;;  %v1416_v2 = vld [vmem:[#allocation2 + $0xc1] sm:$0xff]  ;;  %v1417_v4 = vld [vmem:[#allocation2 + $0xc9] sm:$0xff] }
  0x29   : > { %v1696_v5 = vld [vmem:[#allocation2 + $0x1a] sm:$0xff]  ;;  %v1697_v6 = vld [vmem:[#allocation2 + $0x22] sm:$0xff]  ;;  %v4485_v7 = vpack.c.bf16 %v1417_v4, %v1416_v2  ;;  %v1698_v11 = vld [vmem:[#allocation2 + $0x32] sm:$0xff]  ;;  %288 = vst.msk [vmem:[#allocation2 + $0x181] sm:$0xff] %vm183_vm1, %v256_v12 }
  0x2a   : > { %v4487_v8 = vpack.c.bf16 %v1697_v6, %v1696_v5  ;;  %v357_v9 = vld [vmem:[#allocation2 + $0xd9] sm:$0xff]  ;;  %v358_v10 = vld [vmem:[#allocation2 + $0xe1] sm:$0xff]  ;;  %v359_v15 = vld [vmem:[#allocation2 + $0xf1] sm:$0xff]  ;;  %289 = vst.msk [vmem:[#allocation2 + $0x189] sm:$0xff] %vm183_vm1, %v257_v13 }
  0x2b   : > { %v1699_v14 = vld [vmem:[#allocation2 + $0x3a] sm:$0xff]  ;;  %v1700_v17 = vld [vmem:[#allocation2 + $0x4a] sm:$0xff]  ;;  %v1701_v18 = vld [vmem:[#allocation2 + $0x52] sm:$0xff]  ;;  %v4501_v19 = vpack.c.bf16 %v358_v10, %v357_v9 }
  0x2c   : > { %3682 = vmatmul.mubr.msk.bf16.gmra.mrb[4].mxu1 %vm183_vm1, %v4421_v42  ;;  %v360_v16 = vld [vmem:[#allocation2 + $0xf9] sm:$0xff]  ;;  %v4503_v20 = vpack.c.bf16 %v1699_v14, %v1698_v11  ;;  %v4507_v22 = vpack.c.bf16 %v1701_v18, %v1700_v17  ;;  %v361_v25 = vld [vmem:[#allocation2 + $0x109] sm:$0xff]  ;;  %v362_v26 = vld [vmem:[#allocation2 + $0x111] sm:$0xff]  ;;  %v913_v18 = vsel %vm437_vm0, %v4435_v44, 0 }
  0x2d   : > { %3818 = vmatmul.mubr.msk.bf16.gmra.mrb[4].mxu0 %vm183_vm1, %v4445_v49  ;;  %3685 = vmatprep.mubr.msk.bf16.mxu1 %vm183_vm1, %v4445_v49  ;;  %v4505_v21 = vpack.c.bf16 %v360_v16, %v359_v15  ;;  %v4516_v24 = vld [vmem:[%s5019_s1 + $0x1c] sm:$0xf]  ;;  %v1702_v27 = vld [vmem:[#allocation2 + $0x62] sm:$0xff]  ;;  %v1703_v28 = vld [vmem:[#allocation2 + $0x6a] sm:$0xff]  ;;  %v4526_v33 = vpack.c.bf16 %v362_v26, %v361_v25 }
  0x2e   : > { %3821 = vmatprep.mubr.msk.bf16.mxu0 %vm183_vm1, %v4447_v50  ;;  %v363_v29 = vld [vmem:[#allocation2 + $0x121] sm:$0xff]  ;;  %v364_v30 = vld [vmem:[#allocation2 + $0x129] sm:$0xff]  ;;  %v4528_v34 = vpack.c.bf16 %v1703_v28, %v1702_v27  ;;  %v365_v37 = vld [vmem:[#allocation2 + $0x139] sm:$0xff] }
  0x2f   : > { %v1704_v31 = vld [vmem:[#allocation2 + $0x7a] sm:$0xff]  ;;  %v1705_v32 = vld [vmem:[#allocation2 + $0x82] sm:$0xff]  ;;  %v4530_v35 = vpack.c.bf16 %v364_v30, %v363_v29  ;;  %v1706_v39 = vld [vmem:[#allocation2 + $0x92] sm:$0xff] }
  0x30   : > { %v4532_v36 = vpack.c.bf16 %v1705_v32, %v1704_v31  ;;  %v366_v38 = vld [vmem:[#allocation2 + $0x141] sm:$0xff]  ;;  %v367_v43 = vld [vmem:[#allocation2 + $0x151] sm:$0xff]  ;;  %v368_v45 = vld [vmem:[#allocation2 + $0x159] sm:$0xff] }
  0x31   : > { %v1707_v41 = vld [vmem:[#allocation2 + $0x9a] sm:$0xff]  ;;  %v1708_v46 = vld [vmem:[#allocation2 + $0xaa] sm:$0xff]  ;;  %v1709_v47 = vld [vmem:[#allocation2 + $0xb2] sm:$0xff]  ;;  %v4542_v48 = vpack.c.bf16 %v366_v38, %v365_v37  ;;  %v4546_v52 = vpack.c.bf16 %v368_v45, %v367_v43 }
  0x32   : > { %v4544_v51 = vpack.c.bf16 %v1707_v41, %v1706_v39  ;;  %v4548_v53 = vpack.c.bf16 %v1709_v47, %v1708_v46  ;;  %v369_v54 = vld [vmem:[#allocation2 + $0x169] sm:$0xff]  ;;  %v370_v55 = vld [vmem:[#allocation2 + $0x171] sm:$0xff]  ;;  %v290_v58 = vld [vmem:[#allocation2] sm:$0xff] }
  0x33   : > { %v1710_v56 = vld [vmem:[#allocation2 + $0xc2] sm:$0xff]  ;;  %v1711_v57 = vld [vmem:[#allocation2 + $0xca] sm:$0xff]  ;;  %v1712_v60 = vld [vmem:[#allocation2 + $0xda] sm:$0xff]  ;;  %v4558_v62 = vpack.c.bf16 %v370_v55, %v369_v54 }
  0x34   : > { %3686 = vmatmul.mubr.msk.bf16.gmra.mrb[8].mxu1 %vm183_vm1, %v4447_v50  ;;  %v291_v59 = vld [vmem:[#allocation2 + $0x8] sm:$0xff]  ;;  %v4560_v2 = vpack.c.bf16 %v1711_v57, %v1710_v56  ;;  %v292_v6 = vld [vmem:[#allocation2 + $0x18] sm:$0xff]  ;;  %v293_v9 = vld [vmem:[#allocation2 + $0x20] sm:$0xff] }
  0x35   : > { %3822 = vmatmul.mubr.msk.bf16.gmra.mrb[8].mxu0 %vm183_vm1, %v4473_v63  ;;  %3689 = vmatprep.mubr.msk.bf16.mxu1 %vm183_vm1, %v4473_v63  ;;  %v1713_v61 = vld [vmem:[#allocation2 + $0xe2] sm:$0xff]  ;;  %v322_v4 = vpack.c.bf16 %v291_v59, %v290_v58  ;;  %v1714_v10 = vld [vmem:[#allocation2 + $0xf2] sm:$0xff]  ;;  %v1715_v11 = vld [vmem:[#allocation2 + $0xfa] sm:$0xff]  ;;  %v4571_v16 = vpack.c.bf16 %v293_v9, %v292_v6 }
  0x36   : > { %3825 = vmatprep.mubr.msk.bf16.mxu0 %vm183_vm1, %v4475_v0  ;;  %v4562_v5 = vpack.c.bf16 %v1713_v61, %v1712_v60  ;;  %v294_v12 = vld [vmem:[#allocation2 + $0x30] sm:$0xff]  ;;  %v295_v13 = vld [vmem:[#allocation2 + $0x38] sm:$0xff]  ;;  %v4573_v17 = vpack.c.bf16 %v1715_v11, %v1714_v10  ;;  %v4586_v26 = vld [vmem:[%s5019_s1 + $0xc] sm:$0xf] }
  0x37   : > { %v1716_v14 = vld [vmem:[#allocation2 + $0x10a] sm:$0xff]  ;;  %v1717_v15 = vld [vmem:[#allocation2 + $0x112] sm:$0xff]  ;;  %v1718_v29 = vld [vmem:[#allocation2 + $0x122] sm:$0xff] }
  0x38   : > { %v4579_v25 = vpack.c.bf16 %v1717_v15, %v1716_v14  ;;  %v296_v27 = vld [vmem:[#allocation2 + $0x48] sm:$0xff]  ;;  %v297_v28 = vld [vmem:[#allocation2 + $0x50] sm:$0xff]  ;;  %v298_v30 = vld [vmem:[#allocation2 + $0x60] sm:$0xff] }
  0x39   : > { %v1719_v44 = vld [vmem:[#allocation2 + $0x12a] sm:$0xff]  ;;  %v1720_v32 = vld [vmem:[#allocation2 + $0x13a] sm:$0xff]  ;;  %v1721_v37 = vld [vmem:[#allocation2 + $0x142] sm:$0xff]  ;;  %v4596_v38 = vpack.c.bf16 %v297_v28, %v296_v27 }
  0x3a   : > { %v299_v31 = vld [vmem:[#allocation2 + $0x68] sm:$0xff]  ;;  %v4598_v39 = vpack.c.bf16 %v1719_v44, %v1718_v29  ;;  %v4602_v43 = vpack.c.bf16 %v1721_v37, %v1720_v32  ;;  %v300_v45 = vld [vmem:[#allocation2 + $0x78] sm:$0xff]  ;;  %v301_v46 = vld [vmem:[#allocation2 + $0x80] sm:$0xff]  ;;  %v2384_v32 = vsel %vm437_vm0, %v4516_v24, 0 }
  0x3b   : > { %v4600_v41 = vpack.c.bf16 %v299_v31, %v298_v30  ;;  %v1722_v47 = vld [vmem:[#allocation2 + $0x152] sm:$0xff]  ;;  %v1723_v54 = vld [vmem:[#allocation2 + $0x15a] sm:$0xff]  ;;  %v1724_v57 = vld [vmem:[#allocation2 + $0x16a] sm:$0xff]  ;;  %v4612_v59 = vpack.c.bf16 %v301_v46, %v300_v45 }
  0x3c   : > { %3690 = vmatmul.mubr.msk.bf16.gmra.mrb[12].mxu1 %vm183_vm1, %v4475_v0  ;;  %v302_v55 = vld [vmem:[#allocation2 + $0x90] sm:$0xff]  ;;  %v303_v56 = vld [vmem:[#allocation2 + $0x98] sm:$0xff]  ;;  %v4614_v60 = vpack.c.bf16 %v1723_v54, %v1722_v47  ;;  %v304_v6 = vld [vmem:[#allocation2 + $0xa8] sm:$0xff] }
  0x3d   : > { %3826 = vmatmul.mubr.msk.bf16.gmra.mrb[12].mxu0 %vm183_vm1, %v4485_v7  ;;  %3693 = vmatprep.mubr.msk.bf16.mxu1 %vm183_vm1, %v4485_v7  ;;  %v1725_v58 = vld [vmem:[#allocation2 + $0x172] sm:$0xff]  ;;  %v4616_v61 = vpack.c.bf16 %v303_v56, %v302_v55  ;;  %v306_v10 = vld [vmem:[#allocation2 + $0xc0] sm:$0xff]  ;;  %v312_v45 = vld [vmem:[#allocation2 + $0x108] sm:$0xff] }
  0x3e   : > { %3847 = vmatprep.mubr.msk.bf16.mxu0 %vm183_vm1, %v4487_v8  ;;  %v305_v9 = vld [vmem:[#allocation2 + $0xb0] sm:$0xff]  ;;  %v1726_v11 = vld [vmem:[#allocation2 + $0x182] sm:$0xff]  ;;  %v308_v27 = vld [vmem:[#allocation2 + $0xd8] sm:$0xff] }
  0x3f   : > { %v4628_v14 = vpack.c.bf16 %v305_v9, %v304_v6  ;;  %v309_v28 = vld [vmem:[#allocation2 + $0xe0] sm:$0xff]  ;;  %v310_v29 = vld [vmem:[#allocation2 + $0xf0] sm:$0xff]  ;;  %v311_v44 = vld [vmem:[#allocation2 + $0xf8] sm:$0xff] }
  0x40   : > { %v4642_v30 = vpack.c.bf16 %v309_v28, %v308_v27  ;;  %v4644_v31 = vpack.c.bf16 %v311_v44, %v310_v29  ;;  %v3437_v37 = vld [vmem:[%s5019_s1 + $0x20] sm:$0xf]  ;;  %v313_v46 = vld [vmem:[#allocation2 + $0x110] sm:$0xff]  ;;  %v315_v47 = vld [vmem:[#allocation2 + $0x128] sm:$0xff]  ;;  %v1207_v44 = vsel %vm437_vm0, %v4586_v26, 0 }
  0x41   : > { %v4660_v54 = vpack.c.bf16 %v313_v46, %v312_v45  ;;  %v316_v56 = vld [vmem:[#allocation2 + $0x138] sm:$0xff]  ;;  %v815_v27 = vld [vmem:[#allocation2 + $0xa] sm:$0xff]  ;;  %v2022_v45 = vld [vmem:[#allocation2 + $0x1a0] sm:$0xff] }
  0x42   : > { %v319_v6 = vld [vmem:[#allocation2 + $0x158] sm:$0xff] }
  0x44   : > { %3694 = vmatmul.mubr.msk.bf16.gmra.mrb[16].mxu1 %vm183_vm1, %v4501_v19 }
  0x45   : > { %3848 = vmatmul.mubr.msk.bf16.vlgmr.msra.gmra.mrb[0].mxu0 %vm183_vm1, %v4503_v20  ;;  %3697 = vmatprep.mubr.msk.bf16.mxu1 %vm183_vm1, %v4505_v21 }
  0x46   : > { %3880 = vmatpush3.bf16.msra.mxu0 %v2090_v23  ;;  %3851 = vmatprep.mubr.msk.bf16.mxu0 %vm183_vm1, %v4507_v22  ;;  %v4577_v23 = vpack.c.bf16 %v295_v13, %v294_v12  ;;  %v1727_v12 = vld [vmem:[#allocation2 + $0x18a] sm:$0xff] }
  0x47   : > { %4247 = vmatprep.subr.msk.bf16.mxu0 %vm437_vm0, %v4516_v24  ;;  %v307_v13 = vld [vmem:[#allocation2 + $0xc8] sm:$0xff]  ;;  %v4630_v15 = vpack.c.bf16 %v1727_v12, %v1726_v11  ;;  %v314_v24 = vld [vmem:[#allocation2 + $0x120] sm:$0xff]  ;;  %v321_v12 = vld [vmem:[#allocation2 + $0x170] sm:$0xff] }
  0x48   : > { %v4662_v55 = vpack.c.bf16 %v315_v47, %v314_v24  ;;  %v320_v11 = vld [vmem:[#allocation2 + $0x168] sm:$0xff]  ;;  %v2678_v24 = vsel %vm437_vm0, %v3437_v37, 0 }
  0x49   : > { %v4684_v28 = vpack.c.bf16 %v321_v12, %v320_v11 }
  0x4c   : > { %3698 = vmatmul.mubr.msk.bf16.gmra.mrb[20].mxu1 %vm183_vm1, %v4526_v33 }
  0x4d   : > { %3852 = vmatmul.mubr.msk.bf16.gmra.mrb[4].mxu0 %vm183_vm1, %v4528_v34  ;;  %3701 = vmatprep.mubr.msk.bf16.mxu1 %vm183_vm1, %v4530_v35 }
  0x4e   : > { %3855 = vmatprep.mubr.msk.bf16.mxu0 %vm183_vm1, %v4532_v36 }
  0x54   : > { %3702 = vmatmul.mubr.msk.bf16.gmra.mrb[24].mxu1 %vm183_vm1, %v4542_v48 }
  0x55   : > { %3856 = vmatmul.mubr.msk.bf16.gmra.mrb[8].mxu0 %vm183_vm1, %v4544_v51  ;;  %3705 = vmatprep.mubr.msk.bf16.mxu1 %vm183_vm1, %v4546_v52 }
  0x56   : > { %3859 = vmatprep.mubr.msk.bf16.mxu0 %vm183_vm1, %v4548_v53 }
  0x5c   : > { %3706 = vmatmul.mubr.msk.bf16.gmra.mrb[28].mxu1 %vm183_vm1, %v4558_v62 }
  0x5d   : > { %3860 = vmatmul.mubr.msk.bf16.gmra.mrb[12].mxu0 %vm183_vm1, %v4560_v2  ;;  %3711 = vmatprep.mubr.msk.bf16.mxu1 %vm183_vm1, %v322_v4  ;;  %v4618_v4 = vpack.c.bf16 %v1725_v58, %v1724_v57  ;;  %v317_v57 = vld [vmem:[#allocation2 + $0x140] sm:$0xff]  ;;  %v318_v58 = vld [vmem:[#allocation2 + $0x150] sm:$0xff] }
  0x5e   : > { %3863 = vmatprep.mubr.msk.bf16.mxu0 %vm183_vm1, %v4562_v5  ;;  %v4672_v9 = vpack.c.bf16 %v317_v57, %v316_v56 }
  0x64   : > { %3712 = vmatmul.mubr.msk.bf16.vlgmr.msra.gmra.mrb[0].mxu1 %vm183_vm1, %v4571_v16 }
  0x65   : > { %3744 = vmatpush3.bf16.msra.mxu1 %v913_v18  ;;  %3864 = vmatmul.mubr.msk.bf16.gmra.mrb[16].mxu0 %vm183_vm1, %v4573_v17  ;;  %v4632_v18 = vpack.c.bf16 %v307_v13, %v306_v10  ;;  %v4674_v10 = vpack.c.bf16 %v319_v6, %v318_v58  ;;  %v814_v13 = vld [vmem:[#allocation2 + $0x2] sm:$0xff] }
  0x66   : > { %3715 = vmatprep.mubr.msk.bf16.mxu1 %vm183_vm1, %v4577_v23  ;;  %3867 = vmatprep.mubr.msk.bf16.mxu0 %vm183_vm1, %v4579_v25  ;;  %v846_v29 = vpack.c.bf16 %v815_v27, %v814_v13 }
  0x67   : > { %4242 = vmatprep.subr.msk.bf16.mxu1 %vm437_vm0, %v4586_v26  ;;  %v2020_v26 = vld [vmem:[#allocation2 + $0x188] sm:$0xff] }
  0x6c   : > { %3716 = vmatmul.mubr.msk.bf16.gmra.mrb[4].mxu1 %vm183_vm1, %v4596_v38 }
  0x6d   : > { %3868 = vmatmul.mubr.msk.bf16.gmra.mrb[20].mxu0 %vm183_vm1, %v4598_v39  ;;  %3719 = vmatprep.mubr.msk.bf16.mxu1 %vm183_vm1, %v4600_v41 }
  0x6e   : > { %3871 = vmatprep.mubr.msk.bf16.mxu0 %vm183_vm1, %v4602_v43 }
  0x74   : > { %3720 = vmatmul.mubr.msk.bf16.gmra.mrb[8].mxu1 %vm183_vm1, %v4612_v59 }
  0x75   : > { %3872 = vmatmul.mubr.msk.bf16.gmra.mrb[24].mxu0 %vm183_vm1, %v4614_v60  ;;  %3723 = vmatprep.mubr.msk.bf16.mxu1 %vm183_vm1, %v4616_v61 }
  0x76   : > { %3875 = vmatprep.mubr.msk.bf16.mxu0 %vm183_vm1, %v4618_v4 }
  0x7c   : > { %3724 = vmatmul.mubr.msk.bf16.gmra.mrb[12].mxu1 %vm183_vm1, %v4628_v14 }
  0x7d   : > { %3876 = vmatmul.mubr.msk.bf16.gmra.mrb[28].mxu0 %vm183_vm1, %v4630_v15  ;;  %3727 = vmatprep.mubr.msk.bf16.mxu1 %vm183_vm1, %v4632_v18 }
  0x7e   : > { %3881 = vmatprep.mubr.msk.bf16.mxu0 %vm183_vm1, %v4577_v23 }
  0x84   : > { %3728 = vmatmul.mubr.msk.bf16.gmra.mrb[16].mxu1 %vm183_vm1, %v4642_v30 }
  0x85   : > { %3882 = vmatmul.mubr.msk.bf16.vlgmr.msra.gmra.mrb[0].mxu0 %vm183_vm1, %v4596_v38  ;;  %3731 = vmatprep.mubr.msk.bf16.mxu1 %vm183_vm1, %v4644_v31 }
  0x86   : > { %3914 = vmatpush3.bf16.msra.mxu0 %v2384_v32  ;;  %3885 = vmatprep.mubr.msk.bf16.mxu0 %vm183_vm1, %v4600_v41 }
  0x87   : > { %4248 = vmatprep.subr.msk.bf16.mxu0 %vm437_vm0, %v3437_v37 }
  0x8c   : > { %3732 = vmatmul.mubr.msk.bf16.gmra.mrb[20].mxu1 %vm183_vm1, %v4660_v54 }
  0x8d   : > { %3886 = vmatmul.mubr.msk.bf16.gmra.mrb[4].mxu0 %vm183_vm1, %v4612_v59  ;;  %3735 = vmatprep.mubr.msk.bf16.mxu1 %vm183_vm1, %v4662_v55 }
  0x8e   : > { %3889 = vmatprep.mubr.msk.bf16.mxu0 %vm183_vm1, %v4616_v61 }
  0x94   : > { %3736 = vmatmul.mubr.msk.bf16.gmra.mrb[24].mxu1 %vm183_vm1, %v4672_v9 }
  0x95   : > { %3890 = vmatmul.mubr.msk.bf16.gmra.mrb[8].mxu0 %vm183_vm1, %v4628_v14  ;;  %3739 = vmatprep.mubr.msk.bf16.mxu1 %vm183_vm1, %v4674_v10 }
  0x96   : > { %3893 = vmatprep.mubr.msk.bf16.mxu0 %vm183_vm1, %v4632_v18 }
  0x9c   : > { %3740 = vmatmul.mubr.msk.bf16.gmra.mrb[28].mxu1 %vm183_vm1, %v4684_v28 }
  0x9d   : > { %3894 = vmatmul.mubr.msk.bf16.gmra.mrb[12].mxu0 %vm183_vm1, %v4642_v30  ;;  %3745 = vmatprep.mubr.msk.bf16.mxu1 %vm183_vm1, %v846_v29 }
  0x9e   : > { %3897 = vmatprep.mubr.msk.bf16.mxu0 %vm183_vm1, %v4644_v31 }
  0xa4   : > { %3746 = vmatmul.mubr.msk.bf16.vlgmr.msra.gmra.mrb[0].mxu1 %vm183_vm1, %v4487_v8  ;;  %v2019_v8 = vld [vmem:[#allocation2 + $0x180] sm:$0xff] }
  0xa5   : > { %3778 = vmatpush3.bf16.msra.mxu1 %v1207_v44  ;;  %3898 = vmatmul.mubr.msk.bf16.gmra.mrb[16].mxu0 %vm183_vm1, %v4660_v54  ;;  %v4713_v32 = vpack.c.bf16 %v2020_v26, %v2019_v8 }
  0xa6   : > { %3749 = vmatprep.mubr.msk.bf16.mxu1 %vm183_vm1, %v4503_v20  ;;  %3901 = vmatprep.mubr.msk.bf16.mxu0 %vm183_vm1, %v4662_v55 }
  0xa7   : > { %4244 = vmatprep.subr.msk.bf16.mxu1 %vm437_vm0, %v4301_v1  ;;  %v2021_v1 = vld [vmem:[#allocation2 + $0x198] sm:$0xff] }
  0xa8   : > { %v2038_v46 = vpack.c.bf16 %v2022_v45, %v2021_v1 }
  0xac   : > { %3750 = vmatmul.mubr.msk.bf16.gmra.mrb[4].mxu1 %vm183_vm1, %v4507_v22 }
  0xad   : > { %3902 = vmatmul.mubr.msk.bf16.gmra.mrb[20].mxu0 %vm183_vm1, %v4672_v9  ;;  %3753 = vmatprep.mubr.msk.bf16.mxu1 %vm183_vm1, %v4528_v34 }
  0xae   : > { %3905 = vmatprep.mubr.msk.bf16.mxu0 %vm183_vm1, %v4674_v10 }
  0xb4   : > { %3754 = vmatmul.mubr.msk.bf16.gmra.mrb[8].mxu1 %vm183_vm1, %v4532_v36 }
  0xb5   : > { %3906 = vmatmul.mubr.msk.bf16.gmra.mrb[24].mxu0 %vm183_vm1, %v4684_v28  ;;  %3757 = vmatprep.mubr.msk.bf16.mxu1 %vm183_vm1, %v4544_v51 }
  0xb6   : > { %3909 = vmatprep.mubr.msk.bf16.mxu0 %vm183_vm1, %v4713_v32 }
  0xbc   : > { %3758 = vmatmul.mubr.msk.bf16.gmra.mrb[12].mxu1 %vm183_vm1, %v4548_v53 }
  0xbd   : > { %3910 = vmatmul.mubr.msk.bf16.gmra.mrb[28].mxu0 %vm183_vm1, %v2038_v46  ;;  %3761 = vmatprep.mubr.msk.bf16.mxu1 %vm183_vm1, %v4560_v2 }
  0xbe   : > { %3915 = vmatprep.mubr.msk.bf16.mxu0 %vm183_vm1, %v4417_v40  ;;  %v2314_v40 = vld [vmem:[#allocation2 + $0x189] sm:$0xff] }
  0xc4   : > { %3762 = vmatmul.mubr.msk.bf16.gmra.mrb[16].mxu1 %vm183_vm1, %v4562_v5 }
  0xc5   : > { %3916 = vmatmul.mubr.msk.bf16.vlgmr.msra.gmra.mrb[0].mxu0 %vm183_vm1, %v4421_v42  ;;  %3765 = vmatprep.mubr.msk.bf16.mxu1 %vm183_vm1, %v4573_v17 }
  0xc6   : > { %3948 = vmatpush3.bf16.msra.mxu0 %v2678_v24  ;;  %3919 = vmatprep.mubr.msk.bf16.mxu0 %vm183_vm1, %v4445_v49  ;;  %v2315_v49 = vld [vmem:[#allocation2 + $0x199] sm:$0xff] }
  0xcc   : > { %3766 = vmatmul.mubr.msk.bf16.gmra.mrb[20].mxu1 %vm183_vm1, %v4579_v25 }
  0xcd   : > { %3920 = vmatmul.mubr.msk.bf16.gmra.mrb[4].mxu0 %vm183_vm1, %v4447_v50  ;;  %3769 = vmatprep.mubr.msk.bf16.mxu1 %vm183_vm1, %v4598_v39  ;;  %v2316_v50 = vld [vmem:[#allocation2 + $0x1a1] sm:$0xff] }
  0xce   : > { %3923 = vmatprep.mubr.msk.bf16.mxu0 %vm183_vm1, %v4473_v63  ;;  %v2332_v63 = vpack.c.bf16 %v2316_v50, %v2315_v49 }
  0xd4   : > { %3770 = vmatmul.mubr.msk.bf16.gmra.mrb[24].mxu1 %vm183_vm1, %v4602_v43 }
  0xd5   : > { %3924 = vmatmul.mubr.msk.bf16.gmra.mrb[8].mxu0 %vm183_vm1, %v4475_v0  ;;  %3773 = vmatprep.mubr.msk.bf16.mxu1 %vm183_vm1, %v4614_v60  ;;  %v1418_v0 = vld [vmem:[#allocation2 + $0xd9] sm:$0xff] }
  0xd6   : > { %3927 = vmatprep.mubr.msk.bf16.mxu0 %vm183_vm1, %v4485_v7  ;;  %v1419_v7 = vld [vmem:[#allocation2 + $0xe1] sm:$0xff] }
  0xdc   : > { %3774 = vmatmul.mubr.msk.bf16.gmra.mrb[28].mxu1 %vm183_vm1, %v4618_v4 }
  0xdd   : > { %3928 = vmatmul.mubr.msk.bf16.gmra.mrb[12].mxu0 %vm183_vm1, %v4501_v19  ;;  %3779 = vmatprep.mubr.msk.bf16.mxu1 %vm183_vm1, %v4571_v16  ;;  %v1442_v19 = vpack.c.bf16 %v1419_v7, %v1418_v0 }
  0xde   : > { %3931 = vmatprep.mubr.msk.bf16.mxu0 %vm183_vm1, %v4505_v21 }
  0xe4   : > { %3780 = vmatmul.mubr.msk.bf16.vlgmr.msra.gmra.mrb[0].mxu1 %vm183_vm1, %v4577_v23 }
  0xe5   : > { %3982 = vmatpush3.bf16.msra.mxu1 %v4309_v3  ;;  %3932 = vmatmul.mubr.msk.bf16.gmra.mrb[16].mxu0 %vm183_vm1, %v4526_v33  ;;  %v2313_v3 = vld [vmem:[#allocation2 + $0x181] sm:$0xff] }
  0xe6   : > { %3783 = vmatprep.mubr.msk.bf16.mxu1 %vm183_vm1, %v4596_v38  ;;  %3935 = vmatprep.mubr.msk.bf16.mxu0 %vm183_vm1, %v4530_v35  ;;  %v2331_v42 = vpack.c.bf16 %v2314_v40, %v2313_v3 }
  0xec   : > { %3784 = vmatmul.mubr.msk.bf16.gmra.mrb[4].mxu1 %vm183_vm1, %v4600_v41 }
  0xed   : > { %3936 = vmatmul.mubr.msk.bf16.gmra.mrb[20].mxu0 %vm183_vm1, %v4542_v48  ;;  %3787 = vmatprep.mubr.msk.bf16.mxu1 %vm183_vm1, %v4612_v59 }
  0xee   : > { %3939 = vmatprep.mubr.msk.bf16.mxu0 %vm183_vm1, %v4546_v52 }
  0xf4   : > { %3788 = vmatmul.mubr.msk.bf16.gmra.mrb[8].mxu1 %vm183_vm1, %v4616_v61 }
  0xf5   : > { %3940 = vmatmul.mubr.msk.bf16.gmra.mrb[24].mxu0 %vm183_vm1, %v4558_v62  ;;  %3791 = vmatprep.mubr.msk.bf16.mxu1 %vm183_vm1, %v4628_v14 }
  0xf6   : > { %3943 = vmatprep.mubr.msk.bf16.mxu0 %vm183_vm1, %v2331_v42 }
  0xfc   : > { %3792 = vmatmul.mubr.msk.bf16.gmra.mrb[12].mxu1 %vm183_vm1, %v4632_v18 }
  0xfd   : > { %3944 = vmatmul.mubr.msk.bf16.gmra.mrb[28].mxu0 %vm183_vm1, %v2332_v63  ;;  %3795 = vmatprep.mubr.msk.bf16.mxu1 %vm183_vm1, %v4642_v30 }
  0xfe   : > { %3949 = vmatprep.mubr.msk.bf16.mxu0 %vm183_vm1, %v4503_v20  ;;  %v2609_v20 = vld [vmem:[#allocation2 + $0x19a] sm:$0xff] }
 0x104   : > { %3796 = vmatmul.mubr.msk.bf16.gmra.mrb[16].mxu1 %vm183_vm1, %v4644_v31 }
 0x105   : > { %3950 = vmatmul.mubr.msk.bf16.vlgmr.msra.gmra.mrb[0].mxu0 %vm183_vm1, %v4507_v22  ;;  %3799 = vmatprep.mubr.msk.bf16.mxu1 %vm183_vm1, %v4660_v54 }
 0x106   : > { %3953 = vmatprep.mubr.msk.bf16.mxu0 %vm183_vm1, %v4528_v34 }
 0x10c   : > { %3800 = vmatmul.mubr.msk.bf16.gmra.mrb[20].mxu1 %vm183_vm1, %v4662_v55 }
 0x10d   : > { %3954 = vmatmul.mubr.msk.bf16.gmra.mrb[4].mxu0 %vm183_vm1, %v4532_v36  ;;  %3803 = vmatprep.mubr.msk.bf16.mxu1 %vm183_vm1, %v4672_v9 }
 0x10e   : > { %3957 = vmatprep.mubr.msk.bf16.mxu0 %vm183_vm1, %v4544_v51 }
 0x114   : > { %3804 = vmatmul.mubr.msk.bf16.gmra.mrb[24].mxu1 %vm183_vm1, %v4674_v10 }
 0x115   : > { %3958 = vmatmul.mubr.msk.bf16.gmra.mrb[8].mxu0 %vm183_vm1, %v4548_v53  ;;  %3807 = vmatprep.mubr.msk.bf16.mxu1 %vm183_vm1, %v4684_v28 }
 0x116   : > { %3961 = vmatprep.mubr.msk.bf16.mxu0 %vm183_vm1, %v4560_v2 }
 0x11c   : > { %3808 = vmatmul.mubr.msk.bf16.gmra.mrb[28].mxu1 %vm183_vm1, %v4713_v32 }
 0x11d   : > { %3962 = vmatmul.mubr.msk.bf16.gmra.mrb[12].mxu0 %vm183_vm1, %v4562_v5  ;;  %3829 = vmatprep.mubr.msk.bf16.mxu1 %vm183_vm1, %v1442_v19 }
 0x11e   : > { %3965 = vmatprep.mubr.msk.bf16.mxu0 %vm183_vm1, %v4573_v17 }
 0x124   : > { %3830 = vmatmul.mubr.msk.bf16.vlgmr.msra.gmra.mrb[16].mxu1 %vm183_vm1, %v4505_v21  ;;  %v2610_v21 = vld [vmem:[#allocation2 + $0x1a2] sm:$0xff] }
 0x125   : > { %3966 = vmatmul.mubr.msk.bf16.gmra.mrb[16].mxu0 %vm183_vm1, %v4579_v25  ;;  %3833 = vmatprep.mubr.msk.bf16.mxu1 %vm183_vm1, %v4526_v33  ;;  %v2626_v22 = vpack.c.bf16 %v2610_v21, %v2609_v20 }
 0x126   : > { %3969 = vmatprep.mubr.msk.bf16.mxu0 %vm183_vm1, %v4598_v39 }
 0x12c   : > { %3834 = vmatmul.mubr.msk.bf16.gmra.mrb[20].mxu1 %vm183_vm1, %v4530_v35 }
 0x12d   : > { %3970 = vmatmul.mubr.msk.bf16.gmra.mrb[20].mxu0 %vm183_vm1, %v4602_v43  ;;  %3837 = vmatprep.mubr.msk.bf16.mxu1 %vm183_vm1, %v4542_v48 }
 0x12e   : > { %3973 = vmatprep.mubr.msk.bf16.mxu0 %vm183_vm1, %v4614_v60 }
 0x134   : > { %3838 = vmatmul.mubr.msk.bf16.gmra.mrb[24].mxu1 %vm183_vm1, %v4546_v52 }
 0x135   : > { %3974 = vmatmul.mubr.msk.bf16.gmra.mrb[24].mxu0 %vm183_vm1, %v4618_v4  ;;  %3841 = vmatprep.mubr.msk.bf16.mxu1 %vm183_vm1, %v4558_v62 }
 0x136   : > { %3977 = vmatprep.mubr.msk.bf16.mxu0 %vm183_vm1, %v4630_v15 }
 0x13c   : > { %3842 = vmatmul.mubr.msk.bf16.gmra.mrb[28].mxu1 %vm183_vm1, %v2331_v42 }
 0x13d   : > { %3978 = vmatmul.mubr.msk.bf16.gmra.mrb[28].mxu0 %vm183_vm1, %v2626_v22 }
 0x1b7   : > { %v3781_v33 = vpop.f32.mrb[0].mxu1 }
 0x1b8   : > { %v1243_v34 = vpop.f32.mrb[1].mxu1 }
 0x1b9   : > { %v3782_v35 = vpop.f32.mrb[2].mxu1 }
 0x1ba   : > { %v1246_v36 = vpop.f32.mrb[3].mxu1 }
 0x1bf   : > { %v3785_v48 = vpop.f32.mrb[4].mxu1 }
 0x1c0   : > { %v1259_v51 = vpop.f32.mrb[5].mxu1 }
 0x1c1   : > { %v3786_v52 = vpop.f32.mrb[6].mxu1 }
 0x1c2   : > { %v1262_v53 = vpop.f32.mrb[7].mxu1 }
 0x1c7   : > { %v4851_v62 = vpop.f32.mrb[8].mxu1 }
 0x1c8   : > { %v4853_v2 = vpop.f32.mrb[9].mxu1 }
 0x1c9   : > { %v4855_v5 = vpop.f32.mrb[10].mxu1 }
 0x1ca   : > { %v4857_v16 = vpop.f32.mrb[11].mxu1 }
 0x1cf   : > { %v4859_v17 = vpop.f32.mrb[12].mxu1 }
 0x1d0   : > { %v4861_v23 = vpop.f32.mrb[13].mxu1 }
 0x1d1   : > { %v4863_v25 = vpop.f32.mrb[14].mxu1 }
 0x1d2   : > { %v4865_v38 = vpop.f32.mrb[15].mxu1 }
 0x1d8   : > { %v3951_v39 = vpop.f32.mrb[0].mxu0 }
 0x1d9   : > { %v3983_v41 = vadd.f32 %v3951_v39, %v3781_v33  ;;  %v2714_v43 = vpop.f32.mrb[1].mxu0 }
 0x1da   : > { %v3984_v59 = vadd.f32 %v2714_v43, %v1243_v34  ;;  %v3952_v60 = vpop.f32.mrb[2].mxu0 }
 0x1db   : > { %v3492_v61 = vpack.c.bf16 %v3983_v41, %v3983_v41  ;;  %v3985_v4 = vadd.f32 %v3952_v60, %v3782_v35  ;;  %v2717_v14 = vpop.f32.mrb[3].mxu0  ;;  %v2945_v31 = vmul.f32 %v3983_v41, %v3983_v41  ;;  %v2876_v6 = vsel %vm183_vm1, %v3983_v41, 0.0 }
 0x1dc   : > { %v2943_v15 = vmul.f32 %v3984_v59, %v3984_v59  ;;  %v3490_v18 = vpack.c.bf16 %v3984_v59, %v3984_v59  ;;  %v3986_v30 = vadd.f32 %v2717_v14, %v1246_v36  ;;  %v2873_v47 = vsel %vm183_vm1, %v3984_v59, 0.0 }
 0x1dd   : > { %3176 = vst.msk [vmem:[%s4871_s14 + $0x8] sm:$0xf] %vm3173_vm4, %v3492_v61  ;;  %v3493_v37 = vpack.c.bf16 %v3985_v4, %v3985_v4  ;;  %v2946_v57 = vmul.f32 %v3985_v4, %v3985_v4  ;;  %v2978_v29 = vsel %vm183_vm1, %v2945_v31, 0.0  ;;  %v2878_v26 = vsel %vm183_vm1, %v3985_v4, 0.0 }
 0x1de   : > { %3174 = vst.msk [vmem:[%s4871_s14] sm:$0xf] %vm3173_vm4, %v3490_v18  ;;  %v2874_v54 = vsel %vm183_vm1, %v3986_v30, 0.0  ;;  %v2944_v55 = vmul.f32 %v3986_v30, %v3986_v30  ;;  %v3491_v56 = vpack.c.bf16 %v3986_v30, %v3986_v30  ;;  %v2975_v9 = vsel %vm183_vm1, %v2943_v15, 0.0 }
 0x1df   : > { %3177 = vst.msk [vmem:[%s4871_s14 + $0xc] sm:$0xf] %vm3173_vm4, %v3493_v37  ;;  %v2875_v58 = vadd.f32 %v2874_v54, %v2873_v47  ;;  %v2980_v32 = vsel %vm183_vm1, %v2946_v57, 0.0 }
 0x1e0   : > { %v2976_v10 = vsel %vm183_vm1, %v2944_v55, 0.0  ;;  %3175 = vst.msk [vmem:[%s4871_s14 + $0x4] sm:$0xf] %vm3173_vm4, %v3491_v56  ;;  %v3955_v11 = vpop.f32.mrb[4].mxu0 }
 0x1e1   : > { %v2877_v12 = vadd.f32 %v2876_v6, %v2875_v58  ;;  %v2977_v13 = vadd.f32 %v2976_v10, %v2975_v9  ;;  %v3987_v27 = vadd.f32 %v3955_v11, %v3785_v48  ;;  %v2730_v28 = vpop.f32.mrb[5].mxu0 }
 0x1e2   : > { %v3988_v44 = vadd.f32 %v2730_v28, %v1259_v51  ;;  %v3956_v8 = vpop.f32.mrb[6].mxu0 }
 0x1e3   : > { %v2979_v1 = vadd.f32 %v2978_v29, %v2977_v13  ;;  %v3496_v45 = vpack.c.bf16 %v3987_v27, %v3987_v27  ;;  %v2733_v46 = vpop.f32.mrb[7].mxu0  ;;  %v2879_v24 = vadd.f32 %v2878_v26, %v2877_v12  ;;  %v3989_v50 = vadd.f32 %v3956_v8, %v3786_v52 }
 0x1e4   : > { %v2880_v3 = vsel %vm183_vm1, %v3988_v44, 0.0  ;;  %v2947_v40 = vmul.f32 %v3988_v44, %v3988_v44  ;;  %v3494_v42 = vpack.c.bf16 %v3988_v44, %v3988_v44  ;;  %v3990_v63 = vadd.f32 %v2733_v46, %v1262_v53 }
 0x1e5   : > { %3180 = vst.msk [vmem:[%s4871_s14 + $0x18] sm:$0xf] %vm3173_vm4, %v3496_v45  ;;  %v2981_v49 = vadd.f32 %v2980_v32, %v2979_v1  ;;  %v2881_v0 = vadd.f32 %v2880_v3, %v2879_v24  ;;  %v2949_v19 = vmul.f32 %v3987_v27, %v3987_v27  ;;  %v3497_v21 = vpack.c.bf16 %v3989_v50, %v3989_v50 }
 0x1e6   : > { %v2982_v7 = vsel %vm183_vm1, %v2947_v40, 0.0  ;;  %3178 = vst.msk [vmem:[%s4871_s14 + $0x10] sm:$0xf] %vm3173_vm4, %v3494_v42  ;;  %v2882_v22 = vsel %vm183_vm1, %v3990_v63, 0.0  ;;  %v2948_v33 = vmul.f32 %v3990_v63, %v3990_v63  ;;  %v3495_v34 = vpack.c.bf16 %v3990_v63, %v3990_v63 }
 0x1e7   : > { %v2983_v20 = vadd.f32 %v2982_v7, %v2981_v49  ;;  %3181 = vst.msk [vmem:[%s4871_s14 + $0x1c] sm:$0xf] %vm3173_vm4, %v3497_v21  ;;  %v2883_v36 = vadd.f32 %v2882_v22, %v2881_v0  ;;  %v2884_v52 = vsel %vm183_vm1, %v3987_v27, 0.0  ;;  %v2950_v53 = vmul.f32 %v3989_v50, %v3989_v50 }
 0x1e8   : > { %v3959_v35 = vpop.f32.mrb[8].mxu0  ;;  %v2984_v39 = vsel %vm183_vm1, %v2948_v33, 0.0  ;;  %3179 = vst.msk [vmem:[%s4871_s14 + $0x14] sm:$0xf] %vm3173_vm4, %v3495_v34  ;;  %v2986_v59 = vsel %vm183_vm1, %v2949_v19, 0.0  ;;  %v2886_v60 = vsel %vm183_vm1, %v3989_v50, 0.0 }
 0x1e9   : > { %v3991_v48 = vadd.f32 %v3959_v35, %v4851_v62  ;;  %v2746_v51 = vpop.f32.mrb[9].mxu0  ;;  %v2885_v61 = vadd.f32 %v2884_v52, %v2883_v36  ;;  %v2985_v4 = vadd.f32 %v2984_v39, %v2983_v20 }
 0x1ea   : > { %v3992_v41 = vadd.f32 %v2746_v51, %v4853_v2  ;;  %v3960_v43 = vpop.f32.mrb[10].mxu0  ;;  %v2988_v2 = vsel %vm183_vm1, %v2950_v53, 0.0 }
 0x1eb   : > { %v2749_v62 = vpop.f32.mrb[11].mxu0  ;;  %v3500_v14 = vpack.c.bf16 %v3991_v48, %v3991_v48  ;;  %v2987_v31 = vadd.f32 %v2986_v59, %v2985_v4  ;;  %v2887_v37 = vadd.f32 %v2886_v60, %v2885_v61  ;;  %v3993_v47 = vadd.f32 %v3960_v43, %v4855_v5 }
 0x1ec   : > { %v2888_v15 = vsel %vm183_vm1, %v3992_v41, 0.0  ;;  %v2951_v18 = vmul.f32 %v3992_v41, %v3992_v41  ;;  %v3498_v30 = vpack.c.bf16 %v3992_v41, %v3992_v41  ;;  %v3994_v55 = vadd.f32 %v2749_v62, %v4857_v16 }
 0x1ed   : > { %3184 = vst.msk [vmem:[%s4871_s14 + $0x28] sm:$0xf] %vm3173_vm4, %v3500_v14  ;;  %v2953_v56 = vmul.f32 %v3991_v48, %v3991_v48  ;;  %v2889_v57 = vadd.f32 %v2888_v15, %v2887_v37  ;;  %v2989_v58 = vadd.f32 %v2988_v2, %v2987_v31  ;;  %v3501_v6 = vpack.c.bf16 %v3993_v47, %v3993_v47 }
 0x1ee   : > { %v2990_v54 = vsel %vm183_vm1, %v2951_v18, 0.0  ;;  %3182 = vst.msk [vmem:[%s4871_s14 + $0x20] sm:$0xf] %vm3173_vm4, %v3498_v30  ;;  %v2890_v9 = vsel %vm183_vm1, %v3994_v55, 0.0  ;;  %v2952_v10 = vmul.f32 %v3994_v55, %v3994_v55  ;;  %v3499_v5 = vpack.c.bf16 %v3994_v55, %v3994_v55 }
 0x1ef   : > { %v2991_v12 = vadd.f32 %v2990_v54, %v2989_v58  ;;  %v2891_v13 = vadd.f32 %v2890_v9, %v2889_v57  ;;  %v2892_v29 = vsel %vm183_vm1, %v3991_v48, 0.0  ;;  %v2954_v44 = vmul.f32 %v3993_v47, %v3993_v47  ;;  %3185 = vst.msk [vmem:[%s4871_s14 + $0x2c] sm:$0xf] %vm3173_vm4, %v3501_v6 }
 0x1f0   : > { %v3963_v11 = vpop.f32.mrb[12].mxu0  ;;  %v2992_v16 = vsel %vm183_vm1, %v2952_v10, 0.0  ;;  %3183 = vst.msk [vmem:[%s4871_s14 + $0x24] sm:$0xf] %vm3173_vm4, %v3499_v5  ;;  %v2994_v32 = vsel %vm183_vm1, %v2953_v56, 0.0  ;;  %v2894_v1 = vsel %vm183_vm1, %v3993_v47, 0.0 }
 0x1f1   : > { %v3995_v27 = vadd.f32 %v3963_v11, %v4859_v17  ;;  %v2762_v28 = vpop.f32.mrb[13].mxu0  ;;  %v2893_v17 = vadd.f32 %v2892_v29, %v2891_v13  ;;  %v2993_v45 = vadd.f32 %v2992_v16, %v2991_v12 }
 0x1f2   : > { %v3996_v8 = vadd.f32 %v2762_v28, %v4861_v23  ;;  %v3964_v26 = vpop.f32.mrb[14].mxu0  ;;  %v2996_v23 = vsel %vm183_vm1, %v2954_v44, 0.0 }
 0x1f3   : > { %v2765_v46 = vpop.f32.mrb[15].mxu0  ;;  %v3504_v24 = vpack.c.bf16 %v3995_v27, %v3995_v27  ;;  %v2995_v49 = vadd.f32 %v2994_v32, %v2993_v45  ;;  %v2895_v50 = vadd.f32 %v2894_v1, %v2893_v17  ;;  %v3997_v63 = vadd.f32 %v3964_v26, %v4863_v25 }
 0x1f4   : > { %v2896_v3 = vsel %vm183_vm1, %v3996_v8, 0.0  ;;  %v2955_v40 = vmul.f32 %v3996_v8, %v3996_v8  ;;  %v3502_v42 = vpack.c.bf16 %v3996_v8, %v3996_v8  ;;  %v3998_v7 = vadd.f32 %v2765_v46, %v4865_v38 }
 0x1f5   : > { %3188 = vst.msk [vmem:[%s4871_s14 + $0x38] sm:$0xf] %vm3173_vm4, %v3504_v24  ;;  %v2957_v19 = vmul.f32 %v3995_v27, %v3995_v27  ;;  %v2897_v20 = vadd.f32 %v2896_v3, %v2895_v50  ;;  %v2997_v21 = vadd.f32 %v2996_v23, %v2995_v49  ;;  %v3505_v33 = vpack.c.bf16 %v3997_v63, %v3997_v63 }
 0x1f6   : > { %v2998_v0 = vsel %vm183_vm1, %v2955_v40, 0.0  ;;  %3186 = vst.msk [vmem:[%s4871_s14 + $0x30] sm:$0xf] %vm3173_vm4, %v3502_v42  ;;  %v2898_v34 = vsel %vm183_vm1, %v3998_v7, 0.0  ;;  %v2956_v25 = vmul.f32 %v3998_v7, %v3998_v7  ;;  %v3503_v35 = vpack.c.bf16 %v3998_v7, %v3998_v7 }
 0x1f7   : > { %v3831_v22 = vpop.f32.mrb[16].mxu1  ;;  %v2999_v51 = vadd.f32 %v2998_v0, %v2997_v21  ;;  %v2899_v52 = vadd.f32 %v2898_v34, %v2897_v20  ;;  %v2900_v38 = vsel %vm183_vm1, %v3995_v27, 0.0  ;;  %v2958_v43 = vmul.f32 %v3997_v63, %v3997_v63  ;;  %3189 = vst.msk [vmem:[%s4871_s14 + $0x3c] sm:$0xf] %vm3173_vm4, %v3505_v33 }
 0x1f8   : > { %v1601_v36 = vpop.f32.mrb[17].mxu1  ;;  %v3967_v48 = vpop.f32.mrb[16].mxu0  ;;  %v3000_v59 = vsel %vm183_vm1, %v2956_v25, 0.0  ;;  %3187 = vst.msk [vmem:[%s4871_s14 + $0x34] sm:$0xf] %vm3173_vm4, %v3503_v35  ;;  %v3002_v62 = vsel %vm183_vm1, %v2957_v19, 0.0 }
 0x1f9   : > { %v3999_v53 = vadd.f32 %v3967_v48, %v3831_v22  ;;  %v3832_v39 = vpop.f32.mrb[18].mxu1  ;;  %v2778_v41 = vpop.f32.mrb[17].mxu0  ;;  %v2902_v14 = vsel %vm183_vm1, %v3997_v63, 0.0  ;;  %v2901_v15 = vadd.f32 %v2900_v38, %v2899_v52  ;;  %v3001_v18 = vadd.f32 %v3000_v59, %v2999_v51 }
 0x1fa   : > { %v4000_v60 = vadd.f32 %v2778_v41, %v1601_v36  ;;  %v1604_v61 = vpop.f32.mrb[19].mxu1  ;;  %v3968_v4 = vpop.f32.mrb[18].mxu0  ;;  %v3004_v57 = vsel %vm183_vm1, %v2958_v43, 0.0 }
 0x1fb   : > { %v2781_v30 = vpop.f32.mrb[19].mxu0  ;;  %v3508_v31 = vpack.c.bf16 %v3999_v53, %v3999_v53  ;;  %v3003_v54 = vadd.f32 %v3002_v62, %v3001_v18  ;;  %v2903_v55 = vadd.f32 %v2902_v14, %v2901_v15  ;;  %v4001_v56 = vadd.f32 %v3968_v4, %v3832_v39 }
 0x1fc   : > { %v2904_v37 = vsel %vm183_vm1, %v4000_v60, 0.0  ;;  %v2959_v47 = vmul.f32 %v4000_v60, %v4000_v60  ;;  %v3506_v2 = vpack.c.bf16 %v4000_v60, %v4000_v60  ;;  %v4002_v6 = vadd.f32 %v2781_v30, %v1604_v61 }
 0x1fd   : > { %3192 = vst.msk [vmem:[%s4871_s14 + $0x48] sm:$0xf] %vm3173_vm4, %v3508_v31  ;;  %v2961_v9 = vmul.f32 %v3999_v53, %v3999_v53  ;;  %v2905_v10 = vadd.f32 %v2904_v37, %v2903_v55  ;;  %v3005_v5 = vadd.f32 %v3004_v57, %v3003_v54  ;;  %v3509_v12 = vpack.c.bf16 %v4001_v56, %v4001_v56 }
 0x1fe   : > { %v3006_v58 = vsel %vm183_vm1, %v2959_v47, 0.0  ;;  %3190 = vst.msk [vmem:[%s4871_s14 + $0x40] sm:$0xf] %vm3173_vm4, %v3506_v2  ;;  %v2906_v13 = vsel %vm183_vm1, %v4002_v6, 0.0  ;;  %v2960_v27 = vmul.f32 %v4002_v6, %v4002_v6  ;;  %v3507_v28 = vpack.c.bf16 %v4002_v6, %v4002_v6 }
 0x1ff   : > { %v3835_v11 = vpop.f32.mrb[20].mxu1  ;;  %v3007_v16 = vadd.f32 %v3006_v58, %v3005_v5  ;;  %v2907_v8 = vadd.f32 %v2906_v13, %v2905_v10  ;;  %v2908_v17 = vsel %vm183_vm1, %v3999_v53, 0.0  ;;  %v2962_v45 = vmul.f32 %v4001_v56, %v4001_v56  ;;  %3193 = vst.msk [vmem:[%s4871_s14 + $0x4c] sm:$0xf] %vm3173_vm4, %v3509_v12 }
 0x200   : > { %v1617_v29 = vpop.f32.mrb[21].mxu1  ;;  %v3971_v44 = vpop.f32.mrb[20].mxu0  ;;  %v3008_v46 = vsel %vm183_vm1, %v2960_v27, 0.0  ;;  %3191 = vst.msk [vmem:[%s4871_s14 + $0x44] sm:$0xf] %vm3173_vm4, %v3507_v28  ;;  %v3010_v42 = vsel %vm183_vm1, %v2961_v9, 0.0 }
 0x201   : > { %v4003_v26 = vadd.f32 %v3971_v44, %v3835_v11  ;;  %v3836_v32 = vpop.f32.mrb[22].mxu1  ;;  %v2794_v1 = vpop.f32.mrb[21].mxu0  ;;  %v2910_v49 = vsel %vm183_vm1, %v4001_v56, 0.0  ;;  %v2909_v50 = vadd.f32 %v2908_v17, %v2907_v8  ;;  %v3009_v63 = vadd.f32 %v3008_v46, %v3007_v16 }
 0x202   : > { %v4004_v24 = vadd.f32 %v2794_v1, %v1617_v29  ;;  %v1620_v3 = vpop.f32.mrb[23].mxu1  ;;  %v3972_v40 = vpop.f32.mrb[22].mxu0  ;;  %v3012_v34 = vsel %vm183_vm1, %v2962_v45, 0.0 }
 0x203   : > { %v2797_v23 = vpop.f32.mrb[23].mxu0  ;;  %v3512_v0 = vpack.c.bf16 %v4003_v26, %v4003_v26  ;;  %v3011_v21 = vadd.f32 %v3010_v42, %v3009_v63  ;;  %v2911_v22 = vadd.f32 %v2910_v49, %v2909_v50  ;;  %v4005_v33 = vadd.f32 %v3972_v40, %v3836_v32 }
 0x204   : > { %v2912_v7 = vsel %vm183_vm1, %v4004_v24, 0.0  ;;  %v2963_v19 = vmul.f32 %v4004_v24, %v4004_v24  ;;  %v3510_v20 = vpack.c.bf16 %v4004_v24, %v4004_v24  ;;  %v4006_v35 = vadd.f32 %v2797_v23, %v1620_v3 }
 0x205   : > { %3196 = vst.msk [vmem:[%s4871_s14 + $0x58] sm:$0xf] %vm3173_vm4, %v3512_v0  ;;  %v2965_v36 = vmul.f32 %v4003_v26, %v4003_v26  ;;  %v2913_v48 = vadd.f32 %v2912_v7, %v2911_v22  ;;  %v3013_v51 = vadd.f32 %v3012_v34, %v3011_v21  ;;  %v3513_v53 = vpack.c.bf16 %v4005_v33, %v4005_v33 }
 0x206   : > { %v3014_v25 = vsel %vm183_vm1, %v2963_v19, 0.0  ;;  %3194 = vst.msk [vmem:[%s4871_s14 + $0x50] sm:$0xf] %vm3173_vm4, %v3510_v20  ;;  %v2914_v39 = vsel %vm183_vm1, %v4006_v35, 0.0  ;;  %v2964_v41 = vmul.f32 %v4006_v35, %v4006_v35  ;;  %v3511_v38 = vpack.c.bf16 %v4006_v35, %v4006_v35 }
 0x207   : > { %v3839_v52 = vpop.f32.mrb[24].mxu1  ;;  %v3015_v60 = vadd.f32 %v3014_v25, %v3013_v51  ;;  %v2915_v61 = vadd.f32 %v2914_v39, %v2913_v48  ;;  %v2916_v15 = vsel %vm183_vm1, %v4003_v26, 0.0  ;;  %v2966_v18 = vmul.f32 %v4005_v33, %v4005_v33  ;;  %3197 = vst.msk [vmem:[%s4871_s14 + $0x5c] sm:$0xf] %vm3173_vm4, %v3513_v53 }
 0x208   : > { %v1633_v43 = vpop.f32.mrb[25].mxu1  ;;  %v3975_v59 = vpop.f32.mrb[24].mxu0  ;;  %v3016_v30 = vsel %vm183_vm1, %v2964_v41, 0.0  ;;  %3195 = vst.msk [vmem:[%s4871_s14 + $0x54] sm:$0xf] %vm3173_vm4, %v3511_v38  ;;  %v3018_v2 = vsel %vm183_vm1, %v2965_v36, 0.0 }
 0x209   : > { %v4007_v4 = vadd.f32 %v3975_v59, %v3839_v52  ;;  %v3840_v62 = vpop.f32.mrb[26].mxu1  ;;  %v2810_v14 = vpop.f32.mrb[25].mxu0  ;;  %v2918_v54 = vsel %vm183_vm1, %v4005_v33, 0.0  ;;  %v2917_v55 = vadd.f32 %v2916_v15, %v2915_v61  ;;  %v3017_v56 = vadd.f32 %v3016_v30, %v3015_v60 }
 0x20a   : > { %v4008_v31 = vadd.f32 %v2810_v14, %v1633_v43  ;;  %v1636_v37 = vpop.f32.mrb[27].mxu1  ;;  %v3976_v47 = vpop.f32.mrb[26].mxu0  ;;  %v3020_v13 = vsel %vm183_vm1, %v2966_v18, 0.0 }
 0x20b   : > { %v2813_v57 = vpop.f32.mrb[27].mxu0  ;;  %v3516_v58 = vpack.c.bf16 %v4007_v4, %v4007_v4  ;;  %v3019_v5 = vadd.f32 %v3018_v2, %v3017_v56  ;;  %v2919_v11 = vadd.f32 %v2918_v54, %v2917_v55  ;;  %v4009_v12 = vadd.f32 %v3976_v47, %v3840_v62 }
 0x20c   : > { %v2920_v6 = vsel %vm183_vm1, %v4008_v31, 0.0  ;;  %v2967_v9 = vmul.f32 %v4008_v31, %v4008_v31  ;;  %v3514_v10 = vpack.c.bf16 %v4008_v31, %v4008_v31  ;;  %v4010_v28 = vadd.f32 %v2813_v57, %v1636_v37 }
 0x20d   : > { %3200 = vst.msk [vmem:[%s4871_s14 + $0x68] sm:$0xf] %vm3173_vm4, %v3516_v58  ;;  %v2969_v29 = vmul.f32 %v4007_v4, %v4007_v4  ;;  %v2921_v44 = vadd.f32 %v2920_v6, %v2919_v11  ;;  %v3021_v16 = vadd.f32 %v3020_v13, %v3019_v5  ;;  %v3517_v26 = vpack.c.bf16 %v4009_v12, %v4009_v12 }
 0x20e   : > { %v3022_v27 = vsel %vm183_vm1, %v2967_v9, 0.0  ;;  %3198 = vst.msk [vmem:[%s4871_s14 + $0x60] sm:$0xf] %vm3173_vm4, %v3514_v10  ;;  %v2922_v32 = vsel %vm183_vm1, %v4010_v28, 0.0  ;;  %v2968_v1 = vmul.f32 %v4010_v28, %v4010_v28  ;;  %v3515_v17 = vpack.c.bf16 %v4010_v28, %v4010_v28 }
 0x20f   : > { %v3843_v8 = vpop.f32.mrb[28].mxu1  ;;  %v3023_v24 = vadd.f32 %v3022_v27, %v3021_v16  ;;  %v2923_v3 = vadd.f32 %v2922_v32, %v2921_v44  ;;  %v2924_v50 = vsel %vm183_vm1, %v4007_v4, 0.0  ;;  %v2970_v63 = vmul.f32 %v4009_v12, %v4009_v12  ;;  %3201 = vst.msk [vmem:[%s4871_s14 + $0x6c] sm:$0xf] %vm3173_vm4, %v3517_v26 }
 0x210   : > { %v1649_v45 = vpop.f32.mrb[29].mxu1  ;;  %v3979_v46 = vpop.f32.mrb[28].mxu0  ;;  %v3024_v23 = vsel %vm183_vm1, %v2968_v1, 0.0  ;;  %3199 = vst.msk [vmem:[%s4871_s14 + $0x64] sm:$0xf] %vm3173_vm4, %v3515_v17  ;;  %v3026_v20 = vsel %vm183_vm1, %v2969_v29, 0.0 }
 0x211   : > { %v4011_v40 = vadd.f32 %v3979_v46, %v3843_v8  ;;  %v3844_v42 = vpop.f32.mrb[30].mxu1  ;;  %v2826_v49 = vpop.f32.mrb[29].mxu0  ;;  %v2926_v21 = vsel %vm183_vm1, %v4009_v12, 0.0  ;;  %v2925_v22 = vadd.f32 %v2924_v50, %v2923_v3  ;;  %v3025_v33 = vadd.f32 %v3024_v23, %v3023_v24 }
 0x212   : > { %v4012_v0 = vadd.f32 %v2826_v49, %v1649_v45  ;;  %v1652_v7 = vpop.f32.mrb[31].mxu1  ;;  %v3980_v19 = vpop.f32.mrb[30].mxu0  ;;  %v3028_v39 = vsel %vm183_vm1, %v2970_v63, 0.0 }
 0x213   : > { %v2829_v34 = vpop.f32.mrb[31].mxu0  ;;  %v3520_v25 = vpack.c.bf16 %v4011_v40, %v4011_v40  ;;  %v3027_v51 = vadd.f32 %v3026_v20, %v3025_v33  ;;  %v2927_v52 = vadd.f32 %v2926_v21, %v2925_v22  ;;  %v4013_v53 = vadd.f32 %v3980_v19, %v3844_v42 }
 0x214   : > { %v2928_v35 = vsel %vm183_vm1, %v4012_v0, 0.0  ;;  %v2971_v36 = vmul.f32 %v4012_v0, %v4012_v0  ;;  %v3518_v48 = vpack.c.bf16 %v4012_v0, %v4012_v0  ;;  %v4014_v38 = vadd.f32 %v2829_v34, %v1652_v7 }
 0x215   : > { %3204 = vst.msk [vmem:[%s4871_s14 + $0x78] sm:$0xf] %vm3173_vm4, %v3520_v25  ;;  %v2973_v43 = vmul.f32 %v4011_v40, %v4011_v40  ;;  %v2929_v59 = vadd.f32 %v2928_v35, %v2927_v52  ;;  %v3029_v60 = vadd.f32 %v3028_v39, %v3027_v51  ;;  %v3521_v61 = vpack.c.bf16 %v4013_v53, %v4013_v53 }
 0x216   : > { %v3030_v41 = vsel %vm183_vm1, %v2971_v36, 0.0  ;;  %3202 = vst.msk [vmem:[%s4871_s14 + $0x70] sm:$0xf] %vm3173_vm4, %v3518_v48  ;;  %v2930_v4 = vsel %vm183_vm1, %v4014_v38, 0.0  ;;  %v2972_v62 = vmul.f32 %v4014_v38, %v4014_v38  ;;  %v3519_v14 = vpack.c.bf16 %v4014_v38, %v4014_v38 }
 0x217   : > { %v3031_v15 = vadd.f32 %v3030_v41, %v3029_v60  ;;  %v2931_v18 = vadd.f32 %v2930_v4, %v2929_v59  ;;  %v2932_v30 = vsel %vm183_vm1, %v4011_v40, 0.0  ;;  %v2974_v31 = vmul.f32 %v4013_v53, %v4013_v53  ;;  %3205 = vst.msk [vmem:[%s4871_s14 + $0x7c] sm:$0xf] %vm3173_vm4, %v3521_v61 }
 0x218   : > { %v3032_v37 = vsel %vm183_vm1, %v2972_v62, 0.0  ;;  %3203 = vst.msk [vmem:[%s4871_s14 + $0x74] sm:$0xf] %vm3173_vm4, %v3519_v14  ;;  %v3034_v54 = vsel %vm183_vm1, %v2973_v43, 0.0  ;;  %v2934_v55 = vsel %vm183_vm1, %v4013_v53, 0.0 }
 0x219   : > { %v2933_v47 = vadd.f32 %v2932_v30, %v2931_v18  ;;  %v3033_v2 = vadd.f32 %v3032_v37, %v3031_v15  ;;  %v3036_v58 = vsel %vm183_vm1, %v2974_v31, 0.0 }
 0x21b   : > { %v2935_v56 = vadd.f32 %v2934_v55, %v2933_v47  ;;  %v3035_v57 = vadd.f32 %v3034_v54, %v3033_v2 }
 0x21d   : > { %v2936_v6 = vrot.slane %v2935_v56, 4  ;;  %v3037_v9 = vadd.f32 %v3036_v58, %v3035_v57 }
 0x21f   : > { %v2937_v10 = vadd.f32 %v2936_v6, %v2935_v56  ;;  %v3038_v5 = vrot.slane %v3037_v9, 4 }
 0x221   : > { %v2938_v11 = vrot.slane %v2937_v10, 2  ;;  %v3039_v12 = vadd.f32 %v3038_v5, %v3037_v9 }
 0x223   : > { %v2939_v13 = vadd.f32 %v2938_v11, %v2937_v10  ;;  %v3040_v27 = vrot.slane %v3039_v12, 2 }
 0x225   : > { %v2940_v28 = vrot.slane %v2939_v13, 1  ;;  %v3041_v29 = vadd.f32 %v3040_v27, %v3039_v12 }
 0x227   : > { %v2941_v44 = vadd.f32 %v2940_v28, %v2939_v13  ;;  %v3042_v16 = vrot.slane %v3041_v29, 1 }
 0x229   : > { %2942 = vst.msk [vmem:[%s181_s18] sm:$0x1] %vm193_vm3, %v2941_v44  ;;  %v3043_v8 = vadd.f32 %v3042_v16, %v3041_v29 }
 0x22b   : > { %3044 = vst.msk [vmem:[%s181_s18 + $0x1] sm:$0x1] %vm193_vm3, %v3043_v8 }
 0x22c PF: > { %s14_s12 = sadd.s32 1, %s4264_s12  }
 0x22d   : > { %p11_p4 = scmp.ge.s32.totalorder %s14_s12, 4  }
 0x22f   :  { %13 = sbr.rel (!%p11_p4) target bundleno = 1 (0x1), region = 81 }

// kernel: basic_block.4
= control target key start
LH: loop header
LB: loop body
LE: loop exit
PB: predicated region body
PF: predicated region fallthrough
CT: control target
= control target key end

     0   :  { %s4574_s18 = smov 0   ;;  %s5361_s0 = inlined_call_operand.vmem [shape: bf16[2,16,16,8], index: 0, kind: input, shape index: {}]   ;;  %s5362_s1 = inlined_call_operand.vmem [shape: bf16[9,8,8], index: 1, kind: input, shape index: {}]   ;;  %s5363_s2 = inlined_call_operand.vmem [shape: f32[1,8], index: 2, kind: input, shape index: {}]   ;;  %s5364_s3 = inlined_call_operand.vmem [shape: f32[1,8], index: 3, kind: input, shape index: {}]   ;;  %s5365_s4 = inlined_call_operand.vmem [shape: bf16[2,16,16,8], index: 4, kind: output, shape index: {0}]   ;;  %s5366_s5 = inlined_call_operand.vmem [shape: f32[2,2,8], index: 5, kind: output, shape index: {1}]  }
   0x1 LB: > { %s3488_s19 = sadd.s32 4294967295, %s4541_s18   ;;  %p3492_p0 = scmp.ge.s32.totalorder %s4541_s18, 1  ;;  %s4541_s18 = sphi %s4574_s18, %s16_s18  }
   0x2   : > { %p190_p1 = scmp.lt.s32.totalorder %s4541_s18, 3 }
   0x4   : > { %p191_p2 = pnand %p3492_p0, %p190_p1 }
   0x5   : > { %v3500_v0 = vld [vmem:[%s5362_s1 + $0x4] sm:$0xf] (!%p191_p2)  ;;  %vm633_vm0 = vcmask (!%p191_p2), 1043456   ;;  %v4588_v1 = vld [vmem:[%s5362_s1 + $0x10] sm:$0xf] (!%p191_p2)  ;;  %vm237_vm1 = vcmask (!%p191_p2), 64512  }
   0x6   : > { %194 = sbr.rel (%p191_p2) target bundleno = 556 (0x22c), region = 36  ;;  %4516 = vmatprep.subr.msk.bf16.mxu1 (!%p191_p2), %vm633_vm0, %v3500_v0  ;;  %4520 = vmatprep.subr.msk.bf16.mxu0 (!%p191_p2), %vm633_vm0, %v4588_v1  ;;  %v635_v2 = vsel (!%p191_p2), %vm633_vm0, %v3500_v0, 0  ;;  %v4596_v3 = vsel (!%p191_p2), %vm633_vm0, %v4588_v1, 0  ;;  %vm240_vm2 = vcmask (!%p191_p2), 58368   ;;  %p222_p3 = scmp.lt.s32.totalorder (!%p191_p2), %s3488_s19, 1  ;;  %v4543_v4 = vmov (!%p191_p2), 0.0  }
   0x7   : > { %3953 = vmatpush3.bf16.msra.mxu1 (!%p191_p2), %v635_v2  ;;  %4089 = vmatpush3.bf16.msra.mxu0 (!%p191_p2), %v4596_v3  ;;  %238 = vst.msk [vmem:[#allocation2] sm:$0xff] (!%p191_p2), %vm237_vm1, %v4543_v4  ;;  %239 = vst.msk [vmem:[#allocation2 + $0x8] sm:$0xff] (!%p191_p2), %vm237_vm1, %v4543_v4  ;;  %v534_v5 = vld [vmem:[%s5362_s1] sm:$0xf] (!%p191_p2)  ;;  %v3584_v6 = vld [vmem:[%s5362_s1 + $0x14] sm:$0xf] (!%p191_p2) }
   0x8   : > { %241 = vst.msk [vmem:[#allocation2 + $0x10] sm:$0x3] (!%p191_p2), %vm240_vm2, %v4543_v4  ;;  %245 = vst.msk [vmem:[#allocation2 + $0x1a8] sm:$0x3] (!%p191_p2), %vm240_vm2, %v4543_v4  ;;  %4517 = vmatprep.subr.msk.bf16.mxu1 (!%p191_p2), %vm633_vm0, %v534_v5  ;;  %vm247_vm3 = vcmask (!%p191_p2), 57344   ;;  %4522 = vmatprep.subr.msk.bf16.mxu0 (!%p191_p2), %vm633_vm0, %v3584_v6  ;;  %v4660_v9 = vsel (!%p191_p2), %vm633_vm0, %v534_v5, 0 }
   0x9   : > { %243 = vst.msk [vmem:[#allocation2 + $0x198] sm:$0xff] (!%p191_p2), %vm237_vm1, %v4543_v4  ;;  %244 = vst.msk [vmem:[#allocation2 + $0x1a0] sm:$0xff] (!%p191_p2), %vm237_vm1, %v4543_v4  ;;  %v4656_v7 = vld [vmem:[%s5363_s2] ss:$0 sm:$0xff] (!%p191_p2)  ;;  %v4664_v11 = vsel (!%p191_p2), %vm633_vm0, %v3584_v6, 0  ;;  %vm3369_vm4 = vcmask (!%p191_p2), 60416  }
   0xa   : > { %264 = vst.msk [vmem:[#allocation2 + $0x29] sm:$0x1] (!%p191_p2), %vm247_vm3, %v4543_v4  ;;  %248 = vst.msk [vmem:[#allocation2 + $0x18] sm:$0x1] (!%p191_p2), %vm247_vm3, %v4543_v4  ;;  %v4671_v20 = vld [vmem:[%s5364_s3] ss:$0 sm:$0xff] (!%p191_p2) }
   0xb   : > { %249 = vst.msk [vmem:[#allocation2 + $0x30] sm:$0x1] (!%p191_p2), %vm247_vm3, %v4543_v4  ;;  %250 = vst.msk [vmem:[#allocation2 + $0x48] sm:$0x1] (!%p191_p2), %vm247_vm3, %v4543_v4 }
   0xc   : > { %251 = vst.msk [vmem:[#allocation2 + $0x60] sm:$0x1] (!%p191_p2), %vm247_vm3, %v4543_v4  ;;  %252 = vst.msk [vmem:[#allocation2 + $0x78] sm:$0x1] (!%p191_p2), %vm247_vm3, %v4543_v4 }
   0xd   : > { %s5368_s19 = smov (!%p222_p3, %s3488_s19), 1  ;;  %253 = vst.msk [vmem:[#allocation2 + $0x90] sm:$0x1] %vm247_vm3, %v4543_v4  ;;  %254 = vst.msk [vmem:[#allocation2 + $0xa8] sm:$0x1] %vm247_vm3, %v4543_v4 }
   0xe   : > { %255 = vst.msk [vmem:[#allocation2 + $0xc0] sm:$0x1] %vm247_vm3, %v4543_v4  ;;  %256 = vst.msk [vmem:[#allocation2 + $0xd8] sm:$0x1] %vm247_vm3, %v4543_v4  ;;  %s3686_s28 = sshll.u32 %s5368_s19, 7  ;;  %v535_v18 = vld [vmem:[#allocation2 + $0x1] sm:$0xff] }
   0xf   : > { %257 = vst.msk [vmem:[#allocation2 + $0xf0] sm:$0x1] %vm247_vm3, %v4543_v4  ;;  %258 = vst.msk [vmem:[#allocation2 + $0x108] sm:$0x1] %vm247_vm3, %v4543_v4  ;;  %s4651_s6 = scalar_lea.vmem %s5361_s0, %s3686_s28  ;;  %v536_v19 = vld [vmem:[#allocation2 + $0x9] sm:$0xff]  ;;  %s5214_s25 = scalar_lea.vmem %s5365_s4, %s3686_s28 }
  0x10   : > { %259 = vst.msk [vmem:[#allocation2 + $0x120] sm:$0x1] %vm247_vm3, %v4543_v4  ;;  %260 = vst.msk [vmem:[#allocation2 + $0x138] sm:$0x1] %vm247_vm3, %v4543_v4  ;;  %v3721_v8 = vld [vmem:[%s4651_s6] sm:$0xff]   ;;  %v3784_v10 = vld [vmem:[%s4651_s6 + $0x8] sm:$0xff]   ;;  %v567_v25 = vpack.c.bf16 %v536_v19, %v535_v18 }
  0x11   : > { %261 = vst.msk [vmem:[#allocation2 + $0x150] sm:$0x1] %vm247_vm3, %v4543_v4  ;;  %262 = vst.msk [vmem:[#allocation2 + $0x168] sm:$0x1] %vm247_vm3, %v4543_v4  ;;  %v3785_v12 = vld [vmem:[%s4651_s6 + $0x10] sm:$0xff]   ;;  %v3722_v13 = vunpack.c.l.bf16 %v3721_v8  ;;  %v3723_v14 = vunpack.c.h.bf16 %v3721_v8  ;;  %v3726_v15 = vunpack.c.l.bf16 %v3784_v10  ;;  %v3727_v16 = vunpack.c.h.bf16 %v3784_v10  ;;  %v3786_v17 = vld [vmem:[%s4651_s6 + $0x18] sm:$0xff]  }
  0x12   : > { %263 = vst.msk [vmem:[#allocation2 + $0x180] sm:$0x1] %vm247_vm3, %v4543_v4  ;;  %265 = vst.msk [vmem:[#allocation2 + $0x41] sm:$0x1] %vm247_vm3, %v4543_v4  ;;  %v3730_v21 = vunpack.c.l.bf16 %v3785_v12  ;;  %v3731_v22 = vunpack.c.h.bf16 %v3785_v12  ;;  %v3734_v23 = vunpack.c.l.bf16 %v3786_v17  ;;  %v3735_v24 = vunpack.c.h.bf16 %v3786_v17  ;;  %3954 = vmatprep.mubr.msk.bf16.mxu1 %vm237_vm1, %v567_v25  ;;  %v3787_v41 = vld [vmem:[%s4651_s6 + $0x20] sm:$0xff]   ;;  %v3788_v42 = vld [vmem:[%s4651_s6 + $0x28] sm:$0xff]  }
  0x13   : > { %266 = vst.msk [vmem:[#allocation2 + $0x59] sm:$0x1] %vm247_vm3, %v4543_v4  ;;  %267 = vst.msk [vmem:[#allocation2 + $0x71] sm:$0x1] %vm247_vm3, %v4543_v4  ;;  %v351_v26 = vmul.f32 %v3722_v13, %v4656_v7  ;;  %v352_v27 = vmul.f32 %v3723_v14, %v4656_v7  ;;  %v353_v28 = vmul.f32 %v3726_v15, %v4656_v7  ;;  %v3789_v47 = vld [vmem:[%s4651_s6 + $0x30] sm:$0xff]   ;;  %v3790_v48 = vld [vmem:[%s4651_s6 + $0x38] sm:$0xff]   ;;  %v3738_v54 = vunpack.c.l.bf16 %v3787_v41 }
  0x14   : > { %268 = vst.msk [vmem:[#allocation2 + $0x89] sm:$0x1] %vm247_vm3, %v4543_v4  ;;  %269 = vst.msk [vmem:[#allocation2 + $0xa1] sm:$0x1] %vm247_vm3, %v4543_v4  ;;  %v354_v29 = vmul.f32 %v3727_v16, %v4656_v7  ;;  %v355_v30 = vmul.f32 %v3730_v21, %v4656_v7  ;;  %v356_v31 = vmul.f32 %v3731_v22, %v4656_v7  ;;  %v3739_v55 = vunpack.c.h.bf16 %v3787_v41  ;;  %v3791_v14 = vld [vmem:[%s4651_s6 + $0x40] sm:$0xff]   ;;  %v3793_v25 = vld [vmem:[%s4651_s6 + $0x50] sm:$0xff]  }
  0x15   : > { %270 = vst.msk [vmem:[#allocation2 + $0xb9] sm:$0x1] %vm247_vm3, %v4543_v4  ;;  %271 = vst.msk [vmem:[#allocation2 + $0xd1] sm:$0x1] %vm247_vm3, %v4543_v4  ;;  %v357_v32 = vmul.f32 %v3734_v23, %v4656_v7  ;;  %v390_v33 = vadd.f32 %v4671_v20, %v351_v26  ;;  %v391_v34 = vadd.f32 %v4671_v20, %v352_v27  ;;  %v3742_v56 = vunpack.c.l.bf16 %v3788_v42  ;;  %s3497_s26 = sshll.u32 %s5368_s19, 1 }
  0x16   : > { %272 = vst.msk [vmem:[#allocation2 + $0xe9] sm:$0x1] %vm247_vm3, %v4543_v4  ;;  %273 = vst.msk [vmem:[#allocation2 + $0x101] sm:$0x1] %vm247_vm3, %v4543_v4  ;;  %v392_v35 = vadd.f32 %v4671_v20, %v353_v28  ;;  %v358_v36 = vmul.f32 %v3735_v24, %v4656_v7  ;;  %v393_v37 = vadd.f32 %v4671_v20, %v354_v29  ;;  %v3743_v57 = vunpack.c.h.bf16 %v3788_v42  ;;  %v3792_v24 = vld [vmem:[%s4651_s6 + $0x48] sm:$0xff]   ;;  %s235_s29 = scalar_lea.vmem %s5366_s5, %s3497_s26 }
  0x17   : > { %274 = vst.msk [vmem:[#allocation2 + $0x119] sm:$0x1] %vm247_vm3, %v4543_v4  ;;  %275 = vst.msk [vmem:[#allocation2 + $0x131] sm:$0x1] %vm247_vm3, %v4543_v4  ;;  %v394_v38 = vadd.f32 %v4671_v20, %v355_v30  ;;  %v395_v39 = vadd.f32 %v4671_v20, %v356_v31  ;;  %v396_v40 = vadd.f32 %v4671_v20, %v357_v32  ;;  %v422_v43 = vmax.f32 %v390_v33, 0.0 }
  0x18   : > { %276 = vst.msk [vmem:[#allocation2 + $0x149] sm:$0x1] %vm247_vm3, %v4543_v4  ;;  %277 = vst.msk [vmem:[#allocation2 + $0x161] sm:$0x1] %vm247_vm3, %v4543_v4  ;;  %v423_v44 = vmax.f32 %v391_v34, 0.0  ;;  %v424_v45 = vmax.f32 %v392_v35, 0.0  ;;  %v397_v46 = vadd.f32 %v4671_v20, %v358_v36  ;;  %v3746_v58 = vunpack.c.l.bf16 %v3789_v47 }
  0x19   : > { %278 = vst.msk [vmem:[#allocation2 + $0x179] sm:$0x1] %vm247_vm3, %v4543_v4  ;;  %279 = vst.msk [vmem:[#allocation2 + $0x191] sm:$0x1] %vm247_vm3, %v4543_v4  ;;  %v425_v49 = vmax.f32 %v393_v37, 0.0  ;;  %v426_v50 = vmax.f32 %v394_v38, 0.0  ;;  %v3747_v59 = vunpack.c.h.bf16 %v3789_v47  ;;  %v3750_v60 = vunpack.c.l.bf16 %v3790_v48 }
  0x1a   : > { %v427_v51 = vmax.f32 %v395_v39, 0.0  ;;  %v428_v52 = vmax.f32 %v396_v40, 0.0  ;;  %454 = vst.msk [vmem:[#allocation2 + $0x19] sm:$0xff] %vm237_vm1, %v422_v43  ;;  %455 = vst.msk [vmem:[#allocation2 + $0x21] sm:$0xff] %vm237_vm1, %v423_v44  ;;  %v429_v53 = vmax.f32 %v397_v46, 0.0  ;;  %v359_v61 = vmul.f32 %v3738_v54, %v4656_v7  ;;  %v3794_v44 = vld [vmem:[%s4651_s6 + $0x58] sm:$0xff]  }
  0x1b   : > { %456 = vst.msk [vmem:[#allocation2 + $0x31] sm:$0xff] %vm237_vm1, %v424_v45  ;;  %457 = vst.msk [vmem:[#allocation2 + $0x39] sm:$0xff] %vm237_vm1, %v425_v49  ;;  %v360_v62 = vmul.f32 %v3739_v55, %v4656_v7  ;;  %v361_v63 = vmul.f32 %v3742_v56, %v4656_v7  ;;  %v3751_v0 = vunpack.c.h.bf16 %v3790_v48  ;;  %v362_v2 = vmul.f32 %v3743_v57, %v4656_v7  ;;  %v4739_v46 = vld [vmem:[%s5362_s1 + $0x18] sm:$0xf] }
  0x1c   : > { %458 = vst.msk [vmem:[#allocation2 + $0x49] sm:$0xff] %vm237_vm1, %v426_v50  ;;  %459 = vst.msk [vmem:[#allocation2 + $0x51] sm:$0xff] %vm237_vm1, %v427_v51  ;;  %v363_v4 = vmul.f32 %v3746_v58, %v4656_v7  ;;  %v364_v5 = vmul.f32 %v3747_v59, %v4656_v7  ;;  %v365_v6 = vmul.f32 %v3750_v60, %v4656_v7  ;;  %v3754_v32 = vunpack.c.l.bf16 %v3791_v14  ;;  %v3795_v59 = vld [vmem:[%s4651_s6 + $0x60] sm:$0xff]  }
  0x1d   : > { %460 = vst.msk [vmem:[#allocation2 + $0x61] sm:$0xff] %vm237_vm1, %v428_v52  ;;  %461 = vst.msk [vmem:[#allocation2 + $0x69] sm:$0xff] %vm237_vm1, %v429_v53  ;;  %v398_v8 = vadd.f32 %v4671_v20, %v359_v61  ;;  %v399_v10 = vadd.f32 %v4671_v20, %v360_v62  ;;  %v400_v12 = vadd.f32 %v4671_v20, %v361_v63  ;;  %v3755_v39 = vunpack.c.h.bf16 %v3791_v14  ;;  %v4747_v53 = vld [vmem:[%s5362_s1 + $0x8] sm:$0xf] }
  0x1e   : > { %v366_v13 = vmul.f32 %v3751_v0, %v4656_v7  ;;  %v401_v15 = vadd.f32 %v4671_v20, %v362_v2  ;;  %v402_v16 = vadd.f32 %v4671_v20, %v363_v4  ;;  %v403_v17 = vadd.f32 %v4671_v20, %v364_v5 }
  0x1f   : > { %v404_v18 = vadd.f32 %v4671_v20, %v365_v6  ;;  %v430_v19 = vmax.f32 %v398_v8, 0.0  ;;  %v431_v21 = vmax.f32 %v399_v10, 0.0  ;;  %v432_v22 = vmax.f32 %v400_v12, 0.0 }
  0x20   : > { %v405_v23 = vadd.f32 %v4671_v20, %v366_v13  ;;  %v433_v29 = vmax.f32 %v401_v15, 0.0  ;;  %v434_v30 = vmax.f32 %v402_v16, 0.0  ;;  %v435_v31 = vmax.f32 %v403_v17, 0.0  ;;  %v3796_v15 = vld [vmem:[%s4651_s6 + $0x68] sm:$0xff]  }
  0x21   : > { %v537_v26 = vld [vmem:[#allocation2 + $0x19] sm:$0xff]  ;;  %v538_v27 = vld [vmem:[#allocation2 + $0x21] sm:$0xff]  ;;  %462 = vst.msk [vmem:[#allocation2 + $0x79] sm:$0xff] %vm237_vm1, %v430_v19  ;;  %463 = vst.msk [vmem:[#allocation2 + $0x81] sm:$0xff] %vm237_vm1, %v431_v21  ;;  %v436_v37 = vmax.f32 %v404_v18, 0.0  ;;  %v367_v42 = vmul.f32 %v3754_v32, %v4656_v7  ;;  %v3758_v43 = vunpack.c.l.bf16 %v3792_v24  ;;  %v368_v45 = vmul.f32 %v3755_v39, %v4656_v7 }
  0x22   : > { %v1600_v28 = vld [vmem:[#allocation2 + $0x31] sm:$0xff]  ;;  %v568_v33 = vpack.c.bf16 %v538_v27, %v537_v26  ;;  %v1601_v34 = vld [vmem:[#allocation2 + $0x39] sm:$0xff]  ;;  %464 = vst.msk [vmem:[#allocation2 + $0x91] sm:$0xff] %vm237_vm1, %v432_v22  ;;  %v437_v38 = vmax.f32 %v405_v23, 0.0  ;;  %465 = vst.msk [vmem:[#allocation2 + $0x99] sm:$0xff] %vm237_vm1, %v433_v29  ;;  %v3759_v47 = vunpack.c.h.bf16 %v3792_v24  ;;  %v3762_v48 = vunpack.c.l.bf16 %v3793_v25 }
  0x23   : > { %v541_v35 = vld [vmem:[#allocation2 + $0x49] sm:$0xff]  ;;  %v542_v36 = vld [vmem:[#allocation2 + $0x51] sm:$0xff]  ;;  %v1631_v40 = vpack.c.bf16 %v1601_v34, %v1600_v28  ;;  %466 = vst.msk [vmem:[#allocation2 + $0xa9] sm:$0xff] %vm237_vm1, %v434_v30  ;;  %467 = vst.msk [vmem:[#allocation2 + $0xb1] sm:$0xff] %vm237_vm1, %v435_v31  ;;  %v406_v51 = vadd.f32 %v4671_v20, %v367_v42  ;;  %v3763_v52 = vunpack.c.h.bf16 %v3793_v25  ;;  %v407_v54 = vadd.f32 %v4671_v20, %v368_v45 }
  0x24   : > { %v4724_v41 = vpack.c.bf16 %v542_v36, %v541_v35  ;;  %3955 = vmatmul.mubr.msk.bf16.vlgmr.msra.gmra.mrb[0].mxu1 %vm237_vm1, %v568_v33  ;;  %4090 = vmatprep.mubr.msk.bf16.mxu0 %vm237_vm1, %v568_v33  ;;  %468 = vst.msk [vmem:[#allocation2 + $0xc1] sm:$0xff] %vm237_vm1, %v436_v37  ;;  %469 = vst.msk [vmem:[#allocation2 + $0xc9] sm:$0xff] %vm237_vm1, %v437_v38  ;;  %v1604_v49 = vld [vmem:[#allocation2 + $0x61] sm:$0xff]  ;;  %v1605_v50 = vld [vmem:[#allocation2 + $0x69] sm:$0xff]  ;;  %v370_v55 = vmul.f32 %v3759_v47, %v4656_v7  ;;  %v3766_v56 = vunpack.c.l.bf16 %v3794_v44 }
  0x25   : > { %3987 = vmatpush3.bf16.msra.mxu1 %v4660_v9  ;;  %4091 = vmatmul.mubr.msk.bf16.vlgmr.msra.gmra.mrb[0].mxu0 %vm237_vm1, %v1631_v40  ;;  %v369_v9 = vmul.f32 %v3758_v43, %v4656_v7  ;;  %v438_v57 = vmax.f32 %v406_v51, 0.0  ;;  %v371_v58 = vmul.f32 %v3762_v48, %v4656_v7  ;;  %v4761_v60 = vpack.c.bf16 %v1605_v50, %v1604_v49  ;;  %v3797_v22 = vld [vmem:[%s4651_s6 + $0x70] sm:$0xff]  }
  0x26   : > { %4123 = vmatpush3.bf16.msra.mxu0 %v4664_v11  ;;  %3958 = vmatprep.mubr.msk.bf16.mxu1 %vm237_vm1, %v1631_v40  ;;  %v372_v11 = vmul.f32 %v3763_v52, %v4656_v7  ;;  %v439_v61 = vmax.f32 %v407_v54, 0.0  ;;  %v409_v63 = vadd.f32 %v4671_v20, %v370_v55  ;;  %v3767_v6 = vunpack.c.h.bf16 %v3794_v44 }
  0x27   : > { %4094 = vmatprep.mubr.msk.bf16.mxu0 %vm237_vm1, %v4724_v41  ;;  %4523 = vmatprep.subr.msk.bf16.mxu0 %vm633_vm0, %v4739_v46  ;;  %v408_v62 = vadd.f32 %v4671_v20, %v369_v9  ;;  %470 = vst.msk [vmem:[#allocation2 + $0xd9] sm:$0xff] %vm237_vm1, %v438_v57  ;;  %v410_v4 = vadd.f32 %v4671_v20, %v371_v58  ;;  %v3770_v14 = vunpack.c.l.bf16 %v3795_v59  ;;  %v3771_v21 = vunpack.c.h.bf16 %v3795_v59  ;;  %v3798_v9 = vld [vmem:[%s4651_s6 + $0x78] sm:$0xff]   ;;  %v1893_v59 = vld [vmem:[#allocation2 + $0x22] sm:$0xff] }
  0x28   : > { %4518 = vmatprep.subr.msk.bf16.mxu1 %vm633_vm0, %v4747_v53  ;;  %v545_v0 = vld [vmem:[#allocation2 + $0x79] sm:$0xff]  ;;  %v546_v2 = vld [vmem:[#allocation2 + $0x81] sm:$0xff]  ;;  %v411_v5 = vadd.f32 %v4671_v20, %v372_v11  ;;  %v373_v8 = vmul.f32 %v3766_v56, %v4656_v7  ;;  %471 = vst.msk [vmem:[#allocation2 + $0xe1] sm:$0xff] %vm237_vm1, %v439_v61  ;;  %v441_v13 = vmax.f32 %v409_v63, 0.0  ;;  %v374_v18 = vmul.f32 %v3767_v6, %v4656_v7 }
  0x29   : > { %v4771_v10 = vpack.c.bf16 %v546_v2, %v545_v0  ;;  %v440_v12 = vmax.f32 %v408_v62, 0.0  ;;  %v442_v16 = vmax.f32 %v410_v4, 0.0  ;;  %v1608_v23 = vld [vmem:[#allocation2 + $0x91] sm:$0xff]  ;;  %v1609_v24 = vld [vmem:[#allocation2 + $0x99] sm:$0xff]  ;;  %v375_v25 = vmul.f32 %v3770_v14, %v4656_v7 }
  0x2a   : > { %v443_v17 = vmax.f32 %v411_v5, 0.0  ;;  %473 = vst.msk [vmem:[#allocation2 + $0xf9] sm:$0xff] %vm237_vm1, %v441_v13  ;;  %v412_v19 = vadd.f32 %v4671_v20, %v373_v8  ;;  %v3774_v26 = vunpack.c.l.bf16 %v3796_v15  ;;  %v413_v27 = vadd.f32 %v4671_v20, %v374_v18  ;;  %v549_v31 = vld [vmem:[#allocation2 + $0xa9] sm:$0xff]  ;;  %v550_v32 = vld [vmem:[#allocation2 + $0xb1] sm:$0xff]  ;;  %v1892_v11 = vld [vmem:[#allocation2 + $0x1a] sm:$0xff] }
  0x2b   : > { %472 = vst.msk [vmem:[#allocation2 + $0xf1] sm:$0xff] %vm237_vm1, %v440_v12  ;;  %474 = vst.msk [vmem:[#allocation2 + $0x109] sm:$0xff] %vm237_vm1, %v442_v16  ;;  %v376_v29 = vmul.f32 %v3771_v21, %v4656_v7  ;;  %v3775_v30 = vunpack.c.h.bf16 %v3796_v15  ;;  %v414_v33 = vadd.f32 %v4671_v20, %v375_v25  ;;  %v3778_v35 = vunpack.c.l.bf16 %v3797_v22  ;;  %v1612_v57 = vld [vmem:[#allocation2 + $0xc1] sm:$0xff]  ;;  %v1613_v58 = vld [vmem:[#allocation2 + $0xc9] sm:$0xff] }
  0x2c   : > { %3959 = vmatmul.mubr.msk.bf16.gmra.mrb[4].mxu1 %vm237_vm1, %v4724_v41  ;;  %475 = vst.msk [vmem:[#allocation2 + $0x111] sm:$0xff] %vm237_vm1, %v443_v17  ;;  %v444_v28 = vmax.f32 %v412_v19, 0.0  ;;  %v377_v34 = vmul.f32 %v3774_v26, %v4656_v7  ;;  %v3779_v36 = vunpack.c.h.bf16 %v3797_v22  ;;  %v4795_v37 = vpack.c.bf16 %v1609_v24, %v1608_v23  ;;  %v1894_v13 = vld [vmem:[#allocation2 + $0x32] sm:$0xff]  ;;  %v1896_v18 = vld [vmem:[#allocation2 + $0x4a] sm:$0xff]  ;;  %v4857_v25 = vld [vmem:[%s5362_s1 + $0x1c] sm:$0xf] }
  0x2d   : > { %4095 = vmatmul.mubr.msk.bf16.gmra.mrb[4].mxu0 %vm237_vm1, %v4761_v60  ;;  %3962 = vmatprep.mubr.msk.bf16.mxu1 %vm237_vm1, %v4761_v60  ;;  %v445_v38 = vmax.f32 %v413_v27, 0.0  ;;  %v415_v39 = vadd.f32 %v4671_v20, %v376_v29  ;;  %v378_v40 = vmul.f32 %v3775_v30, %v4656_v7  ;;  %v446_v42 = vmax.f32 %v414_v33, 0.0  ;;  %v1897_v19 = vld [vmem:[#allocation2 + $0x52] sm:$0xff] }
  0x2e   : > { %4098 = vmatprep.mubr.msk.bf16.mxu0 %vm237_vm1, %v4771_v10  ;;  %476 = vst.msk [vmem:[#allocation2 + $0x121] sm:$0xff] %vm237_vm1, %v444_v28  ;;  %v416_v43 = vadd.f32 %v4671_v20, %v377_v34  ;;  %v379_v44 = vmul.f32 %v3778_v35, %v4656_v7  ;;  %v380_v45 = vmul.f32 %v3779_v36, %v4656_v7  ;;  %v3782_v61 = vunpack.c.l.bf16 %v3798_v9  ;;  %v553_v8 = vld [vmem:[#allocation2 + $0xd9] sm:$0xff]  ;;  %v1898_v28 = vld [vmem:[#allocation2 + $0x62] sm:$0xff] }
  0x2f   : > { %v4803_v47 = vpack.c.bf16 %v550_v32, %v549_v31  ;;  %477 = vst.msk [vmem:[#allocation2 + $0x129] sm:$0xff] %vm237_vm1, %v445_v38  ;;  %v447_v48 = vmax.f32 %v415_v39, 0.0  ;;  %v417_v49 = vadd.f32 %v4671_v20, %v378_v40  ;;  %478 = vst.msk [vmem:[#allocation2 + $0x139] sm:$0xff] %vm237_vm1, %v446_v42  ;;  %v3783_v62 = vunpack.c.h.bf16 %v3798_v9  ;;  %v554_v12 = vld [vmem:[#allocation2 + $0xe1] sm:$0xff]  ;;  %v1902_v40 = vld [vmem:[#allocation2 + $0x92] sm:$0xff] }
  0x30   : > { %v448_v50 = vmax.f32 %v416_v43, 0.0  ;;  %v418_v51 = vadd.f32 %v4671_v20, %v379_v44  ;;  %v419_v52 = vadd.f32 %v4671_v20, %v380_v45  ;;  %v4824_v63 = vpack.c.bf16 %v1613_v58, %v1612_v57  ;;  %v1900_v31 = vld [vmem:[#allocation2 + $0x7a] sm:$0xff]  ;;  %v1901_v32 = vld [vmem:[#allocation2 + $0x82] sm:$0xff]  ;;  %v1904_v45 = vld [vmem:[#allocation2 + $0xaa] sm:$0xff] }
  0x31   : > { %479 = vst.msk [vmem:[#allocation2 + $0x141] sm:$0xff] %vm237_vm1, %v447_v48  ;;  %v449_v54 = vmax.f32 %v417_v49, 0.0  ;;  %v381_v0 = vmul.f32 %v3782_v61, %v4656_v7  ;;  %v4827_v2 = vpack.c.bf16 %v1893_v59, %v1892_v11  ;;  %v382_v4 = vmul.f32 %v3783_v62, %v4656_v7  ;;  %v1895_v7 = vld [vmem:[#allocation2 + $0x3a] sm:$0xff]  ;;  %v1905_v48 = vld [vmem:[#allocation2 + $0xb2] sm:$0xff]  ;;  %v1907_v57 = vld [vmem:[#allocation2 + $0xca] sm:$0xff] }
  0x32   : > { %480 = vst.msk [vmem:[#allocation2 + $0x151] sm:$0xff] %vm237_vm1, %v448_v50  ;;  %v450_v55 = vmax.f32 %v418_v51, 0.0  ;;  %v451_v56 = vmax.f32 %v419_v52, 0.0  ;;  %v555_v15 = vld [vmem:[#allocation2 + $0xf1] sm:$0xff]  ;;  %v556_v16 = vld [vmem:[#allocation2 + $0xf9] sm:$0xff]  ;;  %v4844_v21 = vpack.c.bf16 %v1895_v7, %v1894_v13  ;;  %v4848_v23 = vpack.c.bf16 %v1897_v19, %v1896_v18  ;;  %v557_v26 = vld [vmem:[#allocation2 + $0x109] sm:$0xff] }
  0x33   : > { %481 = vst.msk [vmem:[#allocation2 + $0x159] sm:$0xff] %vm237_vm1, %v449_v54  ;;  %v420_v5 = vadd.f32 %v4671_v20, %v381_v0  ;;  %v421_v6 = vadd.f32 %v4671_v20, %v382_v4  ;;  %v4841_v20 = vpack.c.bf16 %v554_v12, %v553_v8  ;;  %v4846_v22 = vpack.c.bf16 %v556_v16, %v555_v15  ;;  %v558_v27 = vld [vmem:[#allocation2 + $0x111] sm:$0xff]  ;;  %v1903_v42 = vld [vmem:[#allocation2 + $0x9a] sm:$0xff]  ;;  %v487_v58 = vld [vmem:[#allocation2 + $0x8] sm:$0xff] }
  0x34   : > { %3963 = vmatmul.mubr.msk.bf16.gmra.mrb[8].mxu1 %vm237_vm1, %v4771_v10  ;;  %482 = vst.msk [vmem:[#allocation2 + $0x169] sm:$0xff] %vm237_vm1, %v450_v55  ;;  %483 = vst.msk [vmem:[#allocation2 + $0x171] sm:$0xff] %vm237_vm1, %v451_v56  ;;  %v2286_v24 = vsel %vm633_vm0, %v4739_v46, 0  ;;  %v1899_v46 = vld [vmem:[#allocation2 + $0x6a] sm:$0xff]  ;;  %v4867_v33 = vpack.c.bf16 %v558_v27, %v557_v26  ;;  %v4873_v36 = vpack.c.bf16 %v1901_v32, %v1900_v31  ;;  %v486_v55 = vld [vmem:[#allocation2] sm:$0xff]  ;;  %v1109_v18 = vsel %vm633_vm0, %v4747_v53, 0 }
  0x35   : > { %4099 = vmatmul.mubr.msk.bf16.gmra.mrb[8].mxu0 %vm237_vm1, %v4795_v37  ;;  %3966 = vmatprep.mubr.msk.bf16.mxu1 %vm237_vm1, %v4795_v37  ;;  %v452_v14 = vmax.f32 %v420_v5, 0.0  ;;  %v453_v17 = vmax.f32 %v421_v6, 0.0  ;;  %v559_v29 = vld [vmem:[#allocation2 + $0x121] sm:$0xff]  ;;  %v4869_v34 = vpack.c.bf16 %v1899_v46, %v1898_v28  ;;  %v4885_v50 = vpack.c.bf16 %v1903_v42, %v1902_v40  ;;  %v488_v5 = vld [vmem:[#allocation2 + $0x18] sm:$0xff]  ;;  %v490_v13 = vld [vmem:[#allocation2 + $0x30] sm:$0xff] }
  0x36   : > { %4102 = vmatprep.mubr.msk.bf16.mxu0 %vm237_vm1, %v4803_v47  ;;  %v560_v30 = vld [vmem:[#allocation2 + $0x129] sm:$0xff]  ;;  %v561_v38 = vld [vmem:[#allocation2 + $0x139] sm:$0xff]  ;;  %v4889_v52 = vpack.c.bf16 %v1905_v48, %v1904_v45  ;;  %v518_v0 = vpack.c.bf16 %v487_v58, %v486_v55 }
  0x37   : > { %484 = vst.msk [vmem:[#allocation2 + $0x181] sm:$0xff] %vm237_vm1, %v452_v14  ;;  %485 = vst.msk [vmem:[#allocation2 + $0x189] sm:$0xff] %vm237_vm1, %v453_v17  ;;  %v4871_v35 = vpack.c.bf16 %v560_v30, %v559_v29  ;;  %v1906_v56 = vld [vmem:[#allocation2 + $0xc2] sm:$0xff]  ;;  %v1908_v11 = vld [vmem:[#allocation2 + $0xda] sm:$0xff] }
  0x38   : > { %v562_v39 = vld [vmem:[#allocation2 + $0x141] sm:$0xff]  ;;  %v4901_v62 = vpack.c.bf16 %v1907_v57, %v1906_v56  ;;  %v1910_v8 = vld [vmem:[#allocation2 + $0xf2] sm:$0xff]  ;;  %v1912_v7 = vld [vmem:[#allocation2 + $0x10a] sm:$0xff] }
  0x39   : > { %v563_v43 = vld [vmem:[#allocation2 + $0x151] sm:$0xff]  ;;  %v4883_v49 = vpack.c.bf16 %v562_v39, %v561_v38  ;;  %v1909_v59 = vld [vmem:[#allocation2 + $0xe2] sm:$0xff]  ;;  %v1911_v12 = vld [vmem:[#allocation2 + $0xfa] sm:$0xff] }
  0x3a   : > { %v564_v44 = vld [vmem:[#allocation2 + $0x159] sm:$0xff]  ;;  %v4903_v4 = vpack.c.bf16 %v1909_v59, %v1908_v11  ;;  %v4914_v17 = vpack.c.bf16 %v1911_v12, %v1910_v8  ;;  %v4927_v26 = vld [vmem:[%s5362_s1 + $0xc] sm:$0xf]  ;;  %v493_v28 = vld [vmem:[#allocation2 + $0x50] sm:$0xff] }
  0x3b   : > { %v4887_v51 = vpack.c.bf16 %v564_v44, %v563_v43  ;;  %v565_v54 = vld [vmem:[#allocation2 + $0x169] sm:$0xff]  ;;  %v566_v9 = vld [vmem:[#allocation2 + $0x171] sm:$0xff]  ;;  %v489_v6 = vld [vmem:[#allocation2 + $0x20] sm:$0xff] }
  0x3c   : > { %3967 = vmatmul.mubr.msk.bf16.gmra.mrb[12].mxu1 %vm237_vm1, %v4803_v47  ;;  %v4899_v61 = vpack.c.bf16 %v566_v9, %v565_v54  ;;  %v491_v14 = vld [vmem:[#allocation2 + $0x38] sm:$0xff]  ;;  %v4912_v16 = vpack.c.bf16 %v489_v6, %v488_v5  ;;  %v492_v27 = vld [vmem:[#allocation2 + $0x48] sm:$0xff]  ;;  %v494_v46 = vld [vmem:[#allocation2 + $0x60] sm:$0xff] }
  0x3d   : > { %4103 = vmatmul.mubr.msk.bf16.gmra.mrb[12].mxu0 %vm237_vm1, %v4824_v63  ;;  %3970 = vmatprep.mubr.msk.bf16.mxu1 %vm237_vm1, %v4824_v63  ;;  %v1913_v15 = vld [vmem:[#allocation2 + $0x112] sm:$0xff]  ;;  %v4918_v19 = vpack.c.bf16 %v491_v14, %v490_v13  ;;  %v1914_v53 = vld [vmem:[#allocation2 + $0x122] sm:$0xff]  ;;  %v1915_v29 = vld [vmem:[#allocation2 + $0x12a] sm:$0xff]  ;;  %v4937_v38 = vpack.c.bf16 %v493_v28, %v492_v27 }
  0x3e   : > { %4124 = vmatprep.mubr.msk.bf16.mxu0 %vm237_vm1, %v4827_v2  ;;  %v495_v30 = vld [vmem:[#allocation2 + $0x68] sm:$0xff]  ;;  %v1916_v31 = vld [vmem:[#allocation2 + $0x13a] sm:$0xff]  ;;  %v4939_v39 = vpack.c.bf16 %v1915_v29, %v1914_v53  ;;  %v498_v45 = vld [vmem:[#allocation2 + $0x90] sm:$0xff] }
  0x3f   : > { %v1917_v32 = vld [vmem:[#allocation2 + $0x142] sm:$0xff]  ;;  %v4941_v40 = vpack.c.bf16 %v495_v30, %v494_v46  ;;  %v496_v43 = vld [vmem:[#allocation2 + $0x78] sm:$0xff]  ;;  %v1920_v55 = vld [vmem:[#allocation2 + $0x16a] sm:$0xff]  ;;  %v2580_v30 = vsel %vm633_vm0, %v4857_v25, 0 }
  0x40   : > { %v4943_v42 = vpack.c.bf16 %v1917_v32, %v1916_v31  ;;  %v497_v44 = vld [vmem:[#allocation2 + $0x80] sm:$0xff]  ;;  %v1918_v48 = vld [vmem:[#allocation2 + $0x152] sm:$0xff]  ;;  %v1923_v12 = vld [vmem:[#allocation2 + $0x18a] sm:$0xff] }
  0x41   : > { %v1919_v54 = vld [vmem:[#allocation2 + $0x15a] sm:$0xff]  ;;  %v1921_v56 = vld [vmem:[#allocation2 + $0x172] sm:$0xff]  ;;  %v4953_v57 = vpack.c.bf16 %v497_v44, %v496_v43  ;;  %v1922_v8 = vld [vmem:[#allocation2 + $0x182] sm:$0xff] }
  0x42   : > { %v499_v9 = vld [vmem:[#allocation2 + $0x98] sm:$0xff]  ;;  %v4955_v58 = vpack.c.bf16 %v1919_v54, %v1918_v48  ;;  %v4959_v59 = vpack.c.bf16 %v1921_v56, %v1920_v55  ;;  %v501_v5 = vld [vmem:[#allocation2 + $0xb0] sm:$0xff]  ;;  %v502_v6 = vld [vmem:[#allocation2 + $0xc0] sm:$0xff] }
  0x43   : > { %v4957_v11 = vpack.c.bf16 %v499_v9, %v498_v45  ;;  %v503_v13 = vld [vmem:[#allocation2 + $0xc8] sm:$0xff]  ;;  %v505_v27 = vld [vmem:[#allocation2 + $0xe0] sm:$0xff]  ;;  %v506_v28 = vld [vmem:[#allocation2 + $0xf0] sm:$0xff] }
  0x44   : > { %3971 = vmatmul.mubr.msk.bf16.gmra.mrb[16].mxu1 %vm237_vm1, %v4841_v20  ;;  %v507_v46 = vld [vmem:[#allocation2 + $0xf8] sm:$0xff]  ;;  %v4994_v31 = vld [vmem:[%s5362_s1 + $0x20] sm:$0xf]  ;;  %v508_v32 = vld [vmem:[#allocation2 + $0x108] sm:$0xff] }
  0x45   : > { %4125 = vmatmul.mubr.msk.bf16.vlgmr.msra.gmra.mrb[0].mxu0 %vm237_vm1, %v4844_v21  ;;  %3974 = vmatprep.mubr.msk.bf16.mxu1 %vm237_vm1, %v4846_v22  ;;  %v4985_v29 = vpack.c.bf16 %v507_v46, %v506_v28  ;;  %v509_v43 = vld [vmem:[#allocation2 + $0x110] sm:$0xff]  ;;  %v511_v44 = vld [vmem:[#allocation2 + $0x128] sm:$0xff]  ;;  %v512_v54 = vld [vmem:[#allocation2 + $0x138] sm:$0xff]  ;;  %v1403_v28 = vsel %vm633_vm0, %v4927_v26, 0 }
  0x46   : > { %4157 = vmatpush3.bf16.msra.mxu0 %v2286_v24  ;;  %4128 = vmatprep.mubr.msk.bf16.mxu0 %vm237_vm1, %v4848_v23  ;;  %v4920_v24 = vpack.c.bf16 %v1913_v15, %v1912_v7  ;;  %v4971_v7 = vpack.c.bf16 %v1923_v12, %v1922_v8  ;;  %v4973_v15 = vpack.c.bf16 %v503_v13, %v502_v6  ;;  %v513_v9 = vld [vmem:[#allocation2 + $0x140] sm:$0xff]  ;;  %v514_v55 = vld [vmem:[#allocation2 + $0x150] sm:$0xff]  ;;  %v515_v56 = vld [vmem:[#allocation2 + $0x158] sm:$0xff] }
  0x47   : > { %4524 = vmatprep.subr.msk.bf16.mxu0 %vm633_vm0, %v4857_v25  ;;  %v510_v25 = vld [vmem:[#allocation2 + $0x120] sm:$0xff]  ;;  %v5004_v45 = vpack.c.bf16 %v509_v43, %v508_v32  ;;  %v516_v6 = vld [vmem:[#allocation2 + $0x168] sm:$0xff]  ;;  %v517_v8 = vld [vmem:[#allocation2 + $0x170] sm:$0xff] }
  0x48   : > { %v5006_v48 = vpack.c.bf16 %v511_v44, %v510_v25  ;;  %v1010_v12 = vld [vmem:[#allocation2 + $0x2] sm:$0xff]  ;;  %v1011_v13 = vld [vmem:[#allocation2 + $0xa] sm:$0xff]  ;;  %v2482_v43 = vld [vmem:[#allocation2 + $0x39] sm:$0xff] }
  0x49   : > { %v2481_v32 = vld [vmem:[#allocation2 + $0x31] sm:$0xff] }
  0x4a   : > { %v2513_v44 = vpack.c.bf16 %v2482_v43, %v2481_v32 }
  0x4c   : > { %3975 = vmatmul.mubr.msk.bf16.gmra.mrb[20].mxu1 %vm237_vm1, %v4867_v33 }
  0x4d   : > { %4129 = vmatmul.mubr.msk.bf16.gmra.mrb[4].mxu0 %vm237_vm1, %v4869_v34  ;;  %3978 = vmatprep.mubr.msk.bf16.mxu1 %vm237_vm1, %v4871_v35 }
  0x4e   : > { %4132 = vmatprep.mubr.msk.bf16.mxu0 %vm237_vm1, %v4873_v36 }
  0x54   : > { %3979 = vmatmul.mubr.msk.bf16.gmra.mrb[24].mxu1 %vm237_vm1, %v4883_v49 }
  0x55   : > { %4133 = vmatmul.mubr.msk.bf16.gmra.mrb[8].mxu0 %vm237_vm1, %v4885_v50  ;;  %3982 = vmatprep.mubr.msk.bf16.mxu1 %vm237_vm1, %v4887_v51 }
  0x56   : > { %4136 = vmatprep.mubr.msk.bf16.mxu0 %vm237_vm1, %v4889_v52 }
  0x5c   : > { %3983 = vmatmul.mubr.msk.bf16.gmra.mrb[28].mxu1 %vm237_vm1, %v4899_v61 }
  0x5d   : > { %4137 = vmatmul.mubr.msk.bf16.gmra.mrb[12].mxu0 %vm237_vm1, %v4901_v62  ;;  %3988 = vmatprep.mubr.msk.bf16.mxu1 %vm237_vm1, %v518_v0  ;;  %v500_v0 = vld [vmem:[#allocation2 + $0xa8] sm:$0xff] }
  0x5e   : > { %4140 = vmatprep.mubr.msk.bf16.mxu0 %vm237_vm1, %v4903_v4  ;;  %v4969_v14 = vpack.c.bf16 %v501_v5, %v500_v0  ;;  %v5016_v0 = vpack.c.bf16 %v513_v9, %v512_v54  ;;  %v5018_v5 = vpack.c.bf16 %v515_v56, %v514_v55  ;;  %v2874_v54 = vsel %vm633_vm0, %v4994_v31, 0 }
  0x64   : > { %3989 = vmatmul.mubr.msk.bf16.vlgmr.msra.gmra.mrb[0].mxu1 %vm237_vm1, %v4912_v16 }
  0x65   : > { %4021 = vmatpush3.bf16.msra.mxu1 %v1109_v18  ;;  %4141 = vmatmul.mubr.msk.bf16.gmra.mrb[16].mxu0 %vm237_vm1, %v4914_v17  ;;  %v504_v18 = vld [vmem:[#allocation2 + $0xd8] sm:$0xff] }
  0x66   : > { %3992 = vmatprep.mubr.msk.bf16.mxu1 %vm237_vm1, %v4918_v19  ;;  %4144 = vmatprep.mubr.msk.bf16.mxu0 %vm237_vm1, %v4920_v24  ;;  %v4983_v53 = vpack.c.bf16 %v505_v27, %v504_v18  ;;  %v5028_v18 = vpack.c.bf16 %v517_v8, %v516_v6  ;;  %v1042_v27 = vpack.c.bf16 %v1011_v13, %v1010_v12 }
  0x67   : > { %4519 = vmatprep.subr.msk.bf16.mxu1 %vm633_vm0, %v4927_v26  ;;  %v2216_v26 = vld [vmem:[#allocation2 + $0x188] sm:$0xff] }
  0x6c   : > { %3993 = vmatmul.mubr.msk.bf16.gmra.mrb[4].mxu1 %vm237_vm1, %v4937_v38 }
  0x6d   : > { %4145 = vmatmul.mubr.msk.bf16.gmra.mrb[20].mxu0 %vm237_vm1, %v4939_v39  ;;  %3996 = vmatprep.mubr.msk.bf16.mxu1 %vm237_vm1, %v4941_v40 }
  0x6e   : > { %4148 = vmatprep.mubr.msk.bf16.mxu0 %vm237_vm1, %v4943_v42 }
  0x74   : > { %3997 = vmatmul.mubr.msk.bf16.gmra.mrb[8].mxu1 %vm237_vm1, %v4953_v57 }
  0x75   : > { %4149 = vmatmul.mubr.msk.bf16.gmra.mrb[24].mxu0 %vm237_vm1, %v4955_v58  ;;  %4000 = vmatprep.mubr.msk.bf16.mxu1 %vm237_vm1, %v4957_v11 }
  0x76   : > { %4152 = vmatprep.mubr.msk.bf16.mxu0 %vm237_vm1, %v4959_v59 }
  0x7c   : > { %4001 = vmatmul.mubr.msk.bf16.gmra.mrb[12].mxu1 %vm237_vm1, %v4969_v14 }
  0x7d   : > { %4153 = vmatmul.mubr.msk.bf16.gmra.mrb[28].mxu0 %vm237_vm1, %v4971_v7  ;;  %4004 = vmatprep.mubr.msk.bf16.mxu1 %vm237_vm1, %v4973_v15 }
  0x7e   : > { %4158 = vmatprep.mubr.msk.bf16.mxu0 %vm237_vm1, %v4918_v19 }
  0x84   : > { %4005 = vmatmul.mubr.msk.bf16.gmra.mrb[16].mxu1 %vm237_vm1, %v4983_v53 }
  0x85   : > { %4159 = vmatmul.mubr.msk.bf16.vlgmr.msra.gmra.mrb[0].mxu0 %vm237_vm1, %v4937_v38  ;;  %4008 = vmatprep.mubr.msk.bf16.mxu1 %vm237_vm1, %v4985_v29 }
  0x86   : > { %4191 = vmatpush3.bf16.msra.mxu0 %v2580_v30  ;;  %4162 = vmatprep.mubr.msk.bf16.mxu0 %vm237_vm1, %v4941_v40  ;;  %v2218_v30 = vld [vmem:[#allocation2 + $0x1a0] sm:$0xff] }
  0x87   : > { %4525 = vmatprep.subr.msk.bf16.mxu0 %vm633_vm0, %v4994_v31 }
  0x8c   : > { %4009 = vmatmul.mubr.msk.bf16.gmra.mrb[20].mxu1 %vm237_vm1, %v5004_v45 }
  0x8d   : > { %4163 = vmatmul.mubr.msk.bf16.gmra.mrb[4].mxu0 %vm237_vm1, %v4953_v57  ;;  %4012 = vmatprep.mubr.msk.bf16.mxu1 %vm237_vm1, %v5006_v48 }
  0x8e   : > { %4166 = vmatprep.mubr.msk.bf16.mxu0 %vm237_vm1, %v4957_v11 }
  0x94   : > { %4013 = vmatmul.mubr.msk.bf16.gmra.mrb[24].mxu1 %vm237_vm1, %v5016_v0 }
  0x95   : > { %4167 = vmatmul.mubr.msk.bf16.gmra.mrb[8].mxu0 %vm237_vm1, %v4969_v14  ;;  %4016 = vmatprep.mubr.msk.bf16.mxu1 %vm237_vm1, %v5018_v5 }
  0x96   : > { %4170 = vmatprep.mubr.msk.bf16.mxu0 %vm237_vm1, %v4973_v15 }
  0x9c   : > { %4017 = vmatmul.mubr.msk.bf16.gmra.mrb[28].mxu1 %vm237_vm1, %v5028_v18 }
  0x9d   : > { %4171 = vmatmul.mubr.msk.bf16.gmra.mrb[12].mxu0 %vm237_vm1, %v4983_v53  ;;  %4022 = vmatprep.mubr.msk.bf16.mxu1 %vm237_vm1, %v1042_v27 }
  0x9e   : > { %4174 = vmatprep.mubr.msk.bf16.mxu0 %vm237_vm1, %v4985_v29 }
  0xa4   : > { %4023 = vmatmul.mubr.msk.bf16.vlgmr.msra.gmra.mrb[0].mxu1 %vm237_vm1, %v4827_v2  ;;  %v2215_v2 = vld [vmem:[#allocation2 + $0x180] sm:$0xff] }
  0xa5   : > { %4055 = vmatpush3.bf16.msra.mxu1 %v1403_v28  ;;  %4175 = vmatmul.mubr.msk.bf16.gmra.mrb[16].mxu0 %vm237_vm1, %v5004_v45  ;;  %v5057_v46 = vpack.c.bf16 %v2216_v26, %v2215_v2 }
  0xa6   : > { %4026 = vmatprep.mubr.msk.bf16.mxu1 %vm237_vm1, %v4844_v21  ;;  %4178 = vmatprep.mubr.msk.bf16.mxu0 %vm237_vm1, %v5006_v48 }
  0xa7   : > { %4521 = vmatprep.subr.msk.bf16.mxu1 %vm633_vm0, %v4588_v1  ;;  %v2217_v1 = vld [vmem:[#allocation2 + $0x198] sm:$0xff] }
  0xa8   : > { %v2234_v25 = vpack.c.bf16 %v2218_v30, %v2217_v1 }
  0xac   : > { %4027 = vmatmul.mubr.msk.bf16.gmra.mrb[4].mxu1 %vm237_vm1, %v4848_v23 }
  0xad   : > { %4179 = vmatmul.mubr.msk.bf16.gmra.mrb[20].mxu0 %vm237_vm1, %v5016_v0  ;;  %4030 = vmatprep.mubr.msk.bf16.mxu1 %vm237_vm1, %v4869_v34 }
  0xae   : > { %4182 = vmatprep.mubr.msk.bf16.mxu0 %vm237_vm1, %v5018_v5 }
  0xb4   : > { %4031 = vmatmul.mubr.msk.bf16.gmra.mrb[8].mxu1 %vm237_vm1, %v4873_v36 }
  0xb5   : > { %4183 = vmatmul.mubr.msk.bf16.gmra.mrb[24].mxu0 %vm237_vm1, %v5028_v18  ;;  %4034 = vmatprep.mubr.msk.bf16.mxu1 %vm237_vm1, %v4885_v50 }
  0xb6   : > { %4186 = vmatprep.mubr.msk.bf16.mxu0 %vm237_vm1, %v5057_v46 }
  0xbc   : > { %4035 = vmatmul.mubr.msk.bf16.gmra.mrb[12].mxu1 %vm237_vm1, %v4889_v52 }
  0xbd   : > { %4187 = vmatmul.mubr.msk.bf16.gmra.mrb[28].mxu0 %vm237_vm1, %v2234_v25  ;;  %4038 = vmatprep.mubr.msk.bf16.mxu1 %vm237_vm1, %v4901_v62 }
  0xbe   : > { %4192 = vmatprep.mubr.msk.bf16.mxu0 %vm237_vm1, %v2513_v44 }
  0xc4   : > { %4039 = vmatmul.mubr.msk.bf16.gmra.mrb[16].mxu1 %vm237_vm1, %v4903_v4 }
  0xc5   : > { %4193 = vmatmul.mubr.msk.bf16.vlgmr.msra.gmra.mrb[0].mxu0 %vm237_vm1, %v4724_v41  ;;  %4042 = vmatprep.mubr.msk.bf16.mxu1 %vm237_vm1, %v4914_v17  ;;  %v2510_v41 = vld [vmem:[#allocation2 + $0x189] sm:$0xff] }
  0xc6   : > { %4225 = vmatpush3.bf16.msra.mxu0 %v2874_v54  ;;  %4196 = vmatprep.mubr.msk.bf16.mxu0 %vm237_vm1, %v4761_v60 }
  0xcc   : > { %4043 = vmatmul.mubr.msk.bf16.gmra.mrb[20].mxu1 %vm237_vm1, %v4920_v24 }
  0xcd   : > { %4197 = vmatmul.mubr.msk.bf16.gmra.mrb[4].mxu0 %vm237_vm1, %v4771_v10  ;;  %4046 = vmatprep.mubr.msk.bf16.mxu1 %vm237_vm1, %v4939_v39  ;;  %v2511_v10 = vld [vmem:[#allocation2 + $0x199] sm:$0xff] }
  0xce   : > { %4200 = vmatprep.mubr.msk.bf16.mxu0 %vm237_vm1, %v4795_v37  ;;  %v2512_v37 = vld [vmem:[#allocation2 + $0x1a1] sm:$0xff] }
  0xd4   : > { %4047 = vmatmul.mubr.msk.bf16.gmra.mrb[24].mxu1 %vm237_vm1, %v4943_v42 }
  0xd5   : > { %4201 = vmatmul.mubr.msk.bf16.gmra.mrb[8].mxu0 %vm237_vm1, %v4803_v47  ;;  %4050 = vmatprep.mubr.msk.bf16.mxu1 %vm237_vm1, %v4955_v58  ;;  %v2528_v47 = vpack.c.bf16 %v2512_v37, %v2511_v10 }
  0xd6   : > { %4204 = vmatprep.mubr.msk.bf16.mxu0 %vm237_vm1, %v4824_v63  ;;  %v1614_v63 = vld [vmem:[#allocation2 + $0xd9] sm:$0xff] }
  0xdc   : > { %4051 = vmatmul.mubr.msk.bf16.gmra.mrb[28].mxu1 %vm237_vm1, %v4959_v59 }
  0xdd   : > { %4205 = vmatmul.mubr.msk.bf16.gmra.mrb[12].mxu0 %vm237_vm1, %v4841_v20  ;;  %4056 = vmatprep.mubr.msk.bf16.mxu1 %vm237_vm1, %v4912_v16  ;;  %v1615_v20 = vld [vmem:[#allocation2 + $0xe1] sm:$0xff] }
  0xde   : > { %4208 = vmatprep.mubr.msk.bf16.mxu0 %vm237_vm1, %v4846_v22  ;;  %v1616_v22 = vld [vmem:[#allocation2 + $0xf1] sm:$0xff] }
  0xe4   : > { %4057 = vmatmul.mubr.msk.bf16.vlgmr.msra.gmra.mrb[0].mxu1 %vm237_vm1, %v4918_v19 }
  0xe5   : > { %4259 = vmatpush3.bf16.msra.mxu1 %v4596_v3  ;;  %4209 = vmatmul.mubr.msk.bf16.gmra.mrb[16].mxu0 %vm237_vm1, %v4867_v33  ;;  %v2509_v3 = vld [vmem:[#allocation2 + $0x181] sm:$0xff]  ;;  %v1618_v33 = vld [vmem:[#allocation2 + $0x109] sm:$0xff] }
  0xe6   : > { %4060 = vmatprep.mubr.msk.bf16.mxu1 %vm237_vm1, %v4937_v38  ;;  %4212 = vmatprep.mubr.msk.bf16.mxu0 %vm237_vm1, %v4871_v35  ;;  %v2527_v60 = vpack.c.bf16 %v2510_v41, %v2509_v3 }
  0xec   : > { %4061 = vmatmul.mubr.msk.bf16.gmra.mrb[4].mxu1 %vm237_vm1, %v4941_v40 }
  0xed   : > { %4213 = vmatmul.mubr.msk.bf16.gmra.mrb[20].mxu0 %vm237_vm1, %v4883_v49  ;;  %4064 = vmatprep.mubr.msk.bf16.mxu1 %vm237_vm1, %v4953_v57 }
  0xee   : > { %4216 = vmatprep.mubr.msk.bf16.mxu0 %vm237_vm1, %v4887_v51 }
  0xf4   : > { %4065 = vmatmul.mubr.msk.bf16.gmra.mrb[8].mxu1 %vm237_vm1, %v4957_v11 }
  0xf5   : > { %4217 = vmatmul.mubr.msk.bf16.gmra.mrb[24].mxu0 %vm237_vm1, %v4899_v61  ;;  %4068 = vmatprep.mubr.msk.bf16.mxu1 %vm237_vm1, %v4969_v14 }
  0xf6   : > { %4220 = vmatprep.mubr.msk.bf16.mxu0 %vm237_vm1, %v2527_v60 }
  0xfc   : > { %4069 = vmatmul.mubr.msk.bf16.gmra.mrb[12].mxu1 %vm237_vm1, %v4973_v15 }
  0xfd   : > { %4221 = vmatmul.mubr.msk.bf16.gmra.mrb[28].mxu0 %vm237_vm1, %v2528_v47  ;;  %4072 = vmatprep.mubr.msk.bf16.mxu1 %vm237_vm1, %v4983_v53 }
  0xfe   : > { %4226 = vmatprep.mubr.msk.bf16.mxu0 %vm237_vm1, %v4844_v21  ;;  %v1638_v21 = vpack.c.bf16 %v1615_v20, %v1614_v63 }
 0x104   : > { %4073 = vmatmul.mubr.msk.bf16.gmra.mrb[16].mxu1 %vm237_vm1, %v4985_v29 }
 0x105   : > { %4227 = vmatmul.mubr.msk.bf16.vlgmr.msra.gmra.mrb[0].mxu0 %vm237_vm1, %v4848_v23  ;;  %4076 = vmatprep.mubr.msk.bf16.mxu1 %vm237_vm1, %v5004_v45  ;;  %v1617_v23 = vld [vmem:[#allocation2 + $0xf9] sm:$0xff] }
 0x106   : > { %4230 = vmatprep.mubr.msk.bf16.mxu0 %vm237_vm1, %v4869_v34  ;;  %v1619_v34 = vld [vmem:[#allocation2 + $0x111] sm:$0xff] }
 0x10c   : > { %4077 = vmatmul.mubr.msk.bf16.gmra.mrb[20].mxu1 %vm237_vm1, %v5006_v48 }
 0x10d   : > { %4231 = vmatmul.mubr.msk.bf16.gmra.mrb[4].mxu0 %vm237_vm1, %v4873_v36  ;;  %4080 = vmatprep.mubr.msk.bf16.mxu1 %vm237_vm1, %v5016_v0  ;;  %v1639_v36 = vpack.c.bf16 %v1617_v23, %v1616_v22 }
 0x10e   : > { %4234 = vmatprep.mubr.msk.bf16.mxu0 %vm237_vm1, %v4885_v50  ;;  %v1640_v50 = vpack.c.bf16 %v1619_v34, %v1618_v33 }
 0x114   : > { %4081 = vmatmul.mubr.msk.bf16.gmra.mrb[24].mxu1 %vm237_vm1, %v5018_v5 }
 0x115   : > { %4235 = vmatmul.mubr.msk.bf16.gmra.mrb[8].mxu0 %vm237_vm1, %v4889_v52  ;;  %4084 = vmatprep.mubr.msk.bf16.mxu1 %vm237_vm1, %v5028_v18  ;;  %v2806_v52 = vld [vmem:[#allocation2 + $0x1a2] sm:$0xff] }
 0x116   : > { %4238 = vmatprep.mubr.msk.bf16.mxu0 %vm237_vm1, %v4901_v62 }
 0x11c   : > { %4085 = vmatmul.mubr.msk.bf16.gmra.mrb[28].mxu1 %vm237_vm1, %v5057_v46 }
 0x11d   : > { %4239 = vmatmul.mubr.msk.bf16.gmra.mrb[12].mxu0 %vm237_vm1, %v4903_v4  ;;  %4106 = vmatprep.mubr.msk.bf16.mxu1 %vm237_vm1, %v1638_v21 }
 0x11e   : > { %4242 = vmatprep.mubr.msk.bf16.mxu0 %vm237_vm1, %v4914_v17 }
 0x124   : > { %4107 = vmatmul.mubr.msk.bf16.vlgmr.msra.gmra.mrb[16].mxu1 %vm237_vm1, %v1639_v36 }
 0x125   : > { %4243 = vmatmul.mubr.msk.bf16.gmra.mrb[16].mxu0 %vm237_vm1, %v4920_v24  ;;  %4110 = vmatprep.mubr.msk.bf16.mxu1 %vm237_vm1, %v1640_v50 }
 0x126   : > { %4246 = vmatprep.mubr.msk.bf16.mxu0 %vm237_vm1, %v4939_v39 }
 0x12c   : > { %4111 = vmatmul.mubr.msk.bf16.gmra.mrb[20].mxu1 %vm237_vm1, %v4871_v35  ;;  %v2805_v35 = vld [vmem:[#allocation2 + $0x19a] sm:$0xff] }
 0x12d   : > { %4247 = vmatmul.mubr.msk.bf16.gmra.mrb[20].mxu0 %vm237_vm1, %v4943_v42  ;;  %4114 = vmatprep.mubr.msk.bf16.mxu1 %vm237_vm1, %v4883_v49  ;;  %v2822_v62 = vpack.c.bf16 %v2806_v52, %v2805_v35 }
 0x12e   : > { %4250 = vmatprep.mubr.msk.bf16.mxu0 %vm237_vm1, %v4955_v58 }
 0x134   : > { %4115 = vmatmul.mubr.msk.bf16.gmra.mrb[24].mxu1 %vm237_vm1, %v4887_v51 }
 0x135   : > { %4251 = vmatmul.mubr.msk.bf16.gmra.mrb[24].mxu0 %vm237_vm1, %v4959_v59  ;;  %4118 = vmatprep.mubr.msk.bf16.mxu1 %vm237_vm1, %v4899_v61 }
 0x136   : > { %4254 = vmatprep.mubr.msk.bf16.mxu0 %vm237_vm1, %v4971_v7 }
 0x13c   : > { %4119 = vmatmul.mubr.msk.bf16.gmra.mrb[28].mxu1 %vm237_vm1, %v2527_v60 }
 0x13d   : > { %4255 = vmatmul.mubr.msk.bf16.gmra.mrb[28].mxu0 %vm237_vm1, %v2822_v62 }
 0x1b7   : > { %v4058_v49 = vpop.f32.mrb[0].mxu1 }
 0x1b8   : > { %v1439_v4 = vpop.f32.mrb[1].mxu1 }
 0x1b9   : > { %v4059_v16 = vpop.f32.mrb[2].mxu1 }
 0x1ba   : > { %v1442_v51 = vpop.f32.mrb[3].mxu1 }
 0x1bf   : > { %v4062_v17 = vpop.f32.mrb[4].mxu1 }
 0x1c0   : > { %v1455_v19 = vpop.f32.mrb[5].mxu1 }
 0x1c1   : > { %v4063_v24 = vpop.f32.mrb[6].mxu1 }
 0x1c2   : > { %v1458_v38 = vpop.f32.mrb[7].mxu1 }
 0x1c7   : > { %v5193_v61 = vpop.f32.mrb[8].mxu1 }
 0x1c8   : > { %v5195_v39 = vpop.f32.mrb[9].mxu1 }
 0x1c9   : > { %v5197_v40 = vpop.f32.mrb[10].mxu1 }
 0x1ca   : > { %v5199_v42 = vpop.f32.mrb[11].mxu1 }
 0x1cf   : > { %v5201_v57 = vpop.f32.mrb[12].mxu1 }
 0x1d0   : > { %v5203_v58 = vpop.f32.mrb[13].mxu1 }
 0x1d1   : > { %v5205_v11 = vpop.f32.mrb[14].mxu1 }
 0x1d2   : > { %v5207_v59 = vpop.f32.mrb[15].mxu1 }
 0x1d8   : > { %v4228_v14 = vpop.f32.mrb[0].mxu0 }
 0x1d9   : > { %v4260_v7 = vadd.f32 %v4228_v14, %v4058_v49  ;;  %v2910_v15 = vpop.f32.mrb[1].mxu0 }
 0x1da   : > { %v4261_v53 = vadd.f32 %v2910_v15, %v1439_v4  ;;  %v4229_v29 = vpop.f32.mrb[2].mxu0 }
 0x1db   : > { %v3690_v31 = vpack.c.bf16 %v4260_v7, %v4260_v7  ;;  %v4262_v45 = vadd.f32 %v4229_v29, %v4059_v16  ;;  %v2913_v48 = vpop.f32.mrb[3].mxu0  ;;  %v3141_v0 = vmul.f32 %v4260_v7, %v4260_v7  ;;  %v3072_v28 = vsel %vm237_vm1, %v4260_v7, 0.0 }
 0x1dc   : > { %v3139_v9 = vmul.f32 %v4261_v53, %v4261_v53  ;;  %v3688_v55 = vpack.c.bf16 %v4261_v53, %v4261_v53  ;;  %v4263_v56 = vadd.f32 %v2913_v48, %v1442_v51  ;;  %v3069_v6 = vsel %vm237_vm1, %v4261_v53, 0.0 }
 0x1dd   : > { %3372 = vst.msk [vmem:[%s5214_s25 + $0x8] sm:$0xf] %vm3369_vm4, %v3690_v31  ;;  %v3691_v5 = vpack.c.bf16 %v4262_v45, %v4262_v45  ;;  %v3142_v18 = vmul.f32 %v4262_v45, %v4262_v45  ;;  %v3174_v25 = vsel %vm237_vm1, %v3141_v0, 0.0  ;;  %v3074_v3 = vsel %vm237_vm1, %v4262_v45, 0.0 }
 0x1de   : > { %3370 = vst.msk [vmem:[%s5214_s25] sm:$0xf] %vm3369_vm4, %v3688_v55  ;;  %v3070_v8 = vsel %vm237_vm1, %v4263_v56, 0.0  ;;  %v3140_v12 = vmul.f32 %v4263_v56, %v4263_v56  ;;  %v3689_v13 = vpack.c.bf16 %v4263_v56, %v4263_v56  ;;  %v3171_v2 = vsel %vm237_vm1, %v3139_v9, 0.0 }
 0x1df   : > { %3373 = vst.msk [vmem:[%s5214_s25 + $0xc] sm:$0xf] %vm3369_vm4, %v3691_v5  ;;  %v3071_v27 = vadd.f32 %v3070_v8, %v3069_v6  ;;  %v3176_v41 = vsel %vm237_vm1, %v3142_v18, 0.0 }
 0x1e0   : > { %v3172_v26 = vsel %vm237_vm1, %v3140_v12, 0.0  ;;  %3371 = vst.msk [vmem:[%s5214_s25 + $0x4] sm:$0xf] %vm3369_vm4, %v3689_v13  ;;  %v4232_v46 = vpop.f32.mrb[4].mxu0 }
 0x1e1   : > { %v3073_v1 = vadd.f32 %v3072_v28, %v3071_v27  ;;  %v3173_v30 = vadd.f32 %v3172_v26, %v3171_v2  ;;  %v4264_v32 = vadd.f32 %v4232_v46, %v4062_v17  ;;  %v2926_v43 = vpop.f32.mrb[5].mxu0 }
 0x1e2   : > { %v4265_v44 = vadd.f32 %v2926_v43, %v1455_v19  ;;  %v4233_v54 = vpop.f32.mrb[6].mxu0 }
 0x1e3   : > { %v3175_v60 = vadd.f32 %v3174_v25, %v3173_v30  ;;  %v3694_v10 = vpack.c.bf16 %v4264_v32, %v4264_v32  ;;  %v2929_v37 = vpop.f32.mrb[7].mxu0  ;;  %v3075_v47 = vadd.f32 %v3074_v3, %v3073_v1  ;;  %v4266_v23 = vadd.f32 %v4233_v54, %v4063_v24 }
 0x1e4   : > { %v3076_v63 = vsel %vm237_vm1, %v4265_v44, 0.0  ;;  %v3143_v20 = vmul.f32 %v4265_v44, %v4265_v44  ;;  %v3692_v21 = vpack.c.bf16 %v4265_v44, %v4265_v44  ;;  %v4267_v33 = vadd.f32 %v2929_v37, %v1458_v38 }
 0x1e5   : > { %3376 = vst.msk [vmem:[%s5214_s25 + $0x18] sm:$0xf] %vm3369_vm4, %v3694_v10  ;;  %v3177_v22 = vadd.f32 %v3176_v41, %v3175_v60  ;;  %v3077_v34 = vadd.f32 %v3076_v63, %v3075_v47  ;;  %v3145_v50 = vmul.f32 %v4264_v32, %v4264_v32  ;;  %v3695_v52 = vpack.c.bf16 %v4266_v23, %v4266_v23 }
 0x1e6   : > { %v3178_v36 = vsel %vm237_vm1, %v3143_v20, 0.0  ;;  %3374 = vst.msk [vmem:[%s5214_s25 + $0x10] sm:$0xf] %vm3369_vm4, %v3692_v21  ;;  %v3078_v62 = vsel %vm237_vm1, %v4267_v33, 0.0  ;;  %v3144_v49 = vmul.f32 %v4267_v33, %v4267_v33  ;;  %v3693_v4 = vpack.c.bf16 %v4267_v33, %v4267_v33 }
 0x1e7   : > { %v3179_v35 = vadd.f32 %v3178_v36, %v3177_v22  ;;  %3377 = vst.msk [vmem:[%s5214_s25 + $0x1c] sm:$0xf] %vm3369_vm4, %v3695_v52  ;;  %v3079_v51 = vadd.f32 %v3078_v62, %v3077_v34  ;;  %v3080_v24 = vsel %vm237_vm1, %v4264_v32, 0.0  ;;  %v3146_v38 = vmul.f32 %v4266_v23, %v4266_v23 }
 0x1e8   : > { %v4236_v16 = vpop.f32.mrb[8].mxu0  ;;  %v3180_v14 = vsel %vm237_vm1, %v3144_v49, 0.0  ;;  %3375 = vst.msk [vmem:[%s5214_s25 + $0x14] sm:$0xf] %vm3369_vm4, %v3693_v4  ;;  %v3182_v53 = vsel %vm237_vm1, %v3145_v50, 0.0  ;;  %v3082_v29 = vsel %vm237_vm1, %v4266_v23, 0.0 }
 0x1e9   : > { %v4268_v17 = vadd.f32 %v4236_v16, %v5193_v61  ;;  %v2942_v19 = vpop.f32.mrb[9].mxu0  ;;  %v3081_v31 = vadd.f32 %v3080_v24, %v3079_v51  ;;  %v3181_v45 = vadd.f32 %v3180_v14, %v3179_v35 }
 0x1ea   : > { %v4269_v7 = vadd.f32 %v2942_v19, %v5195_v39  ;;  %v4237_v15 = vpop.f32.mrb[10].mxu0  ;;  %v3184_v39 = vsel %vm237_vm1, %v3146_v38, 0.0 }
 0x1eb   : > { %v2945_v61 = vpop.f32.mrb[11].mxu0  ;;  %v3698_v48 = vpack.c.bf16 %v4268_v17, %v4268_v17  ;;  %v3183_v0 = vadd.f32 %v3182_v53, %v3181_v45  ;;  %v3083_v5 = vadd.f32 %v3082_v29, %v3081_v31  ;;  %v4270_v6 = vadd.f32 %v4237_v15, %v5197_v40 }
 0x1ec   : > { %v3084_v9 = vsel %vm237_vm1, %v4269_v7, 0.0  ;;  %v3147_v55 = vmul.f32 %v4269_v7, %v4269_v7  ;;  %v3696_v56 = vpack.c.bf16 %v4269_v7, %v4269_v7  ;;  %v4271_v12 = vadd.f32 %v2945_v61, %v5199_v42 }
 0x1ed   : > { %3380 = vst.msk [vmem:[%s5214_s25 + $0x28] sm:$0xf] %vm3369_vm4, %v3698_v48  ;;  %v3149_v13 = vmul.f32 %v4268_v17, %v4268_v17  ;;  %v3085_v18 = vadd.f32 %v3084_v9, %v3083_v5  ;;  %v3185_v27 = vadd.f32 %v3184_v39, %v3183_v0  ;;  %v3699_v28 = vpack.c.bf16 %v4270_v6, %v4270_v6 }
 0x1ee   : > { %v3186_v8 = vsel %vm237_vm1, %v3147_v55, 0.0  ;;  %3378 = vst.msk [vmem:[%s5214_s25 + $0x20] sm:$0xf] %vm3369_vm4, %v3696_v56  ;;  %v3086_v2 = vsel %vm237_vm1, %v4271_v12, 0.0  ;;  %v3148_v26 = vmul.f32 %v4271_v12, %v4271_v12  ;;  %v3697_v40 = vpack.c.bf16 %v4271_v12, %v4271_v12 }
 0x1ef   : > { %v3187_v1 = vadd.f32 %v3186_v8, %v3185_v27  ;;  %v3087_v30 = vadd.f32 %v3086_v2, %v3085_v18  ;;  %v3088_v25 = vsel %vm237_vm1, %v4268_v17, 0.0  ;;  %v3150_v44 = vmul.f32 %v4270_v6, %v4270_v6  ;;  %3381 = vst.msk [vmem:[%s5214_s25 + $0x2c] sm:$0xf] %vm3369_vm4, %v3699_v28 }
 0x1f0   : > { %v4240_v46 = vpop.f32.mrb[12].mxu0  ;;  %v3188_v42 = vsel %vm237_vm1, %v3148_v26, 0.0  ;;  %3379 = vst.msk [vmem:[%s5214_s25 + $0x24] sm:$0xf] %vm3369_vm4, %v3697_v40  ;;  %v3190_v41 = vsel %vm237_vm1, %v3149_v13, 0.0  ;;  %v3090_v60 = vsel %vm237_vm1, %v4270_v6, 0.0 }
 0x1f1   : > { %v4272_v32 = vadd.f32 %v4240_v46, %v5201_v57  ;;  %v2958_v43 = vpop.f32.mrb[13].mxu0  ;;  %v3089_v57 = vadd.f32 %v3088_v25, %v3087_v30  ;;  %v3189_v10 = vadd.f32 %v3188_v42, %v3187_v1 }
 0x1f2   : > { %v4273_v54 = vadd.f32 %v2958_v43, %v5203_v58  ;;  %v4241_v3 = vpop.f32.mrb[14].mxu0  ;;  %v3192_v58 = vsel %vm237_vm1, %v3150_v44, 0.0 }
 0x1f3   : > { %v2961_v37 = vpop.f32.mrb[15].mxu0  ;;  %v3702_v47 = vpack.c.bf16 %v4272_v32, %v4272_v32  ;;  %v3191_v22 = vadd.f32 %v3190_v41, %v3189_v10  ;;  %v3091_v23 = vadd.f32 %v3090_v60, %v3089_v57  ;;  %v4274_v33 = vadd.f32 %v4241_v3, %v5205_v11 }
 0x1f4   : > { %v3092_v63 = vsel %vm237_vm1, %v4273_v54, 0.0  ;;  %v3151_v20 = vmul.f32 %v4273_v54, %v4273_v54  ;;  %v3700_v21 = vpack.c.bf16 %v4273_v54, %v4273_v54  ;;  %v4275_v36 = vadd.f32 %v2961_v37, %v5207_v59 }
 0x1f5   : > { %3384 = vst.msk [vmem:[%s5214_s25 + $0x38] sm:$0xf] %vm3369_vm4, %v3702_v47  ;;  %v3153_v50 = vmul.f32 %v4272_v32, %v4272_v32  ;;  %v3093_v35 = vadd.f32 %v3092_v63, %v3091_v23  ;;  %v3193_v52 = vadd.f32 %v3192_v58, %v3191_v22  ;;  %v3703_v49 = vpack.c.bf16 %v4274_v33, %v4274_v33 }
 0x1f6   : > { %v3194_v34 = vsel %vm237_vm1, %v3151_v20, 0.0  ;;  %3382 = vst.msk [vmem:[%s5214_s25 + $0x30] sm:$0xf] %vm3369_vm4, %v3700_v21  ;;  %v3094_v4 = vsel %vm237_vm1, %v4275_v36, 0.0  ;;  %v3152_v11 = vmul.f32 %v4275_v36, %v4275_v36  ;;  %v3701_v16 = vpack.c.bf16 %v4275_v36, %v4275_v36 }
 0x1f7   : > { %v4108_v62 = vpop.f32.mrb[16].mxu1  ;;  %v3195_v19 = vadd.f32 %v3194_v34, %v3193_v52  ;;  %v3095_v24 = vadd.f32 %v3094_v4, %v3093_v35  ;;  %v3096_v59 = vsel %vm237_vm1, %v4272_v32, 0.0  ;;  %v3154_v15 = vmul.f32 %v4274_v33, %v4274_v33  ;;  %3385 = vst.msk [vmem:[%s5214_s25 + $0x3c] sm:$0xf] %vm3369_vm4, %v3703_v49 }
 0x1f8   : > { %v1797_v51 = vpop.f32.mrb[17].mxu1  ;;  %v4244_v17 = vpop.f32.mrb[16].mxu0  ;;  %v3196_v53 = vsel %vm237_vm1, %v3152_v11, 0.0  ;;  %3383 = vst.msk [vmem:[%s5214_s25 + $0x34] sm:$0xf] %vm3369_vm4, %v3701_v16  ;;  %v3198_v61 = vsel %vm237_vm1, %v3153_v50, 0.0 }
 0x1f9   : > { %v4276_v38 = vadd.f32 %v4244_v17, %v4108_v62  ;;  %v4109_v14 = vpop.f32.mrb[18].mxu1  ;;  %v2974_v7 = vpop.f32.mrb[17].mxu0  ;;  %v3098_v48 = vsel %vm237_vm1, %v4274_v33, 0.0  ;;  %v3097_v9 = vadd.f32 %v3096_v59, %v3095_v24  ;;  %v3197_v55 = vadd.f32 %v3196_v53, %v3195_v19 }
 0x1fa   : > { %v4277_v29 = vadd.f32 %v2974_v7, %v1797_v51  ;;  %v1800_v31 = vpop.f32.mrb[19].mxu1  ;;  %v4245_v45 = vpop.f32.mrb[18].mxu0  ;;  %v3200_v18 = vsel %vm237_vm1, %v3154_v15, 0.0 }
 0x1fb   : > { %v2977_v56 = vpop.f32.mrb[19].mxu0  ;;  %v3706_v0 = vpack.c.bf16 %v4276_v38, %v4276_v38  ;;  %v3199_v8 = vadd.f32 %v3198_v61, %v3197_v55  ;;  %v3099_v12 = vadd.f32 %v3098_v48, %v3097_v9  ;;  %v4278_v13 = vadd.f32 %v4245_v45, %v4109_v14 }
 0x1fc   : > { %v3100_v5 = vsel %vm237_vm1, %v4277_v29, 0.0  ;;  %v3155_v6 = vmul.f32 %v4277_v29, %v4277_v29  ;;  %v3704_v39 = vpack.c.bf16 %v4277_v29, %v4277_v29  ;;  %v4279_v28 = vadd.f32 %v2977_v56, %v1800_v31 }
 0x1fd   : > { %3388 = vst.msk [vmem:[%s5214_s25 + $0x48] sm:$0xf] %vm3369_vm4, %v3706_v0  ;;  %v3157_v2 = vmul.f32 %v4276_v38, %v4276_v38  ;;  %v3101_v26 = vadd.f32 %v3100_v5, %v3099_v12  ;;  %v3201_v40 = vadd.f32 %v3200_v18, %v3199_v8  ;;  %v3707_v1 = vpack.c.bf16 %v4278_v13, %v4278_v13 }
 0x1fe   : > { %v3202_v27 = vsel %vm237_vm1, %v3155_v6, 0.0  ;;  %3386 = vst.msk [vmem:[%s5214_s25 + $0x40] sm:$0xf] %vm3369_vm4, %v3704_v39  ;;  %v3102_v30 = vsel %vm237_vm1, %v4279_v28, 0.0  ;;  %v3156_v32 = vmul.f32 %v4279_v28, %v4279_v28  ;;  %v3705_v43 = vpack.c.bf16 %v4279_v28, %v4279_v28 }
 0x1ff   : > { %v4112_v46 = vpop.f32.mrb[20].mxu1  ;;  %v3203_v42 = vadd.f32 %v3202_v27, %v3201_v40  ;;  %v3103_v54 = vadd.f32 %v3102_v30, %v3101_v26  ;;  %v3104_v57 = vsel %vm237_vm1, %v4276_v38, 0.0  ;;  %v3158_v10 = vmul.f32 %v4278_v13, %v4278_v13  ;;  %3389 = vst.msk [vmem:[%s5214_s25 + $0x4c] sm:$0xf] %vm3369_vm4, %v3707_v1 }
 0x200   : > { %v1813_v25 = vpop.f32.mrb[21].mxu1  ;;  %v4248_v44 = vpop.f32.mrb[20].mxu0  ;;  %v3204_v37 = vsel %vm237_vm1, %v3156_v32, 0.0  ;;  %3387 = vst.msk [vmem:[%s5214_s25 + $0x44] sm:$0xf] %vm3369_vm4, %v3705_v43  ;;  %v3206_v21 = vsel %vm237_vm1, %v3157_v2, 0.0 }
 0x201   : > { %v4280_v3 = vadd.f32 %v4248_v44, %v4112_v46  ;;  %v4113_v41 = vpop.f32.mrb[22].mxu1  ;;  %v2990_v60 = vpop.f32.mrb[21].mxu0  ;;  %v3106_v22 = vsel %vm237_vm1, %v4278_v13, 0.0  ;;  %v3105_v23 = vadd.f32 %v3104_v57, %v3103_v54  ;;  %v3205_v33 = vadd.f32 %v3204_v37, %v3203_v42 }
 0x202   : > { %v4281_v47 = vadd.f32 %v2990_v60, %v1813_v25  ;;  %v1816_v63 = vpop.f32.mrb[23].mxu1  ;;  %v4249_v20 = vpop.f32.mrb[22].mxu0  ;;  %v3208_v4 = vsel %vm237_vm1, %v3158_v10, 0.0 }
 0x203   : > { %v2993_v58 = vpop.f32.mrb[23].mxu0  ;;  %v3710_v34 = vpack.c.bf16 %v4280_v3, %v4280_v3  ;;  %v3207_v52 = vadd.f32 %v3206_v21, %v3205_v33  ;;  %v3107_v62 = vadd.f32 %v3106_v22, %v3105_v23  ;;  %v4282_v49 = vadd.f32 %v4249_v20, %v4113_v41 }
 0x204   : > { %v3108_v36 = vsel %vm237_vm1, %v4281_v47, 0.0  ;;  %v3159_v50 = vmul.f32 %v4281_v47, %v4281_v47  ;;  %v3708_v35 = vpack.c.bf16 %v4281_v47, %v4281_v47  ;;  %v4283_v16 = vadd.f32 %v2993_v58, %v1816_v63 }
 0x205   : > { %3392 = vst.msk [vmem:[%s5214_s25 + $0x58] sm:$0xf] %vm3369_vm4, %v3710_v34  ;;  %v3161_v51 = vmul.f32 %v4280_v3, %v4280_v3  ;;  %v3109_v17 = vadd.f32 %v3108_v36, %v3107_v62  ;;  %v3209_v19 = vadd.f32 %v3208_v4, %v3207_v52  ;;  %v3711_v38 = vpack.c.bf16 %v4282_v49, %v4282_v49 }
 0x206   : > { %v3210_v11 = vsel %vm237_vm1, %v3159_v50, 0.0  ;;  %3390 = vst.msk [vmem:[%s5214_s25 + $0x50] sm:$0xf] %vm3369_vm4, %v3708_v35  ;;  %v3110_v14 = vsel %vm237_vm1, %v4283_v16, 0.0  ;;  %v3160_v7 = vmul.f32 %v4283_v16, %v4283_v16  ;;  %v3709_v59 = vpack.c.bf16 %v4283_v16, %v4283_v16 }
 0x207   : > { %v4116_v24 = vpop.f32.mrb[24].mxu1  ;;  %v3211_v29 = vadd.f32 %v3210_v11, %v3209_v19  ;;  %v3111_v31 = vadd.f32 %v3110_v14, %v3109_v17  ;;  %v3112_v9 = vsel %vm237_vm1, %v4280_v3, 0.0  ;;  %v3162_v55 = vmul.f32 %v4282_v49, %v4282_v49  ;;  %3393 = vst.msk [vmem:[%s5214_s25 + $0x5c] sm:$0xf] %vm3369_vm4, %v3711_v38 }
 0x208   : > { %v1829_v15 = vpop.f32.mrb[25].mxu1  ;;  %v4252_v53 = vpop.f32.mrb[24].mxu0  ;;  %v3212_v56 = vsel %vm237_vm1, %v3160_v7, 0.0  ;;  %3391 = vst.msk [vmem:[%s5214_s25 + $0x54] sm:$0xf] %vm3369_vm4, %v3709_v59  ;;  %v3214_v39 = vsel %vm237_vm1, %v3161_v51, 0.0 }
 0x209   : > { %v4284_v45 = vadd.f32 %v4252_v53, %v4116_v24  ;;  %v4117_v61 = vpop.f32.mrb[26].mxu1  ;;  %v3006_v48 = vpop.f32.mrb[25].mxu0  ;;  %v3114_v8 = vsel %vm237_vm1, %v4282_v49, 0.0  ;;  %v3113_v12 = vadd.f32 %v3112_v9, %v3111_v31  ;;  %v3213_v13 = vadd.f32 %v3212_v56, %v3211_v29 }
 0x20a   : > { %v4285_v0 = vadd.f32 %v3006_v48, %v1829_v15  ;;  %v1832_v5 = vpop.f32.mrb[27].mxu1  ;;  %v4253_v6 = vpop.f32.mrb[26].mxu0  ;;  %v3216_v30 = vsel %vm237_vm1, %v3162_v55, 0.0 }
 0x20b   : > { %v3009_v18 = vpop.f32.mrb[27].mxu0  ;;  %v3714_v27 = vpack.c.bf16 %v4284_v45, %v4284_v45  ;;  %v3215_v40 = vadd.f32 %v3214_v39, %v3213_v13  ;;  %v3115_v46 = vadd.f32 %v3114_v8, %v3113_v12  ;;  %v4286_v1 = vadd.f32 %v4253_v6, %v4117_v61 }
 0x20c   : > { %v3116_v28 = vsel %vm237_vm1, %v4285_v0, 0.0  ;;  %v3163_v2 = vmul.f32 %v4285_v0, %v4285_v0  ;;  %v3712_v26 = vpack.c.bf16 %v4285_v0, %v4285_v0  ;;  %v4287_v43 = vadd.f32 %v3009_v18, %v1832_v5 }
 0x20d   : > { %3396 = vst.msk [vmem:[%s5214_s25 + $0x68] sm:$0xf] %vm3369_vm4, %v3714_v27  ;;  %v3165_v25 = vmul.f32 %v4284_v45, %v4284_v45  ;;  %v3117_v44 = vadd.f32 %v3116_v28, %v3115_v46  ;;  %v3217_v42 = vadd.f32 %v3216_v30, %v3215_v40  ;;  %v3715_v3 = vpack.c.bf16 %v4286_v1, %v4286_v1 }
 0x20e   : > { %v3218_v32 = vsel %vm237_vm1, %v3163_v2, 0.0  ;;  %3394 = vst.msk [vmem:[%s5214_s25 + $0x60] sm:$0xf] %vm3369_vm4, %v3712_v26  ;;  %v3118_v41 = vsel %vm237_vm1, %v4287_v43, 0.0  ;;  %v3164_v60 = vmul.f32 %v4287_v43, %v4287_v43  ;;  %v3713_v57 = vpack.c.bf16 %v4287_v43, %v4287_v43 }
 0x20f   : > { %v4120_v54 = vpop.f32.mrb[28].mxu1  ;;  %v3219_v47 = vadd.f32 %v3218_v32, %v3217_v42  ;;  %v3119_v63 = vadd.f32 %v3118_v41, %v3117_v44  ;;  %v3120_v23 = vsel %vm237_vm1, %v4284_v45, 0.0  ;;  %v3166_v33 = vmul.f32 %v4286_v1, %v4286_v1  ;;  %3397 = vst.msk [vmem:[%s5214_s25 + $0x6c] sm:$0xf] %vm3369_vm4, %v3715_v3 }
 0x210   : > { %v1845_v10 = vpop.f32.mrb[29].mxu1  ;;  %v4256_v37 = vpop.f32.mrb[28].mxu0  ;;  %v3220_v58 = vsel %vm237_vm1, %v3164_v60, 0.0  ;;  %3395 = vst.msk [vmem:[%s5214_s25 + $0x64] sm:$0xf] %vm3369_vm4, %v3713_v57  ;;  %v3222_v35 = vsel %vm237_vm1, %v3165_v25, 0.0 }
 0x211   : > { %v4288_v20 = vadd.f32 %v4256_v37, %v4120_v54  ;;  %v4121_v21 = vpop.f32.mrb[30].mxu1  ;;  %v3022_v22 = vpop.f32.mrb[29].mxu0  ;;  %v3122_v52 = vsel %vm237_vm1, %v4286_v1, 0.0  ;;  %v3121_v62 = vadd.f32 %v3120_v23, %v3119_v63  ;;  %v3221_v49 = vadd.f32 %v3220_v58, %v3219_v47 }
 0x212   : > { %v4289_v34 = vadd.f32 %v3022_v22, %v1845_v10  ;;  %v1848_v36 = vpop.f32.mrb[31].mxu1  ;;  %v4257_v50 = vpop.f32.mrb[30].mxu0  ;;  %v3224_v14 = vsel %vm237_vm1, %v3166_v33, 0.0 }
 0x213   : > { %v3025_v4 = vpop.f32.mrb[31].mxu0  ;;  %v3718_v11 = vpack.c.bf16 %v4288_v20, %v4288_v20  ;;  %v3223_v19 = vadd.f32 %v3222_v35, %v3221_v49  ;;  %v3123_v24 = vadd.f32 %v3122_v52, %v3121_v62  ;;  %v4290_v38 = vadd.f32 %v4257_v50, %v4121_v21 }
 0x214   : > { %v3124_v16 = vsel %vm237_vm1, %v4289_v34, 0.0  ;;  %v3167_v51 = vmul.f32 %v4289_v34, %v4289_v34  ;;  %v3716_v17 = vpack.c.bf16 %v4289_v34, %v4289_v34  ;;  %v4291_v59 = vadd.f32 %v3025_v4, %v1848_v36 }
 0x215   : > { %3400 = vst.msk [vmem:[%s5214_s25 + $0x78] sm:$0xf] %vm3369_vm4, %v3718_v11  ;;  %v3169_v15 = vmul.f32 %v4288_v20, %v4288_v20  ;;  %v3125_v53 = vadd.f32 %v3124_v16, %v3123_v24  ;;  %v3225_v29 = vadd.f32 %v3224_v14, %v3223_v19  ;;  %v3719_v31 = vpack.c.bf16 %v4290_v38, %v4290_v38 }
 0x216   : > { %v3226_v7 = vsel %vm237_vm1, %v3167_v51, 0.0  ;;  %3398 = vst.msk [vmem:[%s5214_s25 + $0x70] sm:$0xf] %vm3369_vm4, %v3716_v17  ;;  %v3126_v45 = vsel %vm237_vm1, %v4291_v59, 0.0  ;;  %v3168_v61 = vmul.f32 %v4291_v59, %v4291_v59  ;;  %v3717_v48 = vpack.c.bf16 %v4291_v59, %v4291_v59 }
 0x217   : > { %v3227_v9 = vadd.f32 %v3226_v7, %v3225_v29  ;;  %v3127_v55 = vadd.f32 %v3126_v45, %v3125_v53  ;;  %v3128_v56 = vsel %vm237_vm1, %v4288_v20, 0.0  ;;  %v3170_v0 = vmul.f32 %v4290_v38, %v4290_v38  ;;  %3401 = vst.msk [vmem:[%s5214_s25 + $0x7c] sm:$0xf] %vm3369_vm4, %v3719_v31 }
 0x218   : > { %v3228_v5 = vsel %vm237_vm1, %v3168_v61, 0.0  ;;  %3399 = vst.msk [vmem:[%s5214_s25 + $0x74] sm:$0xf] %vm3369_vm4, %v3717_v48  ;;  %v3230_v8 = vsel %vm237_vm1, %v3169_v15, 0.0  ;;  %v3130_v12 = vsel %vm237_vm1, %v4290_v38, 0.0 }
 0x219   : > { %v3129_v6 = vadd.f32 %v3128_v56, %v3127_v55  ;;  %v3229_v39 = vadd.f32 %v3228_v5, %v3227_v9  ;;  %v3232_v27 = vsel %vm237_vm1, %v3170_v0, 0.0 }
 0x21b   : > { %v3131_v13 = vadd.f32 %v3130_v12, %v3129_v6  ;;  %v3231_v18 = vadd.f32 %v3230_v8, %v3229_v39 }
 0x21d   : > { %v3132_v28 = vrot.slane %v3131_v13, 4  ;;  %v3233_v2 = vadd.f32 %v3232_v27, %v3231_v18 }
 0x21f   : > { %v3133_v26 = vadd.f32 %v3132_v28, %v3131_v13  ;;  %v3234_v40 = vrot.slane %v3233_v2, 4 }
 0x221   : > { %v3134_v46 = vrot.slane %v3133_v26, 2  ;;  %v3235_v1 = vadd.f32 %v3234_v40, %v3233_v2 }
 0x223   : > { %v3135_v30 = vadd.f32 %v3134_v46, %v3133_v26  ;;  %v3236_v32 = vrot.slane %v3235_v1, 2 }
 0x225   : > { %v3136_v43 = vrot.slane %v3135_v30, 1  ;;  %v3237_v25 = vadd.f32 %v3236_v32, %v3235_v1 }
 0x227   : > { %v3137_v44 = vadd.f32 %v3136_v43, %v3135_v30  ;;  %v3238_v42 = vrot.slane %v3237_v25, 1 }
 0x229   : > { %3138 = vst.msk [vmem:[%s235_s29] sm:$0x1] %vm247_vm3, %v3137_v44  ;;  %v3239_v54 = vadd.f32 %v3238_v42, %v3237_v25 }
 0x22b   : > { %3240 = vst.msk [vmem:[%s235_s29 + $0x1] sm:$0x1] %vm247_vm3, %v3239_v54 }
 0x22c PF: > { %s16_s18 = sadd.s32 1, %s4541_s18  }
 0x22d   : > { %p13_p4 = scmp.ge.s32.totalorder %s16_s18, 4  }
 0x22f   :  { %15 = sbr.rel (!%p13_p4) target bundleno = 1 (0x1), region = 89 }

</bundles_post_ra>
